<compile_context>
chip_gen: v5e
topology: v5e:2x2
jax: 0.10.0
libtpu: 0.0.40
codegen_flags: <defaults>
</compile_context>

<pallas_src>
import numpy as np
import jax
import jax.numpy as jnp
from jax.experimental import pallas as pl
from jax.experimental.pallas import tpu as pltpu  # noqa: F401  (kept for TPU-specific params if scaled up)

# ----------------------------- configuration -----------------------------
HIDDEN = 32          # hidden_size
FFN = 64             # ffn_size
HEADS = 4            # num_heads
ATT = HIDDEN // HEADS
B = 2                # batch
N = 8                # nodes (sequence length)
EPS = 1e-5           # nn.LayerNorm default
SCALE = ATT ** (-0.5)
INV_SQRT2 = 0.7071067811865476


# ------------------------------ kernel helpers -----------------------------
def _erf(x):
    # Abramowitz & Stegun 7.1.26 (|err| < 1.5e-7): exact-erf GELU parity with
    # nn.GELU().  A few VALU ops + one EUP exp.
    a1, a2, a3, a4, a5 = 0.254829592, -0.284496736, 1.421413741, -1.453152027, 1.061405429
    pp = 0.3275911
    ax = jnp.abs(x)
    t = 1.0 / (1.0 + pp * ax)
    poly = ((((a5 * t + a4) * t + a3) * t + a2) * t + a1) * t
    y = 1.0 - poly * jnp.exp(-ax * ax)
    return jnp.where(x >= 0.0, y, -y)


def _leaky_relu(x):
    return jnp.where(x >= 0.0, x, 0.02 * x)


def _layernorm(x, g, b):
    mu = jnp.mean(x, axis=-1, keepdims=True)
    var = jnp.mean((x - mu) ** 2, axis=-1, keepdims=True)
    return (x - mu) * jax.lax.rsqrt(var + EPS) * g + b


# ------------------------------- fused kernel ------------------------------
def encoder_layer_kernel(x_ref, graphs_ref,
                         pred_sel_ref, pred_scat_ref, pred_w_ref,
                         occ_sel_ref, occ_scat_ref,
                         ln_ref, qkv_ref, attn_out_ref,
                         edge_w_ref, edge_score_ref, cross_ref, atom_ref,
                         ffn1_ref, ffn2_ref, o_ref):
    """Shapes:
      x_ref         (B*N, H)
      graphs_ref    (3, B, N, N)    [attention_mask, atom_graph, variable_graph]
      pred_sel_ref  (2, B, MAXP, N) [var selection, sym selection]
      pred_scat_ref (B, MAXP, N, N) disjoint last-write-wins masks (atom_graph)
      pred_w_ref    (MAXP, B)       path_embed weights (rep / total_reps)
      occ_sel_ref   (B, MAXO, N)    0.5/0.5 pair selection
      occ_scat_ref  (B, MAXO, N, N) disjoint masks (variable_graph)
      ln_ref        (4, H)          [san_g, san_b, ffn_g, ffn_b]
      qkv_ref       (H+1, 6H)       [Wq|Wk|Wv self-attn | Wq|Wk|Wv path-attn ; biases]
      attn_out_ref  (2, H+1, H)     [self-attn out proj, path-attn out proj]
      edge_w_ref    (2, H+1, H)     [proj_var, proj_sym]
      edge_score_ref(1, 2H+1), cross_ref (1, H+1): [w^T | b]
      atom_ref      (2H+1, H), ffn1 (H+1, FFN), ffn2 (FFN+1, H)
      o_ref         (B*N, H)
    """
    H = HIDDEN
    x = x_ref[...]
    graphs = graphs_ref[...]
    pred_sel = pred_sel_ref[...]
    pred_scat = pred_scat_ref[...]
    pred_w = pred_w_ref[...]
    occ_sel = occ_sel_ref[...]
    occ_scat = occ_scat_ref[...]
    ln = ln_ref[...]
    qkv_wb = qkv_ref[...]
    attn_out = attn_out_ref[...]
    edge_w = edge_w_ref[...]
    es = edge_score_ref[...]
    cr = cross_ref[...]
    atom_wb = atom_ref[...]
    ffn1 = ffn1_ref[...]
    ffn2 = ffn2_ref[...]
    maxp = pred_scat.shape[1]
    maxo = occ_scat.shape[1]

    # ---- y = self_attention_norm(x) ----
    y = _layernorm(x, ln[0:1, :], ln[1:2, :])                                   # (B*N, H)

    # ---- fused QKV for BOTH attentions: one (B*N,H)@(H,6H) MXU push ----
    qkv = jnp.dot(y, qkv_wb[:H, :], preferred_element_type=jnp.float32) + qkv_wb[H:H + 1, :]

    # ---- PathAttention graph edits -> additive bias, built entirely in VMEM ----
    path_bias = []
    for b in range(B):
        yb = y[b * N:(b + 1) * N, :]
        # predicate-edge scores, vectorised over all edits of this batch
        var_in = jnp.dot(pred_sel[0, b], yb, preferred_element_type=jnp.float32)   # (MAXP, H)
        sym_in = jnp.dot(pred_sel[1, b], yb, preferred_element_type=jnp.float32)
        var_feat = (jnp.dot(var_in, edge_w[0, :H, :], preferred_element_type=jnp.float32)
                    + edge_w[0, H:H + 1, :])
        sym_feat = (jnp.dot(sym_in, edge_w[1, :H, :], preferred_element_type=jnp.float32)
                    + edge_w[1, H:H + 1, :])
        cat = jnp.tanh(jnp.concatenate([var_feat, sym_feat], axis=1))               # (MAXP, 2H)
        escore = _leaky_relu(
            jnp.sum(cat * es[:, :2 * H], axis=-1, keepdims=True)
            + es[:, 2 * H:2 * H + 1])                                               # (MAXP, 1)
        # variable-occurrence scores
        occ_in = jnp.dot(occ_sel[b], yb, preferred_element_type=jnp.float32)        # (MAXO, H)
        oscore = _leaky_relu(
            jnp.sum(occ_in * cr[:, :H], axis=-1, keepdims=True)
            + cr[:, H:H + 1])                                                       # (MAXO, 1)

        # masks are disjoint (host builds last-write-wins tables):
        # independent accumulation + one masked select == torch in-place edits
        p_tot = jnp.zeros((N, N), jnp.float32)
        p_val = jnp.zeros((N, N), jnp.float32)
        for e in range(maxp):
            m = pred_scat[b, e]
            p_tot = p_tot + m
            p_val = p_val + escore[e:e + 1, 0:1] * m
        ag_b = graphs[1, b] * (1.0 - p_tot) + p_val

        o_tot = jnp.zeros((N, N), jnp.float32)
        o_val = jnp.zeros((N, N), jnp.float32)
        for e in range(maxo):
            m = occ_scat[b, e]
            o_tot = o_tot + m
            o_val = o_val + oscore[e:e + 1, 0:1] * m
        vg_b = graphs[2, b] * (1.0 - o_tot) + o_val

        ag2 = jnp.dot(ag_b, ag_b, preferred_element_type=jnp.float32)
        vg2 = jnp.dot(vg_b, vg_b, preferred_element_type=jnp.float32)
        path_bias.append(0.2 * ag_b + 0.8 * ag2 + vg2)

    # ---- stacked scores for BOTH attentions / all batches / heads: ONE softmax ----
    biases = ([graphs[0, b] for b in range(B)], path_bias)   # self-attn bias, path-attn bias
    s_rows = []
    for a in range(2):
        for b in range(B):
            base = a * 3 * H
            qb = qkv[b * N:(b + 1) * N, base:base + H] * SCALE
            kb = qkv[b * N:(b + 1) * N, base + H:base + 2 * H]
            bias = biases[a][b]
            for h in range(HEADS):
                cs = slice(h * ATT, (h + 1) * ATT)
                s_rows.append(jnp.dot(qb[:, cs], kb[:, cs].T,
                                      preferred_element_type=jnp.float32) + bias)
    s = jnp.concatenate(s_rows, axis=0)                        # (2*B*HEADS*N, N)
    s = s - jnp.max(s, axis=-1, keepdims=True)
    p = jnp.exp(s)
    p = p * pl.reciprocal(jnp.sum(p, axis=-1, keepdims=True), approx=True)

    # ---- attention-weighted values + the two output projections ----
    proj = []
    for a in range(2):
        outs = []
        for b in range(B):
            vbase = a * 3 * H + 2 * H
            vb = qkv[b * N:(b + 1) * N, vbase:vbase + H]
            head_outs = []
            for h in range(HEADS):
                r0 = ((a * B + b) * HEADS + h) * N
                head_outs.append(jnp.dot(p[r0:r0 + N, :], vb[:, h * ATT:(h + 1) * ATT],
                                         preferred_element_type=jnp.float32))
            outs.append(jnp.concatenate(head_outs, axis=1))    # (N, H)
        o_cat = jnp.concatenate(outs, axis=0)                  # (B*N, H)
        proj.append(jnp.dot(o_cat, attn_out[a, :H, :], preferred_element_type=jnp.float32)
                    + attn_out[a, H:H + 1, :])
    y_self, x_path = proj[0], proj[1]

    # ---- path_embed: weighted mean of atom embeddings, broadcast over nodes ----
    y_path_rows = []
    for b in range(B):
        xp = x_path[b * N:(b + 1) * N, :]
        var_x = jnp.dot(pred_sel[0, b], xp, preferred_element_type=jnp.float32)    # (MAXP, H)
        sym_x = jnp.dot(pred_sel[1, b], xp, preferred_element_type=jnp.float32)
        atom = (jnp.dot(jnp.concatenate([var_x, sym_x], axis=1), atom_wb[:2 * H, :],
                        preferred_element_type=jnp.float32) + atom_wb[2 * H:2 * H + 1, :])
        item = jnp.sum(atom * pred_w[:, b:b + 1], axis=0, keepdims=True)            # (1, H)
        y_path_rows.append(jnp.broadcast_to(item, (N, H)))
    y_path = jnp.concatenate(y_path_rows, axis=0)              # (B*N, H)

    # ---- residual combine + ffn_norm + FFN(GELU) + residual ----
    xr = x + 0.5 * (y_self + y_path)
    hh = _layernorm(xr, ln[2:3, :], ln[3:4, :])
    h1 = jnp.dot(hh, ffn1[:H, :], preferred_element_type=jnp.float32) + ffn1[H:H + 1, :]
    h1 = 0.5 * h1 * (1.0 + _erf(h1 * INV_SQRT2))               # exact GELU (nn.GELU())
    h2 = jnp.dot(h1, ffn2[:FFN, :], preferred_element_type=jnp.float32) + ffn2[FFN:FFN + 1, :]
    o_ref[...] = xr + h2


# --------------------------- pallas_call wrapper ----------------------------
def encoder_layer_forward(x, attention_mask, atom_graph, variable_graph, params, tables):
    x2 = x.reshape(B * N, HIDDEN)
    graphs = jnp.stack([attention_mask, atom_graph, variable_graph], axis=0)
    out2 = pl.pallas_call(
        encoder_layer_kernel,
        out_shape=jax.ShapeDtypeStruct((B * N, HIDDEN), jnp.float32),
    )(x2, graphs,
      tables['pred_sel'], tables['pred_scat'], tables['pred_w'],
      tables['occ_sel'], tables['occ_scat'],
      params['ln'], params['qkv'], params['attn_out'],
      params['edge_w'], params['edge_score'], params['cross'], params['atom'],
      params['ffn1'], params['ffn2'])
    return out2.reshape(B, N, HIDDEN)


# ------------------ host-side tables from static structures -----------------
def build_edit_tables(predicate_pos, occurrence_list):
    """Turns the static python predicate_pos / occurrence_list structures into
    dense selection / write-mask tables.  Write masks are made DISJOINT
    (last-write-wins) on the host so the in-kernel graph edit is a single
    masked select per graph instead of a sequential chain."""
    maxp = max(1, max(sum(1 for v in pp if v == 1) for pp in predicate_pos))
    maxo = max(1, max(len(o) for o in occurrence_list))
    var_sel = np.zeros((B, maxp, N), np.float32)
    sym_sel = np.zeros((B, maxp, N), np.float32)
    pred_scat = np.zeros((B, maxp, N, N), np.float32)
    pred_w = np.zeros((maxp, B), np.float32)
    occ_sel = np.zeros((B, maxo, N), np.float32)
    occ_scat = np.zeros((B, maxo, N, N), np.float32)
    for b, pos_list in enumerate(predicate_pos):
        e, reps = 0, []
        for i, pos in enumerate(pos_list):
            if pos != 1:
                continue
            if i == 0:
                var_sel[b, e, 1] = 1.0; sym_sel[b, e, 0] = 1.0
                cells, rep = [(1, 0), (0, 1)], 2
            elif i == 1:
                var_sel[b, e, 0] = 0.5; var_sel[b, e, 2] = 0.5; sym_sel[b, e, 1] = 1.0
                cells, rep = [(1, 0), (0, 1), (1, 2), (2, 1)], 3
            elif pos_list[i - 2] == 1:
                var_sel[b, e, i + 1] = 1.0; sym_sel[b, e, i] = 1.0
                cells, rep = [(i, i - 1), (i - 1, i)], 2
            else:
                var_sel[b, e, i - 1] = 0.5; var_sel[b, e, i + 1] = 0.5; sym_sel[b, e, i] = 1.0
                cells, rep = [(i, i - 1), (i, i + 1), (i - 1, i), (i + 1, i)], 3
            for (r, c) in cells:
                pred_scat[b, :e, r, c] = 0.0      # last-write-wins: clear earlier writers
                pred_scat[b, e, r, c] = 1.0
            reps.append(rep)
            e += 1
        total = float(sum(reps))
        if total > 0.0:
            for ei, rep in enumerate(reps):
                pred_w[ei, b] = rep / total
    for b, occs in enumerate(occurrence_list):
        for oi, occ in enumerate(occs):
            occ_sel[b, oi, occ[0]] += 0.5
            occ_sel[b, oi, occ[1]] += 0.5
            occ_scat[b, :oi, occ[0], occ[1]] = 0.0
            occ_scat[b, :oi, occ[1], occ[0]] = 0.0
            occ_scat[b, oi, occ[0], occ[1]] = 1.0
            occ_scat[b, oi, occ[1], occ[0]] = 1.0
    return dict(
        pred_sel=jnp.asarray(np.stack([var_sel, sym_sel], axis=0)),
        pred_scat=jnp.asarray(pred_scat),
        pred_w=jnp.asarray(pred_w),
        occ_sel=jnp.asarray(occ_sel),
        occ_scat=jnp.asarray(occ_scat),
    )


# ----------------------------- parameters ----------------------------------
def init_params(key):
    def nrm(k, shape, scale=0.1):
        return scale * jax.random.normal(k, shape, jnp.float32)
    ks = iter(jax.random.split(key, 64))
    p = {}
    p['ln'] = jnp.concatenate(
        [jnp.ones((1, HIDDEN), jnp.float32), jnp.zeros((1, HIDDEN), jnp.float32),
         jnp.ones((1, HIDDEN), jnp.float32), jnp.zeros((1, HIDDEN), jnp.float32)], axis=0)
    qkv_w, qkv_b, out_wb = [], [], []
    for _ in range(2):                               # self-attention, then path-attention
        wq = nrm(next(ks), (HIDDEN, HIDDEN)); bq = nrm(next(ks), (1, HIDDEN))
        wk = nrm(next(ks), (HIDDEN, HIDDEN)); bk = nrm(next(ks), (1, HIDDEN))
        wv = nrm(next(ks), (HIDDEN, HIDDEN)); bv = nrm(next(ks), (1, HIDDEN))
        wo = nrm(next(ks), (HIDDEN, HIDDEN)); bo = nrm(next(ks), (1, HIDDEN))
        qkv_w += [wq, wk, wv]; qkv_b += [bq, bk, bv]
        out_wb.append(jnp.concatenate([wo, bo], axis=0))
    p['qkv'] = jnp.concatenate([jnp.concatenate(qkv_w, axis=1),
                                jnp.concatenate(qkv_b, axis=1)], axis=0)           # (H+1, 6H)
    p['attn_out'] = jnp.stack(out_wb, axis=0)                                      # (2, H+1, H)
    wvar = nrm(next(ks), (HIDDEN, HIDDEN)); bvar = nrm(next(ks), (1, HIDDEN))
    wsym = nrm(next(ks), (HIDDEN, HIDDEN)); bsym = nrm(next(ks), (1, HIDDEN))
    p['edge_w'] = jnp.stack([jnp.concatenate([wvar, bvar], axis=0),
                             jnp.concatenate([wsym, bsym], axis=0)], axis=0)       # (2, H+1, H)
    p['edge_score'] = jnp.concatenate([nrm(next(ks), (1, 2 * HIDDEN)),
                                       nrm(next(ks), (1, 1))], axis=1)             # (1, 2H+1)
    p['cross'] = jnp.concatenate([nrm(next(ks), (1, HIDDEN)),
                                  nrm(next(ks), (1, 1))], axis=1)                  # (1, H+1)
    p['atom'] = jnp.concatenate([nrm(next(ks), (2 * HIDDEN, HIDDEN)),
                                 nrm(next(ks), (1, HIDDEN))], axis=0)              # (2H+1, H)
    p['ffn1'] = jnp.concatenate([nrm(next(ks), (HIDDEN, FFN)),
                                 nrm(next(ks), (1, FFN))], axis=0)                 # (H+1, FFN)
    p['ffn2'] = jnp.concatenate([nrm(next(ks), (FFN, HIDDEN)),
                                 nrm(next(ks), (1, HIDDEN))], axis=0)              # (FFN+1, H)
    return p


# --------------------------------- main ------------------------------------
if __name__ == "__main__":
    key = jax.random.PRNGKey(0)
    k_x, k_m, k_ag, k_vg, k_p = jax.random.split(key, 5)

    x = jax.random.normal(k_x, (B, N, HIDDEN), jnp.float32)
    attention_mask = 0.1 * jax.random.normal(k_m, (B, N, N), jnp.float32)   # additive mask
    atom_graph = 0.1 * jax.random.normal(k_ag, (B, N, N), jnp.float32)
    variable_graph = 0.1 * jax.random.normal(k_vg, (B, N, N), jnp.float32)

    # host-side structural inputs (exactly like the PyTorch python loops)
    predicate_pos = [[1, 0, 1, 0, 0, 0, 0, 0],
                     [0, 1, 0, 0, 1, 0, 0, 0]]
    occurrence_list = [[(2, 5)], [(1, 6), (3, 7)]]

    # TODO(synk): dropout layers are identity (eval mode); variable_tags / attn_bias
    # are unused by the reference forward and therefore not modelled.
    params = init_params(k_p)
    tables = build_edit_tables(predicate_pos, occurrence_list)

    out = encoder_layer_forward(x, attention_mask, atom_graph, variable_graph, params, tables)
    jax.block_until_ready(out)
    assert out.shape == (B, N, HIDDEN)
    print("KERNEL_OK")
</pallas_src>

<mosaic_0001>
module attributes {stable_mosaic.version = 11 : i64} {
  func.func @encoder_layer_kernel(%arg0: memref<16x32xf32, #tpu.memory_space<vmem>>, %arg1: memref<3x2x8x8xf32, #tpu.memory_space<vmem>>, %arg2: memref<2x2x2x8xf32, #tpu.memory_space<vmem>>, %arg3: memref<2x2x8x8xf32, #tpu.memory_space<vmem>>, %arg4: memref<2x2xf32, #tpu.memory_space<vmem>>, %arg5: memref<2x2x8xf32, #tpu.memory_space<vmem>>, %arg6: memref<2x2x8x8xf32, #tpu.memory_space<vmem>>, %arg7: memref<4x32xf32, #tpu.memory_space<vmem>>, %arg8: memref<33x192xf32, #tpu.memory_space<vmem>>, %arg9: memref<2x33x32xf32, #tpu.memory_space<vmem>>, %arg10: memref<2x33x32xf32, #tpu.memory_space<vmem>>, %arg11: memref<1x65xf32, #tpu.memory_space<vmem>>, %arg12: memref<1x33xf32, #tpu.memory_space<vmem>>, %arg13: memref<65x32xf32, #tpu.memory_space<vmem>>, %arg14: memref<33x64xf32, #tpu.memory_space<vmem>>, %arg15: memref<65x32xf32, #tpu.memory_space<vmem>>, %arg16: memref<16x32xf32, #tpu.memory_space<vmem>>) attributes {dimension_semantics = [], scalar_prefetch = 0 : i64, scratch_operands = 0 : i64, tpu.core_type = #tpu.core_type<tc>} {
    %c0 = arith.constant 0 : index
    %c0_0 = arith.constant 0 : index
    %0 = vector.load %arg0[%c0, %c0_0] : memref<16x32xf32, #tpu.memory_space<vmem>>, vector<16x32xf32>
    %c0_1 = arith.constant 0 : index
    %c0_2 = arith.constant 0 : index
    %c0_3 = arith.constant 0 : index
    %c0_4 = arith.constant 0 : index
    %1 = vector.load %arg1[%c0_1, %c0_2, %c0_3, %c0_4] : memref<3x2x8x8xf32, #tpu.memory_space<vmem>>, vector<3x2x8x8xf32>
    %c0_5 = arith.constant 0 : index
    %c0_6 = arith.constant 0 : index
    %c0_7 = arith.constant 0 : index
    %c0_8 = arith.constant 0 : index
    %2 = vector.load %arg2[%c0_5, %c0_6, %c0_7, %c0_8] : memref<2x2x2x8xf32, #tpu.memory_space<vmem>>, vector<2x2x2x8xf32>
    %c0_9 = arith.constant 0 : index
    %c0_10 = arith.constant 0 : index
    %c0_11 = arith.constant 0 : index
    %c0_12 = arith.constant 0 : index
    %3 = vector.load %arg3[%c0_9, %c0_10, %c0_11, %c0_12] : memref<2x2x8x8xf32, #tpu.memory_space<vmem>>, vector<2x2x8x8xf32>
    %c0_13 = arith.constant 0 : index
    %c0_14 = arith.constant 0 : index
    %4 = vector.load %arg4[%c0_13, %c0_14] : memref<2x2xf32, #tpu.memory_space<vmem>>, vector<2x2xf32>
    %c0_15 = arith.constant 0 : index
    %c0_16 = arith.constant 0 : index
    %c0_17 = arith.constant 0 : index
    %5 = vector.load %arg5[%c0_15, %c0_16, %c0_17] : memref<2x2x8xf32, #tpu.memory_space<vmem>>, vector<2x2x8xf32>
    %c0_18 = arith.constant 0 : index
    %c0_19 = arith.constant 0 : index
    %c0_20 = arith.constant 0 : index
    %c0_21 = arith.constant 0 : index
    %6 = vector.load %arg6[%c0_18, %c0_19, %c0_20, %c0_21] : memref<2x2x8x8xf32, #tpu.memory_space<vmem>>, vector<2x2x8x8xf32>
    %c0_22 = arith.constant 0 : index
    %c0_23 = arith.constant 0 : index
    %7 = vector.load %arg7[%c0_22, %c0_23] : memref<4x32xf32, #tpu.memory_space<vmem>>, vector<4x32xf32>
    %c0_24 = arith.constant 0 : index
    %c0_25 = arith.constant 0 : index
    %8 = vector.load %arg8[%c0_24, %c0_25] : memref<33x192xf32, #tpu.memory_space<vmem>>, vector<33x192xf32>
    %c0_26 = arith.constant 0 : index
    %c0_27 = arith.constant 0 : index
    %c0_28 = arith.constant 0 : index
    %9 = vector.load %arg9[%c0_26, %c0_27, %c0_28] : memref<2x33x32xf32, #tpu.memory_space<vmem>>, vector<2x33x32xf32>
    %c0_29 = arith.constant 0 : index
    %c0_30 = arith.constant 0 : index
    %c0_31 = arith.constant 0 : index
    %10 = vector.load %arg10[%c0_29, %c0_30, %c0_31] : memref<2x33x32xf32, #tpu.memory_space<vmem>>, vector<2x33x32xf32>
    %c0_32 = arith.constant 0 : index
    %c0_33 = arith.constant 0 : index
    %11 = vector.load %arg11[%c0_32, %c0_33] : memref<1x65xf32, #tpu.memory_space<vmem>>, vector<1x65xf32>
    %c0_34 = arith.constant 0 : index
    %c0_35 = arith.constant 0 : index
    %12 = vector.load %arg12[%c0_34, %c0_35] : memref<1x33xf32, #tpu.memory_space<vmem>>, vector<1x33xf32>
    %c0_36 = arith.constant 0 : index
    %c0_37 = arith.constant 0 : index
    %13 = vector.load %arg13[%c0_36, %c0_37] : memref<65x32xf32, #tpu.memory_space<vmem>>, vector<65x32xf32>
    %c0_38 = arith.constant 0 : index
    %c0_39 = arith.constant 0 : index
    %14 = vector.load %arg14[%c0_38, %c0_39] : memref<33x64xf32, #tpu.memory_space<vmem>>, vector<33x64xf32>
    %c0_40 = arith.constant 0 : index
    %c0_41 = arith.constant 0 : index
    %15 = vector.load %arg15[%c0_40, %c0_41] : memref<65x32xf32, #tpu.memory_space<vmem>>, vector<65x32xf32>
    %16 = vector.extract_strided_slice %7 {offsets = [0, 0], sizes = [1, 32], strides = [1, 1]} : vector<4x32xf32> to vector<1x32xf32>
    %17 = vector.extract_strided_slice %7 {offsets = [1, 0], sizes = [1, 32], strides = [1, 1]} : vector<4x32xf32> to vector<1x32xf32>
    %cst = arith.constant dense<0.000000e+00> : vector<16xf32>
    %18 = vector.multi_reduction <add>, %0, %cst [1] : vector<16x32xf32> to vector<16xf32>
    %19 = vector.shape_cast %18 : vector<16xf32> to vector<16x1xf32>
    %cst_42 = arith.constant 3.200000e+01 : f32
    %20 = vector.broadcast %cst_42 : f32 to vector<16x1xf32>
    %21 = arith.divf %19, %20 : vector<16x1xf32>
    %22 = vector.broadcast %21 : vector<16x1xf32> to vector<16x32xf32>
    %23 = arith.subf %0, %22 : vector<16x32xf32>
    %24 = arith.mulf %23, %23 : vector<16x32xf32>
    %cst_43 = arith.constant dense<0.000000e+00> : vector<16xf32>
    %25 = vector.multi_reduction <add>, %24, %cst_43 [1] : vector<16x32xf32> to vector<16xf32>
    %26 = vector.shape_cast %25 : vector<16xf32> to vector<16x1xf32>
    %cst_44 = arith.constant 3.200000e+01 : f32
    %27 = vector.broadcast %cst_44 : f32 to vector<16x1xf32>
    %28 = arith.divf %26, %27 : vector<16x1xf32>
    %29 = vector.broadcast %21 : vector<16x1xf32> to vector<16x32xf32>
    %30 = arith.subf %0, %29 : vector<16x32xf32>
    %cst_45 = arith.constant 9.99999974E-6 : f32
    %31 = vector.broadcast %cst_45 : f32 to vector<16x1xf32>
    %32 = arith.addf %28, %31 : vector<16x1xf32>
    %33 = math.rsqrt %32 : vector<16x1xf32>
    %34 = vector.broadcast %33 : vector<16x1xf32> to vector<16x32xf32>
    %35 = arith.mulf %30, %34 : vector<16x32xf32>
    %36 = vector.broadcast %16 : vector<1x32xf32> to vector<16x32xf32>
    %37 = arith.mulf %35, %36 : vector<16x32xf32>
    %38 = vector.broadcast %17 : vector<1x32xf32> to vector<16x32xf32>
    %39 = arith.addf %37, %38 : vector<16x32xf32>
    %40 = vector.extract_strided_slice %8 {offsets = [0, 0], sizes = [32, 192], strides = [1, 1]} : vector<33x192xf32> to vector<32x192xf32>
    %cst_46 = arith.constant dense<0.000000e+00> : vector<16x192xf32>
    %41 = tpu.matmul %39, %40, %cst_46 {dimension_numbers = #tpu.dot_dimension_numbers<[1], [0], [0], [1], [0, 0, 1, 1], [], []>} : vector<16x32xf32>, vector<32x192xf32>, vector<16x192xf32> -> vector<16x192xf32>
    %42 = vector.extract_strided_slice %8 {offsets = [32, 0], sizes = [1, 192], strides = [1, 1]} : vector<33x192xf32> to vector<1x192xf32>
    %43 = vector.broadcast %42 : vector<1x192xf32> to vector<16x192xf32>
    %44 = arith.addf %41, %43 : vector<16x192xf32>
    %45 = vector.extract_strided_slice %39 {offsets = [0, 0], sizes = [8, 32], strides = [1, 1]} : vector<16x32xf32> to vector<8x32xf32>
    %46 = vector.extract_strided_slice %2 {offsets = [0, 0, 0, 0], sizes = [1, 1, 2, 8], strides = [1, 1, 1, 1]} : vector<2x2x2x8xf32> to vector<1x1x2x8xf32>
    %47 = vector.shape_cast %46 : vector<1x1x2x8xf32> to vector<2x8xf32>
    %cst_47 = arith.constant dense<0.000000e+00> : vector<2x32xf32>
    %48 = tpu.matmul %47, %45, %cst_47 {dimension_numbers = #tpu.dot_dimension_numbers<[1], [0], [0], [1], [0, 0, 1, 1], [], []>} : vector<2x8xf32>, vector<8x32xf32>, vector<2x32xf32> -> vector<2x32xf32>
    %49 = vector.extract_strided_slice %2 {offsets = [1, 0, 0, 0], sizes = [1, 1, 2, 8], strides = [1, 1, 1, 1]} : vector<2x2x2x8xf32> to vector<1x1x2x8xf32>
    %50 = vector.shape_cast %49 : vector<1x1x2x8xf32> to vector<2x8xf32>
    %cst_48 = arith.constant dense<0.000000e+00> : vector<2x32xf32>
    %51 = tpu.matmul %50, %45, %cst_48 {dimension_numbers = #tpu.dot_dimension_numbers<[1], [0], [0], [1], [0, 0, 1, 1], [], []>} : vector<2x8xf32>, vector<8x32xf32>, vector<2x32xf32> -> vector<2x32xf32>
    %52 = vector.extract_strided_slice %10 {offsets = [0, 0, 0], sizes = [1, 32, 32], strides = [1, 1, 1]} : vector<2x33x32xf32> to vector<1x32x32xf32>
    %53 = vector.shape_cast %52 : vector<1x32x32xf32> to vector<32x32xf32>
    %cst_49 = arith.constant dense<0.000000e+00> : vector<2x32xf32>
    %54 = tpu.matmul %48, %53, %cst_49 {dimension_numbers = #tpu.dot_dimension_numbers<[1], [0], [0], [1], [0, 0, 1, 1], [], []>} : vector<2x32xf32>, vector<32x32xf32>, vector<2x32xf32> -> vector<2x32xf32>
    %55 = vector.extract_strided_slice %10 {offsets = [0, 32, 0], sizes = [1, 1, 32], strides = [1, 1, 1]} : vector<2x33x32xf32> to vector<1x1x32xf32>
    %56 = vector.shape_cast %55 : vector<1x1x32xf32> to vector<1x32xf32>
    %57 = vector.broadcast %56 : vector<1x32xf32> to vector<2x32xf32>
    %58 = arith.addf %54, %57 : vector<2x32xf32>
    %59 = vector.extract_strided_slice %10 {offsets = [1, 0, 0], sizes = [1, 32, 32], strides = [1, 1, 1]} : vector<2x33x32xf32> to vector<1x32x32xf32>
    %60 = vector.shape_cast %59 : vector<1x32x32xf32> to vector<32x32xf32>
    %cst_50 = arith.constant dense<0.000000e+00> : vector<2x32xf32>
    %61 = tpu.matmul %51, %60, %cst_50 {dimension_numbers = #tpu.dot_dimension_numbers<[1], [0], [0], [1], [0, 0, 1, 1], [], []>} : vector<2x32xf32>, vector<32x32xf32>, vector<2x32xf32> -> vector<2x32xf32>
    %62 = vector.extract_strided_slice %10 {offsets = [1, 32, 0], sizes = [1, 1, 32], strides = [1, 1, 1]} : vector<2x33x32xf32> to vector<1x1x32xf32>
    %63 = vector.shape_cast %62 : vector<1x1x32xf32> to vector<1x32xf32>
    %64 = vector.broadcast %63 : vector<1x32xf32> to vector<2x32xf32>
    %65 = arith.addf %61, %64 : vector<2x32xf32>
    %66 = tpu.concatenate %58, %65 in 1 : vector<2x32xf32>, vector<2x32xf32> -> vector<2x64xf32>
    %67 = math.tanh %66 : vector<2x64xf32>
    %68 = vector.extract_strided_slice %11 {offsets = [0, 0], sizes = [1, 64], strides = [1, 1]} : vector<1x65xf32> to vector<1x64xf32>
    %69 = vector.broadcast %68 : vector<1x64xf32> to vector<2x64xf32>
    %70 = arith.mulf %67, %69 : vector<2x64xf32>
    %cst_51 = arith.constant dense<0.000000e+00> : vector<2xf32>
    %71 = vector.multi_reduction <add>, %70, %cst_51 [1] : vector<2x64xf32> to vector<2xf32>
    %72 = vector.shape_cast %71 : vector<2xf32> to vector<2x1xf32>
    %73 = vector.extract_strided_slice %11 {offsets = [0, 64], sizes = [1, 1], strides = [1, 1]} : vector<1x65xf32> to vector<1x1xf32>
    %74 = vector.broadcast %73 : vector<1x1xf32> to vector<2x1xf32>
    %75 = arith.addf %72, %74 : vector<2x1xf32>
    %cst_52 = arith.constant 0.000000e+00 : f32
    %76 = vector.broadcast %cst_52 : f32 to vector<2x1xf32>
    %77 = arith.cmpf oge, %75, %76 : vector<2x1xf32>
    %cst_53 = arith.constant 2.000000e-02 : f32
    %78 = vector.broadcast %cst_53 : f32 to vector<2x1xf32>
    %79 = arith.mulf %78, %75 : vector<2x1xf32>
    %80 = arith.select %77, %75, %79 : vector<2x1xi1>, vector<2x1xf32>
    %81 = vector.extract_strided_slice %5 {offsets = [0, 0, 0], sizes = [1, 2, 8], strides = [1, 1, 1]} : vector<2x2x8xf32> to vector<1x2x8xf32>
    %82 = vector.shape_cast %81 : vector<1x2x8xf32> to vector<2x8xf32>
    %cst_54 = arith.constant dense<0.000000e+00> : vector<2x32xf32>
    %83 = tpu.matmul %82, %45, %cst_54 {dimension_numbers = #tpu.dot_dimension_numbers<[1], [0], [0], [1], [0, 0, 1, 1], [], []>} : vector<2x8xf32>, vector<8x32xf32>, vector<2x32xf32> -> vector<2x32xf32>
    %84 = vector.extract_strided_slice %12 {offsets = [0, 0], sizes = [1, 32], strides = [1, 1]} : vector<1x33xf32> to vector<1x32xf32>
    %85 = vector.broadcast %84 : vector<1x32xf32> to vector<2x32xf32>
    %86 = arith.mulf %83, %85 : vector<2x32xf32>
    %cst_55 = arith.constant dense<0.000000e+00> : vector<2xf32>
    %87 = vector.multi_reduction <add>, %86, %cst_55 [1] : vector<2x32xf32> to vector<2xf32>
    %88 = vector.shape_cast %87 : vector<2xf32> to vector<2x1xf32>
    %89 = vector.extract_strided_slice %12 {offsets = [0, 32], sizes = [1, 1], strides = [1, 1]} : vector<1x33xf32> to vector<1x1xf32>
    %90 = vector.broadcast %89 : vector<1x1xf32> to vector<2x1xf32>
    %91 = arith.addf %88, %90 : vector<2x1xf32>
    %cst_56 = arith.constant 0.000000e+00 : f32
    %92 = vector.broadcast %cst_56 : f32 to vector<2x1xf32>
    %93 = arith.cmpf oge, %91, %92 : vector<2x1xf32>
    %cst_57 = arith.constant 2.000000e-02 : f32
    %94 = vector.broadcast %cst_57 : f32 to vector<2x1xf32>
    %95 = arith.mulf %94, %91 : vector<2x1xf32>
    %96 = arith.select %93, %91, %95 : vector<2x1xi1>, vector<2x1xf32>
    %cst_58 = arith.constant 0.000000e+00 : f32
    %97 = vector.broadcast %cst_58 : f32 to vector<8x8xf32>
    %cst_59 = arith.constant 0.000000e+00 : f32
    %98 = vector.broadcast %cst_59 : f32 to vector<8x8xf32>
    %99 = vector.extract_strided_slice %3 {offsets = [0, 0, 0, 0], sizes = [1, 1, 8, 8], strides = [1, 1, 1, 1]} : vector<2x2x8x8xf32> to vector<1x1x8x8xf32>
    %100 = vector.shape_cast %99 : vector<1x1x8x8xf32> to vector<8x8xf32>
    %101 = arith.addf %97, %100 : vector<8x8xf32>
    %102 = vector.extract_strided_slice %80 {offsets = [0, 0], sizes = [1, 1], strides = [1, 1]} : vector<2x1xf32> to vector<1x1xf32>
    %103 = vector.broadcast %102 : vector<1x1xf32> to vector<8x8xf32>
    %104 = arith.mulf %103, %100 : vector<8x8xf32>
    %105 = arith.addf %98, %104 : vector<8x8xf32>
    %106 = vector.extract_strided_slice %3 {offsets = [0, 1, 0, 0], sizes = [1, 1, 8, 8], strides = [1, 1, 1, 1]} : vector<2x2x8x8xf32> to vector<1x1x8x8xf32>
    %107 = vector.shape_cast %106 : vector<1x1x8x8xf32> to vector<8x8xf32>
    %108 = arith.addf %101, %107 : vector<8x8xf32>
    %109 = vector.extract_strided_slice %80 {offsets = [1, 0], sizes = [1, 1], strides = [1, 1]} : vector<2x1xf32> to vector<1x1xf32>
    %110 = vector.broadcast %109 : vector<1x1xf32> to vector<8x8xf32>
    %111 = arith.mulf %110, %107 : vector<8x8xf32>
    %112 = arith.addf %105, %111 : vector<8x8xf32>
    %113 = vector.extract_strided_slice %1 {offsets = [1, 0, 0, 0], sizes = [1, 1, 8, 8], strides = [1, 1, 1, 1]} : vector<3x2x8x8xf32> to vector<1x1x8x8xf32>
    %114 = vector.shape_cast %113 : vector<1x1x8x8xf32> to vector<8x8xf32>
    %cst_60 = arith.constant 1.000000e+00 : f32
    %115 = vector.broadcast %cst_60 : f32 to vector<8x8xf32>
    %116 = arith.subf %115, %108 : vector<8x8xf32>
    %117 = arith.mulf %114, %116 : vector<8x8xf32>
    %118 = arith.addf %117, %112 : vector<8x8xf32>
    %cst_61 = arith.constant 0.000000e+00 : f32
    %119 = vector.broadcast %cst_61 : f32 to vector<8x8xf32>
    %cst_62 = arith.constant 0.000000e+00 : f32
    %120 = vector.broadcast %cst_62 : f32 to vector<8x8xf32>
    %121 = vector.extract_strided_slice %6 {offsets = [0, 0, 0, 0], sizes = [1, 1, 8, 8], strides = [1, 1, 1, 1]} : vector<2x2x8x8xf32> to vector<1x1x8x8xf32>
    %122 = vector.shape_cast %121 : vector<1x1x8x8xf32> to vector<8x8xf32>
    %123 = arith.addf %119, %122 : vector<8x8xf32>
    %124 = vector.extract_strided_slice %96 {offsets = [0, 0], sizes = [1, 1], strides = [1, 1]} : vector<2x1xf32> to vector<1x1xf32>
    %125 = vector.broadcast %124 : vector<1x1xf32> to vector<8x8xf32>
    %126 = arith.mulf %125, %122 : vector<8x8xf32>
    %127 = arith.addf %120, %126 : vector<8x8xf32>
    %128 = vector.extract_strided_slice %6 {offsets = [0, 1, 0, 0], sizes = [1, 1, 8, 8], strides = [1, 1, 1, 1]} : vector<2x2x8x8xf32> to vector<1x1x8x8xf32>
    %129 = vector.shape_cast %128 : vector<1x1x8x8xf32> to vector<8x8xf32>
    %130 = arith.addf %123, %129 : vector<8x8xf32>
    %131 = vector.extract_strided_slice %96 {offsets = [1, 0], sizes = [1, 1], strides = [1, 1]} : vector<2x1xf32> to vector<1x1xf32>
    %132 = vector.broadcast %131 : vector<1x1xf32> to vector<8x8xf32>
    %133 = arith.mulf %132, %129 : vector<8x8xf32>
    %134 = arith.addf %127, %133 : vector<8x8xf32>
    %135 = vector.extract_strided_slice %1 {offsets = [2, 0, 0, 0], sizes = [1, 1, 8, 8], strides = [1, 1, 1, 1]} : vector<3x2x8x8xf32> to vector<1x1x8x8xf32>
    %136 = vector.shape_cast %135 : vector<1x1x8x8xf32> to vector<8x8xf32>
    %cst_63 = arith.constant 1.000000e+00 : f32
    %137 = vector.broadcast %cst_63 : f32 to vector<8x8xf32>
    %138 = arith.subf %137, %130 : vector<8x8xf32>
    %139 = arith.mulf %136, %138 : vector<8x8xf32>
    %140 = arith.addf %139, %134 : vector<8x8xf32>
    %cst_64 = arith.constant dense<0.000000e+00> : vector<8x8xf32>
    %141 = tpu.matmul %118, %118, %cst_64 {dimension_numbers = #tpu.dot_dimension_numbers<[1], [0], [0], [1], [0, 0, 1, 1], [], []>} : vector<8x8xf32>, vector<8x8xf32>, vector<8x8xf32> -> vector<8x8xf32>
    %cst_65 = arith.constant dense<0.000000e+00> : vector<8x8xf32>
    %142 = tpu.matmul %140, %140, %cst_65 {dimension_numbers = #tpu.dot_dimension_numbers<[1], [0], [0], [1], [0, 0, 1, 1], [], []>} : vector<8x8xf32>, vector<8x8xf32>, vector<8x8xf32> -> vector<8x8xf32>
    %cst_66 = arith.constant 2.000000e-01 : f32
    %143 = vector.broadcast %cst_66 : f32 to vector<8x8xf32>
    %144 = arith.mulf %143, %118 : vector<8x8xf32>
    %cst_67 = arith.constant 8.000000e-01 : f32
    %145 = vector.broadcast %cst_67 : f32 to vector<8x8xf32>
    %146 = arith.mulf %145, %141 : vector<8x8xf32>
    %147 = arith.addf %144, %146 : vector<8x8xf32>
    %148 = arith.addf %147, %142 : vector<8x8xf32>
    %149 = vector.extract_strided_slice %39 {offsets = [8, 0], sizes = [8, 32], strides = [1, 1]} : vector<16x32xf32> to vector<8x32xf32>
    %150 = vector.extract_strided_slice %2 {offsets = [0, 1, 0, 0], sizes = [1, 1, 2, 8], strides = [1, 1, 1, 1]} : vector<2x2x2x8xf32> to vector<1x1x2x8xf32>
    %151 = vector.shape_cast %150 : vector<1x1x2x8xf32> to vector<2x8xf32>
    %cst_68 = arith.constant dense<0.000000e+00> : vector<2x32xf32>
    %152 = tpu.matmul %151, %149, %cst_68 {dimension_numbers = #tpu.dot_dimension_numbers<[1], [0], [0], [1], [0, 0, 1, 1], [], []>} : vector<2x8xf32>, vector<8x32xf32>, vector<2x32xf32> -> vector<2x32xf32>
    %153 = vector.extract_strided_slice %2 {offsets = [1, 1, 0, 0], sizes = [1, 1, 2, 8], strides = [1, 1, 1, 1]} : vector<2x2x2x8xf32> to vector<1x1x2x8xf32>
    %154 = vector.shape_cast %153 : vector<1x1x2x8xf32> to vector<2x8xf32>
    %cst_69 = arith.constant dense<0.000000e+00> : vector<2x32xf32>
    %155 = tpu.matmul %154, %149, %cst_69 {dimension_numbers = #tpu.dot_dimension_numbers<[1], [0], [0], [1], [0, 0, 1, 1], [], []>} : vector<2x8xf32>, vector<8x32xf32>, vector<2x32xf32> -> vector<2x32xf32>
    %156 = vector.extract_strided_slice %10 {offsets = [0, 0, 0], sizes = [1, 32, 32], strides = [1, 1, 1]} : vector<2x33x32xf32> to vector<1x32x32xf32>
    %157 = vector.shape_cast %156 : vector<1x32x32xf32> to vector<32x32xf32>
    %cst_70 = arith.constant dense<0.000000e+00> : vector<2x32xf32>
    %158 = tpu.matmul %152, %157, %cst_70 {dimension_numbers = #tpu.dot_dimension_numbers<[1], [0], [0], [1], [0, 0, 1, 1], [], []>} : vector<2x32xf32>, vector<32x32xf32>, vector<2x32xf32> -> vector<2x32xf32>
    %159 = vector.extract_strided_slice %10 {offsets = [0, 32, 0], sizes = [1, 1, 32], strides = [1, 1, 1]} : vector<2x33x32xf32> to vector<1x1x32xf32>
    %160 = vector.shape_cast %159 : vector<1x1x32xf32> to vector<1x32xf32>
    %161 = vector.broadcast %160 : vector<1x32xf32> to vector<2x32xf32>
    %162 = arith.addf %158, %161 : vector<2x32xf32>
    %163 = vector.extract_strided_slice %10 {offsets = [1, 0, 0], sizes = [1, 32, 32], strides = [1, 1, 1]} : vector<2x33x32xf32> to vector<1x32x32xf32>
    %164 = vector.shape_cast %163 : vector<1x32x32xf32> to vector<32x32xf32>
    %cst_71 = arith.constant dense<0.000000e+00> : vector<2x32xf32>
    %165 = tpu.matmul %155, %164, %cst_71 {dimension_numbers = #tpu.dot_dimension_numbers<[1], [0], [0], [1], [0, 0, 1, 1], [], []>} : vector<2x32xf32>, vector<32x32xf32>, vector<2x32xf32> -> vector<2x32xf32>
    %166 = vector.extract_strided_slice %10 {offsets = [1, 32, 0], sizes = [1, 1, 32], strides = [1, 1, 1]} : vector<2x33x32xf32> to vector<1x1x32xf32>
    %167 = vector.shape_cast %166 : vector<1x1x32xf32> to vector<1x32xf32>
    %168 = vector.broadcast %167 : vector<1x32xf32> to vector<2x32xf32>
    %169 = arith.addf %165, %168 : vector<2x32xf32>
    %170 = tpu.concatenate %162, %169 in 1 : vector<2x32xf32>, vector<2x32xf32> -> vector<2x64xf32>
    %171 = math.tanh %170 : vector<2x64xf32>
    %172 = vector.extract_strided_slice %11 {offsets = [0, 0], sizes = [1, 64], strides = [1, 1]} : vector<1x65xf32> to vector<1x64xf32>
    %173 = vector.broadcast %172 : vector<1x64xf32> to vector<2x64xf32>
    %174 = arith.mulf %171, %173 : vector<2x64xf32>
    %cst_72 = arith.constant dense<0.000000e+00> : vector<2xf32>
    %175 = vector.multi_reduction <add>, %174, %cst_72 [1] : vector<2x64xf32> to vector<2xf32>
    %176 = vector.shape_cast %175 : vector<2xf32> to vector<2x1xf32>
    %177 = vector.extract_strided_slice %11 {offsets = [0, 64], sizes = [1, 1], strides = [1, 1]} : vector<1x65xf32> to vector<1x1xf32>
    %178 = vector.broadcast %177 : vector<1x1xf32> to vector<2x1xf32>
    %179 = arith.addf %176, %178 : vector<2x1xf32>
    %cst_73 = arith.constant 0.000000e+00 : f32
    %180 = vector.broadcast %cst_73 : f32 to vector<2x1xf32>
    %181 = arith.cmpf oge, %179, %180 : vector<2x1xf32>
    %cst_74 = arith.constant 2.000000e-02 : f32
    %182 = vector.broadcast %cst_74 : f32 to vector<2x1xf32>
    %183 = arith.mulf %182, %179 : vector<2x1xf32>
    %184 = arith.select %181, %179, %183 : vector<2x1xi1>, vector<2x1xf32>
    %185 = vector.extract_strided_slice %5 {offsets = [1, 0, 0], sizes = [1, 2, 8], strides = [1, 1, 1]} : vector<2x2x8xf32> to vector<1x2x8xf32>
    %186 = vector.shape_cast %185 : vector<1x2x8xf32> to vector<2x8xf32>
    %cst_75 = arith.constant dense<0.000000e+00> : vector<2x32xf32>
    %187 = tpu.matmul %186, %149, %cst_75 {dimension_numbers = #tpu.dot_dimension_numbers<[1], [0], [0], [1], [0, 0, 1, 1], [], []>} : vector<2x8xf32>, vector<8x32xf32>, vector<2x32xf32> -> vector<2x32xf32>
    %188 = vector.extract_strided_slice %12 {offsets = [0, 0], sizes = [1, 32], strides = [1, 1]} : vector<1x33xf32> to vector<1x32xf32>
    %189 = vector.broadcast %188 : vector<1x32xf32> to vector<2x32xf32>
    %190 = arith.mulf %187, %189 : vector<2x32xf32>
    %cst_76 = arith.constant dense<0.000000e+00> : vector<2xf32>
    %191 = vector.multi_reduction <add>, %190, %cst_76 [1] : vector<2x32xf32> to vector<2xf32>
    %192 = vector.shape_cast %191 : vector<2xf32> to vector<2x1xf32>
    %193 = vector.extract_strided_slice %12 {offsets = [0, 32], sizes = [1, 1], strides = [1, 1]} : vector<1x33xf32> to vector<1x1xf32>
    %194 = vector.broadcast %193 : vector<1x1xf32> to vector<2x1xf32>
    %195 = arith.addf %192, %194 : vector<2x1xf32>
    %cst_77 = arith.constant 0.000000e+00 : f32
    %196 = vector.broadcast %cst_77 : f32 to vector<2x1xf32>
    %197 = arith.cmpf oge, %195, %196 : vector<2x1xf32>
    %cst_78 = arith.constant 2.000000e-02 : f32
    %198 = vector.broadcast %cst_78 : f32 to vector<2x1xf32>
    %199 = arith.mulf %198, %195 : vector<2x1xf32>
    %200 = arith.select %197, %195, %199 : vector<2x1xi1>, vector<2x1xf32>
    %cst_79 = arith.constant 0.000000e+00 : f32
    %201 = vector.broadcast %cst_79 : f32 to vector<8x8xf32>
    %cst_80 = arith.constant 0.000000e+00 : f32
    %202 = vector.broadcast %cst_80 : f32 to vector<8x8xf32>
    %203 = vector.extract_strided_slice %3 {offsets = [1, 0, 0, 0], sizes = [1, 1, 8, 8], strides = [1, 1, 1, 1]} : vector<2x2x8x8xf32> to vector<1x1x8x8xf32>
    %204 = vector.shape_cast %203 : vector<1x1x8x8xf32> to vector<8x8xf32>
    %205 = arith.addf %201, %204 : vector<8x8xf32>
    %206 = vector.extract_strided_slice %184 {offsets = [0, 0], sizes = [1, 1], strides = [1, 1]} : vector<2x1xf32> to vector<1x1xf32>
    %207 = vector.broadcast %206 : vector<1x1xf32> to vector<8x8xf32>
    %208 = arith.mulf %207, %204 : vector<8x8xf32>
    %209 = arith.addf %202, %208 : vector<8x8xf32>
    %210 = vector.extract_strided_slice %3 {offsets = [1, 1, 0, 0], sizes = [1, 1, 8, 8], strides = [1, 1, 1, 1]} : vector<2x2x8x8xf32> to vector<1x1x8x8xf32>
    %211 = vector.shape_cast %210 : vector<1x1x8x8xf32> to vector<8x8xf32>
    %212 = arith.addf %205, %211 : vector<8x8xf32>
    %213 = vector.extract_strided_slice %184 {offsets = [1, 0], sizes = [1, 1], strides = [1, 1]} : vector<2x1xf32> to vector<1x1xf32>
    %214 = vector.broadcast %213 : vector<1x1xf32> to vector<8x8xf32>
    %215 = arith.mulf %214, %211 : vector<8x8xf32>
    %216 = arith.addf %209, %215 : vector<8x8xf32>
    %217 = vector.extract_strided_slice %1 {offsets = [1, 1, 0, 0], sizes = [1, 1, 8, 8], strides = [1, 1, 1, 1]} : vector<3x2x8x8xf32> to vector<1x1x8x8xf32>
    %218 = vector.shape_cast %217 : vector<1x1x8x8xf32> to vector<8x8xf32>
    %cst_81 = arith.constant 1.000000e+00 : f32
    %219 = vector.broadcast %cst_81 : f32 to vector<8x8xf32>
    %220 = arith.subf %219, %212 : vector<8x8xf32>
    %221 = arith.mulf %218, %220 : vector<8x8xf32>
    %222 = arith.addf %221, %216 : vector<8x8xf32>
    %cst_82 = arith.constant 0.000000e+00 : f32
    %223 = vector.broadcast %cst_82 : f32 to vector<8x8xf32>
    %cst_83 = arith.constant 0.000000e+00 : f32
    %224 = vector.broadcast %cst_83 : f32 to vector<8x8xf32>
    %225 = vector.extract_strided_slice %6 {offsets = [1, 0, 0, 0], sizes = [1, 1, 8, 8], strides = [1, 1, 1, 1]} : vector<2x2x8x8xf32> to vector<1x1x8x8xf32>
    %226 = vector.shape_cast %225 : vector<1x1x8x8xf32> to vector<8x8xf32>
    %227 = arith.addf %223, %226 : vector<8x8xf32>
    %228 = vector.extract_strided_slice %200 {offsets = [0, 0], sizes = [1, 1], strides = [1, 1]} : vector<2x1xf32> to vector<1x1xf32>
    %229 = vector.broadcast %228 : vector<1x1xf32> to vector<8x8xf32>
    %230 = arith.mulf %229, %226 : vector<8x8xf32>
    %231 = arith.addf %224, %230 : vector<8x8xf32>
    %232 = vector.extract_strided_slice %6 {offsets = [1, 1, 0, 0], sizes = [1, 1, 8, 8], strides = [1, 1, 1, 1]} : vector<2x2x8x8xf32> to vector<1x1x8x8xf32>
    %233 = vector.shape_cast %232 : vector<1x1x8x8xf32> to vector<8x8xf32>
    %234 = arith.addf %227, %233 : vector<8x8xf32>
    %235 = vector.extract_strided_slice %200 {offsets = [1, 0], sizes = [1, 1], strides = [1, 1]} : vector<2x1xf32> to vector<1x1xf32>
    %236 = vector.broadcast %235 : vector<1x1xf32> to vector<8x8xf32>
    %237 = arith.mulf %236, %233 : vector<8x8xf32>
    %238 = arith.addf %231, %237 : vector<8x8xf32>
    %239 = vector.extract_strided_slice %1 {offsets = [2, 1, 0, 0], sizes = [1, 1, 8, 8], strides = [1, 1, 1, 1]} : vector<3x2x8x8xf32> to vector<1x1x8x8xf32>
    %240 = vector.shape_cast %239 : vector<1x1x8x8xf32> to vector<8x8xf32>
    %cst_84 = arith.constant 1.000000e+00 : f32
    %241 = vector.broadcast %cst_84 : f32 to vector<8x8xf32>
    %242 = arith.subf %241, %234 : vector<8x8xf32>
    %243 = arith.mulf %240, %242 : vector<8x8xf32>
    %244 = arith.addf %243, %238 : vector<8x8xf32>
    %cst_85 = arith.constant dense<0.000000e+00> : vector<8x8xf32>
    %245 = tpu.matmul %222, %222, %cst_85 {dimension_numbers = #tpu.dot_dimension_numbers<[1], [0], [0], [1], [0, 0, 1, 1], [], []>} : vector<8x8xf32>, vector<8x8xf32>, vector<8x8xf32> -> vector<8x8xf32>
    %cst_86 = arith.constant dense<0.000000e+00> : vector<8x8xf32>
    %246 = tpu.matmul %244, %244, %cst_86 {dimension_numbers = #tpu.dot_dimension_numbers<[1], [0], [0], [1], [0, 0, 1, 1], [], []>} : vector<8x8xf32>, vector<8x8xf32>, vector<8x8xf32> -> vector<8x8xf32>
    %cst_87 = arith.constant 2.000000e-01 : f32
    %247 = vector.broadcast %cst_87 : f32 to vector<8x8xf32>
    %248 = arith.mulf %247, %222 : vector<8x8xf32>
    %cst_88 = arith.constant 8.000000e-01 : f32
    %249 = vector.broadcast %cst_88 : f32 to vector<8x8xf32>
    %250 = arith.mulf %249, %245 : vector<8x8xf32>
    %251 = arith.addf %248, %250 : vector<8x8xf32>
    %252 = arith.addf %251, %246 : vector<8x8xf32>
    %253 = vector.extract_strided_slice %1 {offsets = [0, 0, 0, 0], sizes = [1, 1, 8, 8], strides = [1, 1, 1, 1]} : vector<3x2x8x8xf32> to vector<1x1x8x8xf32>
    %254 = vector.shape_cast %253 : vector<1x1x8x8xf32> to vector<8x8xf32>
    %255 = vector.extract_strided_slice %1 {offsets = [0, 1, 0, 0], sizes = [1, 1, 8, 8], strides = [1, 1, 1, 1]} : vector<3x2x8x8xf32> to vector<1x1x8x8xf32>
    %256 = vector.shape_cast %255 : vector<1x1x8x8xf32> to vector<8x8xf32>
    %257 = vector.extract_strided_slice %44 {offsets = [0, 0], sizes = [8, 32], strides = [1, 1]} : vector<16x192xf32> to vector<8x32xf32>
    %cst_89 = arith.constant 0.353553385 : f32
    %258 = vector.broadcast %cst_89 : f32 to vector<8x32xf32>
    %259 = arith.mulf %257, %258 : vector<8x32xf32>
    %260 = vector.extract_strided_slice %44 {offsets = [0, 32], sizes = [8, 32], strides = [1, 1]} : vector<16x192xf32> to vector<8x32xf32>
    %261 = vector.extract_strided_slice %259 {offsets = [0, 0], sizes = [8, 8], strides = [1, 1]} : vector<8x32xf32> to vector<8x8xf32>
    %262 = vector.extract_strided_slice %260 {offsets = [0, 0], sizes = [8, 8], strides = [1, 1]} : vector<8x32xf32> to vector<8x8xf32>
    %263 = tpu.transpose %262, [1, 0] : vector<8x8xf32> -> vector<8x8xf32>
    %cst_90 = arith.constant dense<0.000000e+00> : vector<8x8xf32>
    %264 = tpu.matmul %261, %263, %cst_90 {dimension_numbers = #tpu.dot_dimension_numbers<[1], [0], [0], [1], [0, 0, 1, 1], [], []>} : vector<8x8xf32>, vector<8x8xf32>, vector<8x8xf32> -> vector<8x8xf32>
    %265 = arith.addf %264, %254 : vector<8x8xf32>
    %266 = vector.extract_strided_slice %259 {offsets = [0, 8], sizes = [8, 8], strides = [1, 1]} : vector<8x32xf32> to vector<8x8xf32>
    %267 = vector.extract_strided_slice %260 {offsets = [0, 8], sizes = [8, 8], strides = [1, 1]} : vector<8x32xf32> to vector<8x8xf32>
    %268 = tpu.transpose %267, [1, 0] : vector<8x8xf32> -> vector<8x8xf32>
    %cst_91 = arith.constant dense<0.000000e+00> : vector<8x8xf32>
    %269 = tpu.matmul %266, %268, %cst_91 {dimension_numbers = #tpu.dot_dimension_numbers<[1], [0], [0], [1], [0, 0, 1, 1], [], []>} : vector<8x8xf32>, vector<8x8xf32>, vector<8x8xf32> -> vector<8x8xf32>
    %270 = arith.addf %269, %254 : vector<8x8xf32>
    %271 = vector.extract_strided_slice %259 {offsets = [0, 16], sizes = [8, 8], strides = [1, 1]} : vector<8x32xf32> to vector<8x8xf32>
    %272 = vector.extract_strided_slice %260 {offsets = [0, 16], sizes = [8, 8], strides = [1, 1]} : vector<8x32xf32> to vector<8x8xf32>
    %273 = tpu.transpose %272, [1, 0] : vector<8x8xf32> -> vector<8x8xf32>
    %cst_92 = arith.constant dense<0.000000e+00> : vector<8x8xf32>
    %274 = tpu.matmul %271, %273, %cst_92 {dimension_numbers = #tpu.dot_dimension_numbers<[1], [0], [0], [1], [0, 0, 1, 1], [], []>} : vector<8x8xf32>, vector<8x8xf32>, vector<8x8xf32> -> vector<8x8xf32>
    %275 = arith.addf %274, %254 : vector<8x8xf32>
    %276 = vector.extract_strided_slice %259 {offsets = [0, 24], sizes = [8, 8], strides = [1, 1]} : vector<8x32xf32> to vector<8x8xf32>
    %277 = vector.extract_strided_slice %260 {offsets = [0, 24], sizes = [8, 8], strides = [1, 1]} : vector<8x32xf32> to vector<8x8xf32>
    %278 = tpu.transpose %277, [1, 0] : vector<8x8xf32> -> vector<8x8xf32>
    %cst_93 = arith.constant dense<0.000000e+00> : vector<8x8xf32>
    %279 = tpu.matmul %276, %278, %cst_93 {dimension_numbers = #tpu.dot_dimension_numbers<[1], [0], [0], [1], [0, 0, 1, 1], [], []>} : vector<8x8xf32>, vector<8x8xf32>, vector<8x8xf32> -> vector<8x8xf32>
    %280 = arith.addf %279, %254 : vector<8x8xf32>
    %281 = vector.extract_strided_slice %44 {offsets = [8, 0], sizes = [8, 32], strides = [1, 1]} : vector<16x192xf32> to vector<8x32xf32>
    %cst_94 = arith.constant 0.353553385 : f32
    %282 = vector.broadcast %cst_94 : f32 to vector<8x32xf32>
    %283 = arith.mulf %281, %282 : vector<8x32xf32>
    %284 = vector.extract_strided_slice %44 {offsets = [8, 32], sizes = [8, 32], strides = [1, 1]} : vector<16x192xf32> to vector<8x32xf32>
    %285 = vector.extract_strided_slice %283 {offsets = [0, 0], sizes = [8, 8], strides = [1, 1]} : vector<8x32xf32> to vector<8x8xf32>
    %286 = vector.extract_strided_slice %284 {offsets = [0, 0], sizes = [8, 8], strides = [1, 1]} : vector<8x32xf32> to vector<8x8xf32>
    %287 = tpu.transpose %286, [1, 0] : vector<8x8xf32> -> vector<8x8xf32>
    %cst_95 = arith.constant dense<0.000000e+00> : vector<8x8xf32>
    %288 = tpu.matmul %285, %287, %cst_95 {dimension_numbers = #tpu.dot_dimension_numbers<[1], [0], [0], [1], [0, 0, 1, 1], [], []>} : vector<8x8xf32>, vector<8x8xf32>, vector<8x8xf32> -> vector<8x8xf32>
    %289 = arith.addf %288, %256 : vector<8x8xf32>
    %290 = vector.extract_strided_slice %283 {offsets = [0, 8], sizes = [8, 8], strides = [1, 1]} : vector<8x32xf32> to vector<8x8xf32>
    %291 = vector.extract_strided_slice %284 {offsets = [0, 8], sizes = [8, 8], strides = [1, 1]} : vector<8x32xf32> to vector<8x8xf32>
    %292 = tpu.transpose %291, [1, 0] : vector<8x8xf32> -> vector<8x8xf32>
    %cst_96 = arith.constant dense<0.000000e+00> : vector<8x8xf32>
    %293 = tpu.matmul %290, %292, %cst_96 {dimension_numbers = #tpu.dot_dimension_numbers<[1], [0], [0], [1], [0, 0, 1, 1], [], []>} : vector<8x8xf32>, vector<8x8xf32>, vector<8x8xf32> -> vector<8x8xf32>
    %294 = arith.addf %293, %256 : vector<8x8xf32>
    %295 = vector.extract_strided_slice %283 {offsets = [0, 16], sizes = [8, 8], strides = [1, 1]} : vector<8x32xf32> to vector<8x8xf32>
    %296 = vector.extract_strided_slice %284 {offsets = [0, 16], sizes = [8, 8], strides = [1, 1]} : vector<8x32xf32> to vector<8x8xf32>
    %297 = tpu.transpose %296, [1, 0] : vector<8x8xf32> -> vector<8x8xf32>
    %cst_97 = arith.constant dense<0.000000e+00> : vector<8x8xf32>
    %298 = tpu.matmul %295, %297, %cst_97 {dimension_numbers = #tpu.dot_dimension_numbers<[1], [0], [0], [1], [0, 0, 1, 1], [], []>} : vector<8x8xf32>, vector<8x8xf32>, vector<8x8xf32> -> vector<8x8xf32>
    %299 = arith.addf %298, %256 : vector<8x8xf32>
    %300 = vector.extract_strided_slice %283 {offsets = [0, 24], sizes = [8, 8], strides = [1, 1]} : vector<8x32xf32> to vector<8x8xf32>
    %301 = vector.extract_strided_slice %284 {offsets = [0, 24], sizes = [8, 8], strides = [1, 1]} : vector<8x32xf32> to vector<8x8xf32>
    %302 = tpu.transpose %301, [1, 0] : vector<8x8xf32> -> vector<8x8xf32>
    %cst_98 = arith.constant dense<0.000000e+00> : vector<8x8xf32>
    %303 = tpu.matmul %300, %302, %cst_98 {dimension_numbers = #tpu.dot_dimension_numbers<[1], [0], [0], [1], [0, 0, 1, 1], [], []>} : vector<8x8xf32>, vector<8x8xf32>, vector<8x8xf32> -> vector<8x8xf32>
    %304 = arith.addf %303, %256 : vector<8x8xf32>
    %305 = vector.extract_strided_slice %44 {offsets = [0, 96], sizes = [8, 32], strides = [1, 1]} : vector<16x192xf32> to vector<8x32xf32>
    %cst_99 = arith.constant 0.353553385 : f32
    %306 = vector.broadcast %cst_99 : f32 to vector<8x32xf32>
    %307 = arith.mulf %305, %306 : vector<8x32xf32>
    %308 = vector.extract_strided_slice %44 {offsets = [0, 128], sizes = [8, 32], strides = [1, 1]} : vector<16x192xf32> to vector<8x32xf32>
    %309 = vector.extract_strided_slice %307 {offsets = [0, 0], sizes = [8, 8], strides = [1, 1]} : vector<8x32xf32> to vector<8x8xf32>
    %310 = vector.extract_strided_slice %308 {offsets = [0, 0], sizes = [8, 8], strides = [1, 1]} : vector<8x32xf32> to vector<8x8xf32>
    %311 = tpu.transpose %310, [1, 0] : vector<8x8xf32> -> vector<8x8xf32>
    %cst_100 = arith.constant dense<0.000000e+00> : vector<8x8xf32>
    %312 = tpu.matmul %309, %311, %cst_100 {dimension_numbers = #tpu.dot_dimension_numbers<[1], [0], [0], [1], [0, 0, 1, 1], [], []>} : vector<8x8xf32>, vector<8x8xf32>, vector<8x8xf32> -> vector<8x8xf32>
    %313 = arith.addf %312, %148 : vector<8x8xf32>
    %314 = vector.extract_strided_slice %307 {offsets = [0, 8], sizes = [8, 8], strides = [1, 1]} : vector<8x32xf32> to vector<8x8xf32>
    %315 = vector.extract_strided_slice %308 {offsets = [0, 8], sizes = [8, 8], strides = [1, 1]} : vector<8x32xf32> to vector<8x8xf32>
    %316 = tpu.transpose %315, [1, 0] : vector<8x8xf32> -> vector<8x8xf32>
    %cst_101 = arith.constant dense<0.000000e+00> : vector<8x8xf32>
    %317 = tpu.matmul %314, %316, %cst_101 {dimension_numbers = #tpu.dot_dimension_numbers<[1], [0], [0], [1], [0, 0, 1, 1], [], []>} : vector<8x8xf32>, vector<8x8xf32>, vector<8x8xf32> -> vector<8x8xf32>
    %318 = arith.addf %317, %148 : vector<8x8xf32>
    %319 = vector.extract_strided_slice %307 {offsets = [0, 16], sizes = [8, 8], strides = [1, 1]} : vector<8x32xf32> to vector<8x8xf32>
    %320 = vector.extract_strided_slice %308 {offsets = [0, 16], sizes = [8, 8], strides = [1, 1]} : vector<8x32xf32> to vector<8x8xf32>
    %321 = tpu.transpose %320, [1, 0] : vector<8x8xf32> -> vector<8x8xf32>
    %cst_102 = arith.constant dense<0.000000e+00> : vector<8x8xf32>
    %322 = tpu.matmul %319, %321, %cst_102 {dimension_numbers = #tpu.dot_dimension_numbers<[1], [0], [0], [1], [0, 0, 1, 1], [], []>} : vector<8x8xf32>, vector<8x8xf32>, vector<8x8xf32> -> vector<8x8xf32>
    %323 = arith.addf %322, %148 : vector<8x8xf32>
    %324 = vector.extract_strided_slice %307 {offsets = [0, 24], sizes = [8, 8], strides = [1, 1]} : vector<8x32xf32> to vector<8x8xf32>
    %325 = vector.extract_strided_slice %308 {offsets = [0, 24], sizes = [8, 8], strides = [1, 1]} : vector<8x32xf32> to vector<8x8xf32>
    %326 = tpu.transpose %325, [1, 0] : vector<8x8xf32> -> vector<8x8xf32>
    %cst_103 = arith.constant dense<0.000000e+00> : vector<8x8xf32>
    %327 = tpu.matmul %324, %326, %cst_103 {dimension_numbers = #tpu.dot_dimension_numbers<[1], [0], [0], [1], [0, 0, 1, 1], [], []>} : vector<8x8xf32>, vector<8x8xf32>, vector<8x8xf32> -> vector<8x8xf32>
    %328 = arith.addf %327, %148 : vector<8x8xf32>
    %329 = vector.extract_strided_slice %44 {offsets = [8, 96], sizes = [8, 32], strides = [1, 1]} : vector<16x192xf32> to vector<8x32xf32>
    %cst_104 = arith.constant 0.353553385 : f32
    %330 = vector.broadcast %cst_104 : f32 to vector<8x32xf32>
    %331 = arith.mulf %329, %330 : vector<8x32xf32>
    %332 = vector.extract_strided_slice %44 {offsets = [8, 128], sizes = [8, 32], strides = [1, 1]} : vector<16x192xf32> to vector<8x32xf32>
    %333 = vector.extract_strided_slice %331 {offsets = [0, 0], sizes = [8, 8], strides = [1, 1]} : vector<8x32xf32> to vector<8x8xf32>
    %334 = vector.extract_strided_slice %332 {offsets = [0, 0], sizes = [8, 8], strides = [1, 1]} : vector<8x32xf32> to vector<8x8xf32>
    %335 = tpu.transpose %334, [1, 0] : vector<8x8xf32> -> vector<8x8xf32>
    %cst_105 = arith.constant dense<0.000000e+00> : vector<8x8xf32>
    %336 = tpu.matmul %333, %335, %cst_105 {dimension_numbers = #tpu.dot_dimension_numbers<[1], [0], [0], [1], [0, 0, 1, 1], [], []>} : vector<8x8xf32>, vector<8x8xf32>, vector<8x8xf32> -> vector<8x8xf32>
    %337 = arith.addf %336, %252 : vector<8x8xf32>
    %338 = vector.extract_strided_slice %331 {offsets = [0, 8], sizes = [8, 8], strides = [1, 1]} : vector<8x32xf32> to vector<8x8xf32>
    %339 = vector.extract_strided_slice %332 {offsets = [0, 8], sizes = [8, 8], strides = [1, 1]} : vector<8x32xf32> to vector<8x8xf32>
    %340 = tpu.transpose %339, [1, 0] : vector<8x8xf32> -> vector<8x8xf32>
    %cst_106 = arith.constant dense<0.000000e+00> : vector<8x8xf32>
    %341 = tpu.matmul %338, %340, %cst_106 {dimension_numbers = #tpu.dot_dimension_numbers<[1], [0], [0], [1], [0, 0, 1, 1], [], []>} : vector<8x8xf32>, vector<8x8xf32>, vector<8x8xf32> -> vector<8x8xf32>
    %342 = arith.addf %341, %252 : vector<8x8xf32>
    %343 = vector.extract_strided_slice %331 {offsets = [0, 16], sizes = [8, 8], strides = [1, 1]} : vector<8x32xf32> to vector<8x8xf32>
    %344 = vector.extract_strided_slice %332 {offsets = [0, 16], sizes = [8, 8], strides = [1, 1]} : vector<8x32xf32> to vector<8x8xf32>
    %345 = tpu.transpose %344, [1, 0] : vector<8x8xf32> -> vector<8x8xf32>
    %cst_107 = arith.constant dense<0.000000e+00> : vector<8x8xf32>
    %346 = tpu.matmul %343, %345, %cst_107 {dimension_numbers = #tpu.dot_dimension_numbers<[1], [0], [0], [1], [0, 0, 1, 1], [], []>} : vector<8x8xf32>, vector<8x8xf32>, vector<8x8xf32> -> vector<8x8xf32>
    %347 = arith.addf %346, %252 : vector<8x8xf32>
    %348 = vector.extract_strided_slice %331 {offsets = [0, 24], sizes = [8, 8], strides = [1, 1]} : vector<8x32xf32> to vector<8x8xf32>
    %349 = vector.extract_strided_slice %332 {offsets = [0, 24], sizes = [8, 8], strides = [1, 1]} : vector<8x32xf32> to vector<8x8xf32>
    %350 = tpu.transpose %349, [1, 0] : vector<8x8xf32> -> vector<8x8xf32>
    %cst_108 = arith.constant dense<0.000000e+00> : vector<8x8xf32>
    %351 = tpu.matmul %348, %350, %cst_108 {dimension_numbers = #tpu.dot_dimension_numbers<[1], [0], [0], [1], [0, 0, 1, 1], [], []>} : vector<8x8xf32>, vector<8x8xf32>, vector<8x8xf32> -> vector<8x8xf32>
    %352 = arith.addf %351, %252 : vector<8x8xf32>
    %353 = tpu.concatenate %265, %270, %275, %280, %289, %294, %299, %304, %313, %318, %323, %328, %337, %342, %347, %352 in 0 : vector<8x8xf32>, vector<8x8xf32>, vector<8x8xf32>, vector<8x8xf32>, vector<8x8xf32>, vector<8x8xf32>, vector<8x8xf32>, vector<8x8xf32>, vector<8x8xf32>, vector<8x8xf32>, vector<8x8xf32>, vector<8x8xf32>, vector<8x8xf32>, vector<8x8xf32>, vector<8x8xf32>, vector<8x8xf32> -> vector<128x8xf32>
    %cst_109 = arith.constant dense<0xFF800000> : vector<128xf32>
    %354 = vector.multi_reduction <maximumf>, %353, %cst_109 [1] : vector<128x8xf32> to vector<128xf32>
    %355 = vector.shape_cast %354 : vector<128xf32> to vector<128x1xf32>
    %356 = vector.broadcast %355 : vector<128x1xf32> to vector<128x8xf32>
    %357 = arith.subf %353, %356 : vector<128x8xf32>
    %358 = math.exp %357 : vector<128x8xf32>
    %cst_110 = arith.constant dense<0.000000e+00> : vector<128xf32>
    %359 = vector.multi_reduction <add>, %358, %cst_110 [1] : vector<128x8xf32> to vector<128xf32>
    %360 = vector.shape_cast %359 : vector<128xf32> to vector<128x1xf32>
    %361 = tpu.reciprocal %360 {approx = true} : vector<128x1xf32> -> vector<128x1xf32>
    %362 = vector.broadcast %361 : vector<128x1xf32> to vector<128x8xf32>
    %363 = arith.mulf %358, %362 : vector<128x8xf32>
    %364 = vector.extract_strided_slice %44 {offsets = [0, 64], sizes = [8, 32], strides = [1, 1]} : vector<16x192xf32> to vector<8x32xf32>
    %365 = vector.extract_strided_slice %363 {offsets = [0, 0], sizes = [8, 8], strides = [1, 1]} : vector<128x8xf32> to vector<8x8xf32>
    %366 = vector.extract_strided_slice %364 {offsets = [0, 0], sizes = [8, 8], strides = [1, 1]} : vector<8x32xf32> to vector<8x8xf32>
    %cst_111 = arith.constant dense<0.000000e+00> : vector<8x8xf32>
    %367 = tpu.matmul %365, %366, %cst_111 {dimension_numbers = #tpu.dot_dimension_numbers<[1], [0], [0], [1], [0, 0, 1, 1], [], []>} : vector<8x8xf32>, vector<8x8xf32>, vector<8x8xf32> -> vector<8x8xf32>
    %368 = vector.extract_strided_slice %363 {offsets = [8, 0], sizes = [8, 8], strides = [1, 1]} : vector<128x8xf32> to vector<8x8xf32>
    %369 = vector.extract_strided_slice %364 {offsets = [0, 8], sizes = [8, 8], strides = [1, 1]} : vector<8x32xf32> to vector<8x8xf32>
    %cst_112 = arith.constant dense<0.000000e+00> : vector<8x8xf32>
    %370 = tpu.matmul %368, %369, %cst_112 {dimension_numbers = #tpu.dot_dimension_numbers<[1], [0], [0], [1], [0, 0, 1, 1], [], []>} : vector<8x8xf32>, vector<8x8xf32>, vector<8x8xf32> -> vector<8x8xf32>
    %371 = vector.extract_strided_slice %363 {offsets = [16, 0], sizes = [8, 8], strides = [1, 1]} : vector<128x8xf32> to vector<8x8xf32>
    %372 = vector.extract_strided_slice %364 {offsets = [0, 16], sizes = [8, 8], strides = [1, 1]} : vector<8x32xf32> to vector<8x8xf32>
    %cst_113 = arith.constant dense<0.000000e+00> : vector<8x8xf32>
    %373 = tpu.matmul %371, %372, %cst_113 {dimension_numbers = #tpu.dot_dimension_numbers<[1], [0], [0], [1], [0, 0, 1, 1], [], []>} : vector<8x8xf32>, vector<8x8xf32>, vector<8x8xf32> -> vector<8x8xf32>
    %374 = vector.extract_strided_slice %363 {offsets = [24, 0], sizes = [8, 8], strides = [1, 1]} : vector<128x8xf32> to vector<8x8xf32>
    %375 = vector.extract_strided_slice %364 {offsets = [0, 24], sizes = [8, 8], strides = [1, 1]} : vector<8x32xf32> to vector<8x8xf32>
    %cst_114 = arith.constant dense<0.000000e+00> : vector<8x8xf32>
    %376 = tpu.matmul %374, %375, %cst_114 {dimension_numbers = #tpu.dot_dimension_numbers<[1], [0], [0], [1], [0, 0, 1, 1], [], []>} : vector<8x8xf32>, vector<8x8xf32>, vector<8x8xf32> -> vector<8x8xf32>
    %377 = tpu.concatenate %367, %370, %373, %376 in 1 : vector<8x8xf32>, vector<8x8xf32>, vector<8x8xf32>, vector<8x8xf32> -> vector<8x32xf32>
    %378 = vector.extract_strided_slice %44 {offsets = [8, 64], sizes = [8, 32], strides = [1, 1]} : vector<16x192xf32> to vector<8x32xf32>
    %379 = vector.extract_strided_slice %363 {offsets = [32, 0], sizes = [8, 8], strides = [1, 1]} : vector<128x8xf32> to vector<8x8xf32>
    %380 = vector.extract_strided_slice %378 {offsets = [0, 0], sizes = [8, 8], strides = [1, 1]} : vector<8x32xf32> to vector<8x8xf32>
    %cst_115 = arith.constant dense<0.000000e+00> : vector<8x8xf32>
    %381 = tpu.matmul %379, %380, %cst_115 {dimension_numbers = #tpu.dot_dimension_numbers<[1], [0], [0], [1], [0, 0, 1, 1], [], []>} : vector<8x8xf32>, vector<8x8xf32>, vector<8x8xf32> -> vector<8x8xf32>
    %382 = vector.extract_strided_slice %363 {offsets = [40, 0], sizes = [8, 8], strides = [1, 1]} : vector<128x8xf32> to vector<8x8xf32>
    %383 = vector.extract_strided_slice %378 {offsets = [0, 8], sizes = [8, 8], strides = [1, 1]} : vector<8x32xf32> to vector<8x8xf32>
    %cst_116 = arith.constant dense<0.000000e+00> : vector<8x8xf32>
    %384 = tpu.matmul %382, %383, %cst_116 {dimension_numbers = #tpu.dot_dimension_numbers<[1], [0], [0], [1], [0, 0, 1, 1], [], []>} : vector<8x8xf32>, vector<8x8xf32>, vector<8x8xf32> -> vector<8x8xf32>
    %385 = vector.extract_strided_slice %363 {offsets = [48, 0], sizes = [8, 8], strides = [1, 1]} : vector<128x8xf32> to vector<8x8xf32>
    %386 = vector.extract_strided_slice %378 {offsets = [0, 16], sizes = [8, 8], strides = [1, 1]} : vector<8x32xf32> to vector<8x8xf32>
    %cst_117 = arith.constant dense<0.000000e+00> : vector<8x8xf32>
    %387 = tpu.matmul %385, %386, %cst_117 {dimension_numbers = #tpu.dot_dimension_numbers<[1], [0], [0], [1], [0, 0, 1, 1], [], []>} : vector<8x8xf32>, vector<8x8xf32>, vector<8x8xf32> -> vector<8x8xf32>
    %388 = vector.extract_strided_slice %363 {offsets = [56, 0], sizes = [8, 8], strides = [1, 1]} : vector<128x8xf32> to vector<8x8xf32>
    %389 = vector.extract_strided_slice %378 {offsets = [0, 24], sizes = [8, 8], strides = [1, 1]} : vector<8x32xf32> to vector<8x8xf32>
    %cst_118 = arith.constant dense<0.000000e+00> : vector<8x8xf32>
    %390 = tpu.matmul %388, %389, %cst_118 {dimension_numbers = #tpu.dot_dimension_numbers<[1], [0], [0], [1], [0, 0, 1, 1], [], []>} : vector<8x8xf32>, vector<8x8xf32>, vector<8x8xf32> -> vector<8x8xf32>
    %391 = tpu.concatenate %381, %384, %387, %390 in 1 : vector<8x8xf32>, vector<8x8xf32>, vector<8x8xf32>, vector<8x8xf32> -> vector<8x32xf32>
    %392 = tpu.concatenate %377, %391 in 0 : vector<8x32xf32>, vector<8x32xf32> -> vector<16x32xf32>
    %393 = vector.extract_strided_slice %9 {offsets = [0, 0, 0], sizes = [1, 32, 32], strides = [1, 1, 1]} : vector<2x33x32xf32> to vector<1x32x32xf32>
    %394 = vector.shape_cast %393 : vector<1x32x32xf32> to vector<32x32xf32>
    %cst_119 = arith.constant dense<0.000000e+00> : vector<16x32xf32>
    %395 = tpu.matmul %392, %394, %cst_119 {dimension_numbers = #tpu.dot_dimension_numbers<[1], [0], [0], [1], [0, 0, 1, 1], [], []>} : vector<16x32xf32>, vector<32x32xf32>, vector<16x32xf32> -> vector<16x32xf32>
    %396 = vector.extract_strided_slice %9 {offsets = [0, 32, 0], sizes = [1, 1, 32], strides = [1, 1, 1]} : vector<2x33x32xf32> to vector<1x1x32xf32>
    %397 = vector.shape_cast %396 : vector<1x1x32xf32> to vector<1x32xf32>
    %398 = vector.broadcast %397 : vector<1x32xf32> to vector<16x32xf32>
    %399 = arith.addf %395, %398 : vector<16x32xf32>
    %400 = vector.extract_strided_slice %44 {offsets = [0, 160], sizes = [8, 32], strides = [1, 1]} : vector<16x192xf32> to vector<8x32xf32>
    %401 = vector.extract_strided_slice %363 {offsets = [64, 0], sizes = [8, 8], strides = [1, 1]} : vector<128x8xf32> to vector<8x8xf32>
    %402 = vector.extract_strided_slice %400 {offsets = [0, 0], sizes = [8, 8], strides = [1, 1]} : vector<8x32xf32> to vector<8x8xf32>
    %cst_120 = arith.constant dense<0.000000e+00> : vector<8x8xf32>
    %403 = tpu.matmul %401, %402, %cst_120 {dimension_numbers = #tpu.dot_dimension_numbers<[1], [0], [0], [1], [0, 0, 1, 1], [], []>} : vector<8x8xf32>, vector<8x8xf32>, vector<8x8xf32> -> vector<8x8xf32>
    %404 = vector.extract_strided_slice %363 {offsets = [72, 0], sizes = [8, 8], strides = [1, 1]} : vector<128x8xf32> to vector<8x8xf32>
    %405 = vector.extract_strided_slice %400 {offsets = [0, 8], sizes = [8, 8], strides = [1, 1]} : vector<8x32xf32> to vector<8x8xf32>
    %cst_121 = arith.constant dense<0.000000e+00> : vector<8x8xf32>
    %406 = tpu.matmul %404, %405, %cst_121 {dimension_numbers = #tpu.dot_dimension_numbers<[1], [0], [0], [1], [0, 0, 1, 1], [], []>} : vector<8x8xf32>, vector<8x8xf32>, vector<8x8xf32> -> vector<8x8xf32>
    %407 = vector.extract_strided_slice %363 {offsets = [80, 0], sizes = [8, 8], strides = [1, 1]} : vector<128x8xf32> to vector<8x8xf32>
    %408 = vector.extract_strided_slice %400 {offsets = [0, 16], sizes = [8, 8], strides = [1, 1]} : vector<8x32xf32> to vector<8x8xf32>
    %cst_122 = arith.constant dense<0.000000e+00> : vector<8x8xf32>
    %409 = tpu.matmul %407, %408, %cst_122 {dimension_numbers = #tpu.dot_dimension_numbers<[1], [0], [0], [1], [0, 0, 1, 1], [], []>} : vector<8x8xf32>, vector<8x8xf32>, vector<8x8xf32> -> vector<8x8xf32>
    %410 = vector.extract_strided_slice %363 {offsets = [88, 0], sizes = [8, 8], strides = [1, 1]} : vector<128x8xf32> to vector<8x8xf32>
    %411 = vector.extract_strided_slice %400 {offsets = [0, 24], sizes = [8, 8], strides = [1, 1]} : vector<8x32xf32> to vector<8x8xf32>
    %cst_123 = arith.constant dense<0.000000e+00> : vector<8x8xf32>
    %412 = tpu.matmul %410, %411, %cst_123 {dimension_numbers = #tpu.dot_dimension_numbers<[1], [0], [0], [1], [0, 0, 1, 1], [], []>} : vector<8x8xf32>, vector<8x8xf32>, vector<8x8xf32> -> vector<8x8xf32>
    %413 = tpu.concatenate %403, %406, %409, %412 in 1 : vector<8x8xf32>, vector<8x8xf32>, vector<8x8xf32>, vector<8x8xf32> -> vector<8x32xf32>
    %414 = vector.extract_strided_slice %44 {offsets = [8, 160], sizes = [8, 32], strides = [1, 1]} : vector<16x192xf32> to vector<8x32xf32>
    %415 = vector.extract_strided_slice %363 {offsets = [96, 0], sizes = [8, 8], strides = [1, 1]} : vector<128x8xf32> to vector<8x8xf32>
    %416 = vector.extract_strided_slice %414 {offsets = [0, 0], sizes = [8, 8], strides = [1, 1]} : vector<8x32xf32> to vector<8x8xf32>
    %cst_124 = arith.constant dense<0.000000e+00> : vector<8x8xf32>
    %417 = tpu.matmul %415, %416, %cst_124 {dimension_numbers = #tpu.dot_dimension_numbers<[1], [0], [0], [1], [0, 0, 1, 1], [], []>} : vector<8x8xf32>, vector<8x8xf32>, vector<8x8xf32> -> vector<8x8xf32>
    %418 = vector.extract_strided_slice %363 {offsets = [104, 0], sizes = [8, 8], strides = [1, 1]} : vector<128x8xf32> to vector<8x8xf32>
    %419 = vector.extract_strided_slice %414 {offsets = [0, 8], sizes = [8, 8], strides = [1, 1]} : vector<8x32xf32> to vector<8x8xf32>
    %cst_125 = arith.constant dense<0.000000e+00> : vector<8x8xf32>
    %420 = tpu.matmul %418, %419, %cst_125 {dimension_numbers = #tpu.dot_dimension_numbers<[1], [0], [0], [1], [0, 0, 1, 1], [], []>} : vector<8x8xf32>, vector<8x8xf32>, vector<8x8xf32> -> vector<8x8xf32>
    %421 = vector.extract_strided_slice %363 {offsets = [112, 0], sizes = [8, 8], strides = [1, 1]} : vector<128x8xf32> to vector<8x8xf32>
    %422 = vector.extract_strided_slice %414 {offsets = [0, 16], sizes = [8, 8], strides = [1, 1]} : vector<8x32xf32> to vector<8x8xf32>
    %cst_126 = arith.constant dense<0.000000e+00> : vector<8x8xf32>
    %423 = tpu.matmul %421, %422, %cst_126 {dimension_numbers = #tpu.dot_dimension_numbers<[1], [0], [0], [1], [0, 0, 1, 1], [], []>} : vector<8x8xf32>, vector<8x8xf32>, vector<8x8xf32> -> vector<8x8xf32>
    %424 = vector.extract_strided_slice %363 {offsets = [120, 0], sizes = [8, 8], strides = [1, 1]} : vector<128x8xf32> to vector<8x8xf32>
    %425 = vector.extract_strided_slice %414 {offsets = [0, 24], sizes = [8, 8], strides = [1, 1]} : vector<8x32xf32> to vector<8x8xf32>
    %cst_127 = arith.constant dense<0.000000e+00> : vector<8x8xf32>
    %426 = tpu.matmul %424, %425, %cst_127 {dimension_numbers = #tpu.dot_dimension_numbers<[1], [0], [0], [1], [0, 0, 1, 1], [], []>} : vector<8x8xf32>, vector<8x8xf32>, vector<8x8xf32> -> vector<8x8xf32>
    %427 = tpu.concatenate %417, %420, %423, %426 in 1 : vector<8x8xf32>, vector<8x8xf32>, vector<8x8xf32>, vector<8x8xf32> -> vector<8x32xf32>
    %428 = tpu.concatenate %413, %427 in 0 : vector<8x32xf32>, vector<8x32xf32> -> vector<16x32xf32>
    %429 = vector.extract_strided_slice %9 {offsets = [1, 0, 0], sizes = [1, 32, 32], strides = [1, 1, 1]} : vector<2x33x32xf32> to vector<1x32x32xf32>
    %430 = vector.shape_cast %429 : vector<1x32x32xf32> to vector<32x32xf32>
    %cst_128 = arith.constant dense<0.000000e+00> : vector<16x32xf32>
    %431 = tpu.matmul %428, %430, %cst_128 {dimension_numbers = #tpu.dot_dimension_numbers<[1], [0], [0], [1], [0, 0, 1, 1], [], []>} : vector<16x32xf32>, vector<32x32xf32>, vector<16x32xf32> -> vector<16x32xf32>
    %432 = vector.extract_strided_slice %9 {offsets = [1, 32, 0], sizes = [1, 1, 32], strides = [1, 1, 1]} : vector<2x33x32xf32> to vector<1x1x32xf32>
    %433 = vector.shape_cast %432 : vector<1x1x32xf32> to vector<1x32xf32>
    %434 = vector.broadcast %433 : vector<1x32xf32> to vector<16x32xf32>
    %435 = arith.addf %431, %434 : vector<16x32xf32>
    %436 = vector.extract_strided_slice %435 {offsets = [0, 0], sizes = [8, 32], strides = [1, 1]} : vector<16x32xf32> to vector<8x32xf32>
    %437 = vector.extract_strided_slice %2 {offsets = [0, 0, 0, 0], sizes = [1, 1, 2, 8], strides = [1, 1, 1, 1]} : vector<2x2x2x8xf32> to vector<1x1x2x8xf32>
    %438 = vector.shape_cast %437 : vector<1x1x2x8xf32> to vector<2x8xf32>
    %cst_129 = arith.constant dense<0.000000e+00> : vector<2x32xf32>
    %439 = tpu.matmul %438, %436, %cst_129 {dimension_numbers = #tpu.dot_dimension_numbers<[1], [0], [0], [1], [0, 0, 1, 1], [], []>} : vector<2x8xf32>, vector<8x32xf32>, vector<2x32xf32> -> vector<2x32xf32>
    %440 = vector.extract_strided_slice %2 {offsets = [1, 0, 0, 0], sizes = [1, 1, 2, 8], strides = [1, 1, 1, 1]} : vector<2x2x2x8xf32> to vector<1x1x2x8xf32>
    %441 = vector.shape_cast %440 : vector<1x1x2x8xf32> to vector<2x8xf32>
    %cst_130 = arith.constant dense<0.000000e+00> : vector<2x32xf32>
    %442 = tpu.matmul %441, %436, %cst_130 {dimension_numbers = #tpu.dot_dimension_numbers<[1], [0], [0], [1], [0, 0, 1, 1], [], []>} : vector<2x8xf32>, vector<8x32xf32>, vector<2x32xf32> -> vector<2x32xf32>
    %443 = tpu.concatenate %439, %442 in 1 : vector<2x32xf32>, vector<2x32xf32> -> vector<2x64xf32>
    %444 = vector.extract_strided_slice %13 {offsets = [0, 0], sizes = [64, 32], strides = [1, 1]} : vector<65x32xf32> to vector<64x32xf32>
    %cst_131 = arith.constant dense<0.000000e+00> : vector<2x32xf32>
    %445 = tpu.matmul %443, %444, %cst_131 {dimension_numbers = #tpu.dot_dimension_numbers<[1], [0], [0], [1], [0, 0, 1, 1], [], []>} : vector<2x64xf32>, vector<64x32xf32>, vector<2x32xf32> -> vector<2x32xf32>
    %446 = vector.extract_strided_slice %13 {offsets = [64, 0], sizes = [1, 32], strides = [1, 1]} : vector<65x32xf32> to vector<1x32xf32>
    %447 = vector.broadcast %446 : vector<1x32xf32> to vector<2x32xf32>
    %448 = arith.addf %445, %447 : vector<2x32xf32>
    %449 = vector.extract_strided_slice %4 {offsets = [0, 0], sizes = [2, 1], strides = [1, 1]} : vector<2x2xf32> to vector<2x1xf32>
    %450 = vector.broadcast %449 : vector<2x1xf32> to vector<2x32xf32>
    %451 = arith.mulf %448, %450 : vector<2x32xf32>
    %cst_132 = arith.constant dense<0.000000e+00> : vector<32xf32>
    %452 = vector.multi_reduction <add>, %451, %cst_132 [0] : vector<2x32xf32> to vector<32xf32>
    %453 = vector.shape_cast %452 : vector<32xf32> to vector<1x32xf32>
    %454 = vector.shape_cast %453 : vector<1x32xf32> to vector<1x32xf32>
    %455 = vector.broadcast %454 : vector<1x32xf32> to vector<8x32xf32>
    %456 = vector.extract_strided_slice %435 {offsets = [8, 0], sizes = [8, 32], strides = [1, 1]} : vector<16x32xf32> to vector<8x32xf32>
    %457 = vector.extract_strided_slice %2 {offsets = [0, 1, 0, 0], sizes = [1, 1, 2, 8], strides = [1, 1, 1, 1]} : vector<2x2x2x8xf32> to vector<1x1x2x8xf32>
    %458 = vector.shape_cast %457 : vector<1x1x2x8xf32> to vector<2x8xf32>
    %cst_133 = arith.constant dense<0.000000e+00> : vector<2x32xf32>
    %459 = tpu.matmul %458, %456, %cst_133 {dimension_numbers = #tpu.dot_dimension_numbers<[1], [0], [0], [1], [0, 0, 1, 1], [], []>} : vector<2x8xf32>, vector<8x32xf32>, vector<2x32xf32> -> vector<2x32xf32>
    %460 = vector.extract_strided_slice %2 {offsets = [1, 1, 0, 0], sizes = [1, 1, 2, 8], strides = [1, 1, 1, 1]} : vector<2x2x2x8xf32> to vector<1x1x2x8xf32>
    %461 = vector.shape_cast %460 : vector<1x1x2x8xf32> to vector<2x8xf32>
    %cst_134 = arith.constant dense<0.000000e+00> : vector<2x32xf32>
    %462 = tpu.matmul %461, %456, %cst_134 {dimension_numbers = #tpu.dot_dimension_numbers<[1], [0], [0], [1], [0, 0, 1, 1], [], []>} : vector<2x8xf32>, vector<8x32xf32>, vector<2x32xf32> -> vector<2x32xf32>
    %463 = tpu.concatenate %459, %462 in 1 : vector<2x32xf32>, vector<2x32xf32> -> vector<2x64xf32>
    %464 = vector.extract_strided_slice %13 {offsets = [0, 0], sizes = [64, 32], strides = [1, 1]} : vector<65x32xf32> to vector<64x32xf32>
    %cst_135 = arith.constant dense<0.000000e+00> : vector<2x32xf32>
    %465 = tpu.matmul %463, %464, %cst_135 {dimension_numbers = #tpu.dot_dimension_numbers<[1], [0], [0], [1], [0, 0, 1, 1], [], []>} : vector<2x64xf32>, vector<64x32xf32>, vector<2x32xf32> -> vector<2x32xf32>
    %466 = vector.extract_strided_slice %13 {offsets = [64, 0], sizes = [1, 32], strides = [1, 1]} : vector<65x32xf32> to vector<1x32xf32>
    %467 = vector.broadcast %466 : vector<1x32xf32> to vector<2x32xf32>
    %468 = arith.addf %465, %467 : vector<2x32xf32>
    %469 = vector.extract_strided_slice %4 {offsets = [0, 1], sizes = [2, 1], strides = [1, 1]} : vector<2x2xf32> to vector<2x1xf32>
    %470 = vector.broadcast %469 : vector<2x1xf32> to vector<2x32xf32>
    %471 = arith.mulf %468, %470 : vector<2x32xf32>
    %cst_136 = arith.constant dense<0.000000e+00> : vector<32xf32>
    %472 = vector.multi_reduction <add>, %471, %cst_136 [0] : vector<2x32xf32> to vector<32xf32>
    %473 = vector.shape_cast %472 : vector<32xf32> to vector<1x32xf32>
    %474 = vector.shape_cast %473 : vector<1x32xf32> to vector<1x32xf32>
    %475 = vector.broadcast %474 : vector<1x32xf32> to vector<8x32xf32>
    %476 = tpu.concatenate %455, %475 in 0 : vector<8x32xf32>, vector<8x32xf32> -> vector<16x32xf32>
    %477 = arith.addf %399, %476 : vector<16x32xf32>
    %cst_137 = arith.constant 5.000000e-01 : f32
    %478 = vector.broadcast %cst_137 : f32 to vector<16x32xf32>
    %479 = arith.mulf %478, %477 : vector<16x32xf32>
    %480 = arith.addf %0, %479 : vector<16x32xf32>
    %481 = vector.extract_strided_slice %7 {offsets = [2, 0], sizes = [1, 32], strides = [1, 1]} : vector<4x32xf32> to vector<1x32xf32>
    %482 = vector.extract_strided_slice %7 {offsets = [3, 0], sizes = [1, 32], strides = [1, 1]} : vector<4x32xf32> to vector<1x32xf32>
    %cst_138 = arith.constant dense<0.000000e+00> : vector<16xf32>
    %483 = vector.multi_reduction <add>, %480, %cst_138 [1] : vector<16x32xf32> to vector<16xf32>
    %484 = vector.shape_cast %483 : vector<16xf32> to vector<16x1xf32>
    %cst_139 = arith.constant 3.200000e+01 : f32
    %485 = vector.broadcast %cst_139 : f32 to vector<16x1xf32>
    %486 = arith.divf %484, %485 : vector<16x1xf32>
    %487 = vector.broadcast %486 : vector<16x1xf32> to vector<16x32xf32>
    %488 = arith.subf %480, %487 : vector<16x32xf32>
    %489 = arith.mulf %488, %488 : vector<16x32xf32>
    %cst_140 = arith.constant dense<0.000000e+00> : vector<16xf32>
    %490 = vector.multi_reduction <add>, %489, %cst_140 [1] : vector<16x32xf32> to vector<16xf32>
    %491 = vector.shape_cast %490 : vector<16xf32> to vector<16x1xf32>
    %cst_141 = arith.constant 3.200000e+01 : f32
    %492 = vector.broadcast %cst_141 : f32 to vector<16x1xf32>
    %493 = arith.divf %491, %492 : vector<16x1xf32>
    %494 = vector.broadcast %486 : vector<16x1xf32> to vector<16x32xf32>
    %495 = arith.subf %480, %494 : vector<16x32xf32>
    %cst_142 = arith.constant 9.99999974E-6 : f32
    %496 = vector.broadcast %cst_142 : f32 to vector<16x1xf32>
    %497 = arith.addf %493, %496 : vector<16x1xf32>
    %498 = math.rsqrt %497 : vector<16x1xf32>
    %499 = vector.broadcast %498 : vector<16x1xf32> to vector<16x32xf32>
    %500 = arith.mulf %495, %499 : vector<16x32xf32>
    %501 = vector.broadcast %481 : vector<1x32xf32> to vector<16x32xf32>
    %502 = arith.mulf %500, %501 : vector<16x32xf32>
    %503 = vector.broadcast %482 : vector<1x32xf32> to vector<16x32xf32>
    %504 = arith.addf %502, %503 : vector<16x32xf32>
    %505 = vector.extract_strided_slice %14 {offsets = [0, 0], sizes = [32, 64], strides = [1, 1]} : vector<33x64xf32> to vector<32x64xf32>
    %cst_143 = arith.constant dense<0.000000e+00> : vector<16x64xf32>
    %506 = tpu.matmul %504, %505, %cst_143 {dimension_numbers = #tpu.dot_dimension_numbers<[1], [0], [0], [1], [0, 0, 1, 1], [], []>} : vector<16x32xf32>, vector<32x64xf32>, vector<16x64xf32> -> vector<16x64xf32>
    %507 = vector.extract_strided_slice %14 {offsets = [32, 0], sizes = [1, 64], strides = [1, 1]} : vector<33x64xf32> to vector<1x64xf32>
    %508 = vector.broadcast %507 : vector<1x64xf32> to vector<16x64xf32>
    %509 = arith.addf %506, %508 : vector<16x64xf32>
    %cst_144 = arith.constant 5.000000e-01 : f32
    %510 = vector.broadcast %cst_144 : f32 to vector<16x64xf32>
    %511 = arith.mulf %510, %509 : vector<16x64xf32>
    %cst_145 = arith.constant 0.707106769 : f32
    %512 = vector.broadcast %cst_145 : f32 to vector<16x64xf32>
    %513 = arith.mulf %509, %512 : vector<16x64xf32>
    %514 = math.absf %513 : vector<16x64xf32>
    %cst_146 = arith.constant 0.327591091 : f32
    %515 = vector.broadcast %cst_146 : f32 to vector<16x64xf32>
    %516 = arith.mulf %515, %514 : vector<16x64xf32>
    %cst_147 = arith.constant 1.000000e+00 : f32
    %517 = vector.broadcast %cst_147 : f32 to vector<16x64xf32>
    %518 = arith.addf %517, %516 : vector<16x64xf32>
    %cst_148 = arith.constant 1.000000e+00 : f32
    %519 = vector.broadcast %cst_148 : f32 to vector<16x64xf32>
    %520 = arith.divf %519, %518 : vector<16x64xf32>
    %cst_149 = arith.constant 1.06140542 : f32
    %521 = vector.broadcast %cst_149 : f32 to vector<16x64xf32>
    %522 = arith.mulf %521, %520 : vector<16x64xf32>
    %cst_150 = arith.constant -1.45315206 : f32
    %523 = vector.broadcast %cst_150 : f32 to vector<16x64xf32>
    %524 = arith.addf %522, %523 : vector<16x64xf32>
    %525 = arith.mulf %524, %520 : vector<16x64xf32>
    %cst_151 = arith.constant 1.42141378 : f32
    %526 = vector.broadcast %cst_151 : f32 to vector<16x64xf32>
    %527 = arith.addf %525, %526 : vector<16x64xf32>
    %528 = arith.mulf %527, %520 : vector<16x64xf32>
    %cst_152 = arith.constant -0.284496725 : f32
    %529 = vector.broadcast %cst_152 : f32 to vector<16x64xf32>
    %530 = arith.addf %528, %529 : vector<16x64xf32>
    %531 = arith.mulf %530, %520 : vector<16x64xf32>
    %cst_153 = arith.constant 0.254829586 : f32
    %532 = vector.broadcast %cst_153 : f32 to vector<16x64xf32>
    %533 = arith.addf %531, %532 : vector<16x64xf32>
    %534 = arith.mulf %533, %520 : vector<16x64xf32>
    %cst_154 = arith.constant 0.000000e+00 : f32
    %535 = vector.broadcast %cst_154 : f32 to vector<16x64xf32>
    %536 = arith.subf %535, %514 : vector<16x64xf32>
    %537 = arith.mulf %536, %514 : vector<16x64xf32>
    %538 = math.exp %537 : vector<16x64xf32>
    %539 = arith.mulf %534, %538 : vector<16x64xf32>
    %cst_155 = arith.constant 1.000000e+00 : f32
    %540 = vector.broadcast %cst_155 : f32 to vector<16x64xf32>
    %541 = arith.subf %540, %539 : vector<16x64xf32>
    %cst_156 = arith.constant 0.000000e+00 : f32
    %542 = vector.broadcast %cst_156 : f32 to vector<16x64xf32>
    %543 = arith.cmpf oge, %513, %542 : vector<16x64xf32>
    %cst_157 = arith.constant 0.000000e+00 : f32
    %544 = vector.broadcast %cst_157 : f32 to vector<16x64xf32>
    %545 = arith.subf %544, %541 : vector<16x64xf32>
    %546 = arith.select %543, %541, %545 : vector<16x64xi1>, vector<16x64xf32>
    %cst_158 = arith.constant 1.000000e+00 : f32
    %547 = vector.broadcast %cst_158 : f32 to vector<16x64xf32>
    %548 = arith.addf %547, %546 : vector<16x64xf32>
    %549 = arith.mulf %511, %548 : vector<16x64xf32>
    %550 = vector.extract_strided_slice %15 {offsets = [0, 0], sizes = [64, 32], strides = [1, 1]} : vector<65x32xf32> to vector<64x32xf32>
    %cst_159 = arith.constant dense<0.000000e+00> : vector<16x32xf32>
    %551 = tpu.matmul %549, %550, %cst_159 {dimension_numbers = #tpu.dot_dimension_numbers<[1], [0], [0], [1], [0, 0, 1, 1], [], []>} : vector<16x64xf32>, vector<64x32xf32>, vector<16x32xf32> -> vector<16x32xf32>
    %552 = vector.extract_strided_slice %15 {offsets = [64, 0], sizes = [1, 32], strides = [1, 1]} : vector<65x32xf32> to vector<1x32xf32>
    %553 = vector.broadcast %552 : vector<1x32xf32> to vector<16x32xf32>
    %554 = arith.addf %551, %553 : vector<16x32xf32>
    %555 = arith.addf %480, %554 : vector<16x32xf32>
    %c0_160 = arith.constant 0 : index
    %c0_161 = arith.constant 0 : index
    %556 = vector.load %arg16[%c0_160, %c0_161] : memref<16x32xf32, #tpu.memory_space<vmem>>, vector<16x32xf32>
    tpu.vector_store %arg16[%c0_160, %c0_161], %555 {strides = array<i32>} : memref<16x32xf32, #tpu.memory_space<vmem>>, vector<16x32xf32>,
    return
  }
}

</mosaic_0001>

<bundles_post_ra>
// kernel: tpu_custom_call.1
= control target key start
LH: loop header
LB: loop body
LE: loop exit
PB: predicated region body
PF: predicated region fallthrough
CT: control target
= control target key end

     0   :  { %s3389_s0 = inlined_call_operand.vmem [shape: f32[16,32], index: 0, kind: input, shape index: {}]   ;;  %s3390_s1 = inlined_call_operand.vmem [shape: f32[3,2,8,8], index: 1, kind: input, shape index: {}]   ;;  %s3391_s2 = inlined_call_operand.vmem [shape: f32[2,2,2,8], index: 2, kind: input, shape index: {}]   ;;  %s3392_s3 = inlined_call_operand.vmem [shape: f32[2,2,8,8], index: 3, kind: input, shape index: {}]   ;;  %s3393_s4 = inlined_call_operand.vmem [shape: f32[2,2], index: 4, kind: input, shape index: {}]   ;;  %s3394_s5 = inlined_call_operand.vmem [shape: f32[2,2,8], index: 5, kind: input, shape index: {}]   ;;  %s3395_s6 = inlined_call_operand.vmem [shape: f32[2,2,8,8], index: 6, kind: input, shape index: {}]   ;;  %s3396_s7 = inlined_call_operand.vmem [shape: f32[4,32], index: 7, kind: input, shape index: {}]   ;;  %s3397_s8 = inlined_call_operand.vmem [shape: f32[33,192], index: 8, kind: input, shape index: {}]   ;;  %s3398_s9 = inlined_call_operand.vmem [shape: f32[2,33,32], index: 9, kind: input, shape index: {}]   ;;  %s3399_s10 = inlined_call_operand.vmem [shape: f32[2,33,32], index: 10, kind: input, shape index: {}]   ;;  %s3400_s11 = inlined_call_operand.vmem [shape: f32[1,65], index: 11, kind: input, shape index: {}]   ;;  %s3401_s12 = inlined_call_operand.vmem [shape: f32[1,33], index: 12, kind: input, shape index: {}]   ;;  %s3402_s13 = inlined_call_operand.vmem [shape: f32[65,32], index: 13, kind: input, shape index: {}]   ;;  %s3403_s14 = inlined_call_operand.vmem [shape: f32[33,64], index: 14, kind: input, shape index: {}]   ;;  %s3404_s15 = inlined_call_operand.vmem [shape: f32[65,32], index: 15, kind: input, shape index: {}]   ;;  %s3405_s16 = inlined_call_operand.hbm [shape: f32[16,32], index: 16, kind: output, shape index: {}]  }
   0x1   :  { %3407 = sst [smem:[#allocation5_spill]] %s3389_s0 }
   0x2   :  { %s3408_s23 = sld [smem:[#allocation5_spill]]  ;;  %vm133_vm0 = vcmask 261120  }
   0x8   :  { %v54_v0 = vld [vmem:[%s3408_s23] sm:$0xff] }
   0x9   :  { %v134_v1 = vsel %vm133_vm0, %v54_v0, 0.0 }
   0xa   :  { %135 = vadd.xlane.f32.xlu0 %v134_v1 }
   0xb   :  { %21 = vsyncpa [#allocation3], 0  ;;  %v2511_v2 = vmov 32.0   ;;  %v84_v14 = vld [vmem:[%s3397_s8 + $0x30] sm:$0xff]  ;;  %v82_v15 = vld [vmem:[%s3397_s8 + $0x20] sm:$0xff]  ;;  %vm245_vm5 = vcmask 64512  }
   0xc   :  { %2392 = vrcp.f32 %v2511_v2  ;;  %211 = vmatpush.msra.mxu1 %v84_v14  ;;  %v80_v16 = vld [vmem:[%s3397_s8 + $0x10] sm:$0xff]  ;;  %v78_v17 = vld [vmem:[%s3397_s8] sm:$0xff]  ;;  %v2653_v34 = vld [vmem:[%s3399_s10 + $0x18] sm:$0xff]  ;;  %s2512_s30 = smov 32   ;;  %vm385_vm6 = vcmask 254976   ;;  %vm350_vm7 = vcmask 517120  }
   0xd   :  { %v2640_v25 = vld [vmem:[%s3396_s7] sm:$0xf]  ;;  %v64_v35 = vld [vmem:[%s3391_s2 + $0x4] sm:$0x3]  ;;  %v2667_v37 = vld [vmem:[%s3399_s10 + $0x10] sm:$0xff]  ;;  %s2515_s28 = smov 80  }
   0xe   :  { %212 = vmatpush.msra.mxu1 %v82_v15  ;;  %v185_v28 = vperm.slane %v2640_v25, 0  ;;  %v188_v31 = vperm.slane %v2640_v25, 1  ;;  %v62_v36 = vld [vmem:[%s3391_s2] sm:$0x3]  ;;  %v2675_v38 = vld [vmem:[%s3399_s10 + $0x8] sm:$0xff]  ;;  %v2695_v41 = vld [vmem:[%s3399_s10 + $0x38] sm:$0xff] }
   0xf   :  { %v2682_v39 = vld [vmem:[%s3399_s10] sm:$0xff]  ;;  %v2701_v42 = vld [vmem:[%s3399_s10 + $0x30] sm:$0xff]  ;;  %v2708_v43 = vld [vmem:[%s3399_s10 + $0x28] sm:$0xff]  ;;  %s2516_s29 = smov 88   ;;  %s2519_s17 = smov 104   ;;  %vm1455_vm15 = vcmask 130048  }
  0x10   :  { %213 = vmatpush.msra.mxu1 %v80_v16  ;;  %v2690_v40 = vld [vmem:[%s3399_s10 + $0x40] sm:$0xff]  ;;  %v2720_v47 = vld [vmem:[%s3399_s10 + $0x48] ss:$0 sm:$0xff]  ;;  %s2520_s18 = smov 72   ;;  %s2522_s20 = smov 24  }
  0x11   :  { %v71_v46 = vld [vmem:[%s3394_s5] sm:$0x3]  ;;  %v55_v50 = vld [vmem:[%s3408_s23 + $0x8] sm:$0xff]  ;;  %v72_v25 = vld [vmem:[%s3394_s5 + $0x2] sm:$0x3]  ;;  %s2523_s21 = smov 16  }
  0x12   :  { %v2393_v3 = vpop.eup %2392  ;;  %214 = vmatpush.msra.mxu1 %v78_v17  ;;  %v137_v51 = vsel %vm133_vm0, %v55_v50, 0.0  ;;  %v2731_v53 = vld [vmem:[%s3401_s12] ss:$0 sm:$0xff]  ;;  %v85_v17 = vld [vmem:[%s3397_s8 + $0x38] sm:$0xff]  ;;  %s2245_s25 = sshll.u32 %s3405_s16, 4  ;;  %s2246_s25 = int_to_ptr.hbm [resolvable:$true] %s2245_s25 }
  0x13   :  { %v141_v4 = vmul.f32 32.0, %v2393_v3  ;;  %vm145_vm1 = vweird.f32 %v2393_v3  ;;  %v2738_v57 = vld [vmem:[%s3399_s10 + $0x20] ss:$0 sm:$0xff]  ;;  %s2513_s10 = smov 64  }
  0x14   :  { %v2745_v61 = vld [vmem:[%s3400_s11] ss:$0 sm:$0xff]  ;;  %s2514_s11 = smov 96   ;;  %234 = vmatpush.msrb.mxu1 %v85_v17 }
  0x15   :  { %v142_v5 = vsub.f32 1.0, %v141_v4  ;;  %v2381_v17 = vld [vmem:[%s3397_s8 + $0x40] ss:$0 sm:$0xff] }
  0x17   :  { %v143_v6 = vmul.f32 %v2393_v3, %v142_v5 }
  0x19   :  { %v144_v7 = vadd.f32 %v2393_v3, %v143_v6 }
  0x1b   :  { %v2620_v8 = vsel %vm145_vm1, %v2393_v3, %v144_v7  ;;  %vm1457_vm1 = vcmask 195584  }
  0x7d   :  { %v136_v9 = vpop.xlane.xlu0 %135 }
  0x7e   :  { %v147_v10 = vmul.f32 %v2620_v8, %v136_v9 }
  0x80   :  { %v149_v11 = vsub.f32 %v54_v0, %v147_v10 }
  0x82   :  { %v151_v12 = vmul.f32 %v149_v11, %v149_v11 }
  0x84   :  { %v153_v13 = vsel %vm133_vm0, %v151_v12, 0.0 }
  0x85   :  { %154 = vadd.xlane.f32.xlu0 %v153_v13 }
  0xf8   :  { %v155_v18 = vpop.xlane.xlu0 %154 }
  0xf9   :  { %v159_v19 = vmul.f32 %v155_v18, %v2620_v8  ;;  %v83_v18 = vld [vmem:[%s3397_s8 + $0x28] sm:$0xff] }
  0xfa   :  { %235 = vmatpush.msrb.mxu1 %v83_v18 }
  0xfb   :  { %v161_v20 = vadd.f32 1e-05, %v159_v19  ;;  %v81_v19 = vld [vmem:[%s3397_s8 + $0x18] sm:$0xff] }
  0xfc   :  { %236 = vmatpush.msrb.mxu1 %v81_v19 }
  0xfd   :  { %2394 = vrsqrt.f32 %v161_v20  ;;  %vm169_vm3 = vweird.f32 %v161_v20 }
 0x103   :  { %v2395_v21 = vpop.eup %2394 }
 0x104   :  { %v164_v22 = vmul.f32 %v2395_v21, %v161_v20  ;;  %vm170_vm2 = vweird.f32 %v2395_v21  ;;  %v79_v20 = vld [vmem:[%s3397_s8 + $0x8] sm:$0xff] }
 0x105   :  { %vm171_vm4 = vmor %vm169_vm3, %vm170_vm2  ;;  %237 = vmatpush.msrb.mxu1 %v79_v20  ;;  %vm1922_vm2 = vcmask 523264  }
 0x106   :  { %v165_v23 = vmul.f32 %v2395_v21, %v164_v22 }
 0x108   :  { %v166_v24 = vmul.f32 0.5, %v165_v23 }
 0x10a   :  { %v167_v26 = vsub.f32 1.5, %v166_v24 }
 0x10c   :  { %v168_v27 = vmul.f32 %v2395_v21, %v167_v26 }
 0x10e   :  { %v172_v29 = vsel %vm171_vm4, %v2395_v21, %v168_v27 }
 0x10f   :  { %v183_v30 = vmul.f32 %v172_v29, %v149_v11 }
 0x111   :  { %v186_v32 = vmul.f32 %v185_v28, %v183_v30 }
 0x113   :  { %v2648_v33 = vadd.f32 %v188_v31, %v186_v32 }
 0x115   :  { %2257 = vmatmul.msk.f32.vlgmr.msra.gmra.mxu1 %vm133_vm0, %v2648_v33  ;;  %264 = vmatpush.msra.mxu2 %v2648_v33 }
 0x116   :  { %287 = vmatpush.msra.mxu3 %v2648_v33  ;;  %2261 = vmatmul.msk.f32.vlgmr.msra.gmra.mxu2 %vm245_vm5, %v62_v36 }
 0x117   :  { %308 = vmatpush.msrb.mxu2 %v2653_v34  ;;  %2262 = vmatmul.msk.f32.vlgmr.msra.gmra.mxu3 %vm245_vm5, %v64_v35 }
 0x118   :  { %332 = vmatpush.msrb.mxu3 %v2690_v40 }
 0x119   :  { %309 = vmatpush.msrb.mxu2 %v2667_v37 }
 0x11a   :  { %333 = vmatpush.msrb.mxu3 %v2695_v41 }
 0x11b   :  { %310 = vmatpush.msrb.mxu2 %v2675_v38 }
 0x11c   :  { %334 = vmatpush.msrb.mxu3 %v2701_v42 }
 0x11d   :  { %311 = vmatpush.msrb.mxu2 %v2682_v39 }
 0x11e   :  { %335 = vmatpush.msrb.mxu3 %v2708_v43 }
 0x11f   :  { %376 = vmatpush.msra.mxu2 %v2648_v33 }
 0x199   :  { %v266_v45 = vpop.f32.mrf.mxu2 }
 0x19a   :  { %v289_v44 = vpop.f32.mrf.mxu3  ;;  %2263 = vmatmul.msk.f32.vlgmr.msrb.gmra.mxu2 %vm133_vm0, %v266_v45 }
 0x19b   :  { %2264 = vmatmul.msk.f32.vlgmr.msrb.gmra.mxu3 %vm133_vm0, %v289_v44 }
 0x1a2   :  { %2265 = vmatmul.msk.f32.vlgmr.msra.gmra.mxu2 %vm245_vm5, %v71_v46  ;;  %v65_v46 = vld [vmem:[%s3391_s2 + $0x6] sm:$0x3] }
 0x21d   :  { %v313_v52 = vpop.f32.mrf.mxu2 }
 0x21e   :  { %v337_v48 = vpop.f32.mrf.mxu3  ;;  %v314_v58 = vadd.f32 %v2738_v57, %v313_v52 }
 0x21f   :  { %v338_v49 = vadd.f32 %v2720_v47, %v337_v48 }
 0x221   :  { %341 = vrot.lane.b32.xlu1 %v338_v49, %s2512_s30 }
 0x225   :  { %v378_v54 = vpop.f32.mrf.mxu2 }
 0x226   :  { %v384_v55 = vmul.f32 %v2731_v53, %v378_v54 }
 0x228   :  { %v386_v56 = vsel %vm385_vm6, %v384_v55, 0.0  ;;  %v58_v55 = vld [vmem:[%s3390_s1 + $0x10] sm:$0xff] }
 0x229   :  { %387 = vadd.xlane.f32.xlu2 %v386_v56  ;;  %v74_v56 = vld [vmem:[%s3395_s6 + $0x8] sm:$0xff] }
 0x24b   :  { %138 = vadd.xlane.f32.xlu1 %v137_v51 }
 0x293   :  { %v342_v59 = vpop.permute.xlu1 %341 }
 0x294   :  { %v344_v60 = vsel %vm133_vm0, %v314_v58, %v342_v59  ;;  %v73_v59 = vld [vmem:[%s3395_s6] sm:$0xff] }
 0x295   :  { %2396 = vtanh.f32 %v344_v60 }
 0x29b   :  { %v2397_v62 = vpop.eup %2396 }
 0x29c   :  { %v349_v63 = vmul.f32 %v2397_v62, %v2745_v61  ;;  %v388_v6 = vpop.xlane.xlu2 %387 }
 0x29d   :  { %v389_v10 = vadd.f32 %v2731_v53, %v388_v6 }
 0x29e   :  { %v351_v0 = vsel %vm350_vm7, %v349_v63, 0.0 }
 0x29f   :  { %352 = vadd.xlane.f32.xlu2 %v351_v0  ;;  %v391_v14 = vmul.f32 0.02, %v389_v10  ;;  %vm390_vm9 = vcmp.ge.f32.partialorder %v389_v10, 0.0  ;;  %v423_v0 = vadd.f32 %v74_v56, %v73_v59 }
 0x2a1   :  { %v392_v15 = vsel %vm390_vm9, %v389_v10, %v391_v14 }
 0x2a2   :  { %v424_v16 = vrot.slane %v392_v15, 1 }
 0x2be   :  { %v139_v1 = vpop.xlane.xlu1 %138 }
 0x2bf   :  { %v148_v2 = vmul.f32 %v2620_v8, %v139_v1 }
 0x2c1   :  { %v150_v3 = vsub.f32 %v55_v50, %v148_v2  ;;  %v66_v50 = vld [vmem:[%s3392_s3] sm:$0xff] }
 0x2c3   :  { %v152_v4 = vmul.f32 %v150_v3, %v150_v3 }
 0x2c5   :  { %v156_v5 = vsel %vm133_vm0, %v152_v4, 0.0 }
 0x2c6   :  { %157 = vadd.xlane.f32.xlu0 %v156_v5  ;;  %v60_v5 = vld [vmem:[%s3390_s1 + $0x20] sm:$0xff] }
 0x312   :  { %v353_v7 = vpop.xlane.xlu2 %352 }
 0x313   :  { %v354_v9 = vadd.f32 %v2745_v61, %v353_v7 }
 0x315   :  { %v356_v11 = vmul.f32 0.02, %v354_v9  ;;  %vm355_vm8 = vcmp.ge.f32.partialorder %v354_v9, 0.0 }
 0x317   :  { %v357_v12 = vsel %vm355_vm8, %v354_v9, %v356_v11 }
 0x318   :  { %395 = vrot.lane.b32.xlu2 %v357_v12, %s2513_s10  ;;  %v403_v13 = vrot.slane %v357_v12, 1  ;;  %v216_v12 = vpop.f32.mrf.mxu1 }
 0x31a   :  { %404 = vrot.lane.b32.xlu0 %v403_v13, %s2513_s10 }
 0x320   :  { %416 = vrot.lane.b32.xlu2 %v392_v15, %s2514_s11 }
 0x322   :  { %425 = vrot.lane.b32.xlu0 %v424_v16, %s2514_s11 }
 0x339   :  { %v158_v21 = vpop.xlane.xlu0 %157 }
 0x33a   :  { %v160_v22 = vmul.f32 %v158_v21, %v2620_v8 }
 0x33c   :  { %v162_v23 = vadd.f32 1e-05, %v160_v22 }
 0x33e   :  { %2398 = vrsqrt.f32 %v162_v23  ;;  %vm179_vm10 = vweird.f32 %v162_v23 }
 0x344   :  { %v2399_v24 = vpop.eup %2398 }
 0x345   :  { %v174_v26 = vmul.f32 %v2399_v24, %v162_v23  ;;  %vm180_vm11 = vweird.f32 %v2399_v24 }
 0x346   :  { %vm181_vm12 = vmor %vm179_vm10, %vm180_vm11 }
 0x347   :  { %v175_v27 = vmul.f32 %v2399_v24, %v174_v26 }
 0x349   :  { %v176_v29 = vmul.f32 0.5, %v175_v27 }
 0x34b   :  { %v177_v30 = vsub.f32 1.5, %v176_v29 }
 0x34d   :  { %v178_v32 = vmul.f32 %v2399_v24, %v177_v30 }
 0x34f   :  { %v182_v35 = vsel %vm181_vm12, %v2399_v24, %v178_v32 }
 0x350   :  { %v184_v36 = vmul.f32 %v182_v35, %v150_v3  ;;  %v432_v3 = vsub.f32 1.0, %v423_v0 }
 0x352   :  { %v187_v44 = vmul.f32 %v185_v28, %v184_v36  ;;  %v433_v10 = vmul.f32 %v432_v3, %v60_v5 }
 0x354   :  { %v190_v45 = vadd.f32 %v188_v31, %v187_v44 }
 0x356   :  { %2258 = vmatmul.msk.f32.gmra.mxu1 %vm133_vm0, %v190_v45  ;;  %526 = vmatpush.msrb.mxu2 %v190_v45 }
 0x357   :  { %609 = vmatpush.msra.mxu1 %v190_v45  ;;  %2269 = vmatmul.msk.f32.vlgmr.msrb.gmra.mxu2 %vm245_vm5, %v65_v46 }
 0x35e   :  { %2259 = vmatmul.msk.f32.vlgmr.msrb.gmra.mxu1 %vm133_vm0, %v2648_v33  ;;  %v67_v33 = vld [vmem:[%s3392_s3 + $0x8] sm:$0xff] }
 0x35f   :  { %v402_v51 = vadd.f32 %v67_v33, %v66_v50 }
 0x361   :  { %v411_v52 = vsub.f32 1.0, %v402_v51 }
 0x363   :  { %v412_v63 = vmul.f32 %v411_v52, %v58_v55 }
 0x366   :  { %2260 = vmatmul.msk.f32.gmra.mxu1 %vm133_vm0, %v190_v45 }
 0x36e   :  { %2272 = vmatmul.msk.f32.vlgmr.msra.gmra.mxu1 %vm245_vm5, %v72_v25 }
 0x372   :  { %v396_v28 = vpop.permute.xlu2 %395 }
 0x373   :  { %2337 = vpush %v396_v28 }
 0x37a   :  { %v417_v48 = vpop.permute.xlu2 %416 }
 0x38c   :  { %v405_v31 = vpop.permute.xlu0 %404 }
 0x38d   :  { %2339 = vpush %v405_v31 }
 0x38e   :  { %2341 = vpush %v417_v48 }
 0x394   :  { %v426_v49 = vpop.permute.xlu0 %425 }
 0x395   :  { %2343 = vpush %v426_v49 }
 0x3a4   :  { %s2338_s5 = spop %2337 }
 0x3a5   :  { %v398_v54 = vstv %s2338_s5 }
 0x3a6   :  { %v400_v60 = vmul.f32 %v398_v54, %v66_v50 }
 0x3be   :  { %s2340_s0 = spop %2339 }
 0x3bf   :  { %v407_v58 = vstv %s2340_s0  ;;  %s2342_s19 = spop %2341  ;;  %s2518_s0 = smov 120  }
 0x3c0   :  { %v409_v62 = vmul.f32 %v407_v58, %v67_v33  ;;  %v419_v4 = vstv %s2342_s19  ;;  %s2521_s19 = smov 112  }
 0x3c1   :  { %v421_v7 = vmul.f32 %v419_v4, %v73_v59 }
 0x3c2   :  { %v410_v1 = vadd.f32 %v409_v62, %v400_v60 }
 0x3c4   :  { %v413_v2 = vadd.f32 %v412_v63, %v410_v1 }
 0x3c6   :  { %s2344_s12 = spop %2343  ;;  %453 = vmatpush.msra.mxu3 %v413_v2  ;;  %v481_v23 = vmul.f32 0.2, %v413_v2 }
 0x3c7   :  { %v428_v6 = vstv %s2344_s12  ;;  %2266 = vmatmul.msk.f32.vlgmr.msra.gmra.mxu3 %vm245_vm5, %v413_v2 }
 0x3c8   :  { %v430_v9 = vmul.f32 %v428_v6, %v74_v56  ;;  %546 = vmatpush.msrb.mxu3 %v2653_v34  ;;  %v63_v34 = vld [vmem:[%s3391_s2 + $0x2] sm:$0x3] }
 0x3ca   :  { %v431_v11 = vadd.f32 %v430_v9, %v421_v7  ;;  %547 = vmatpush.msrb.mxu3 %v2667_v37  ;;  %v2386_v37 = vld [vmem:[%s3397_s8 + $0x48] ss:$0 sm:$0xff]  ;;  %s2517_s8 = smov 8  }
 0x3cc   :  { %v434_v13 = vadd.f32 %v433_v10, %v431_v11  ;;  %548 = vmatpush.msrb.mxu3 %v2675_v38 }
 0x3ce   :  { %476 = vmatpush.msra.mxu0 %v434_v13  ;;  %549 = vmatpush.msrb.mxu3 %v2682_v39 }
 0x3cf   :  { %2267 = vmatmul.msk.f32.vlgmr.msra.gmra.mxu0 %vm245_vm5, %v434_v13  ;;  %v68_v13 = vld [vmem:[%s3392_s3 + $0x10] sm:$0xff] }
 0x3d0   :  { %503 = vmatpush.msrb.mxu0 %v190_v45 }
 0x3d2   :  { %569 = vmatpush.msra.mxu0 %v2690_v40 }
 0x3d3   :  { %v219_v14 = vpop.f32.mrf.mxu1 }
 0x3d4   :  { %570 = vmatpush.msra.mxu0 %v2695_v41  ;;  %v2829_v18 = vadd.f32 %v2381_v17, %v219_v14  ;;  %v75_v14 = vld [vmem:[%s3395_s6 + $0x10] sm:$0xff] }
 0x3d6   :  { %571 = vmatpush.msra.mxu0 %v2701_v42 }
 0x3d7   :  { %2268 = vmatmul.msk.f32.vlgmr.msrb.gmra.mxu0 %vm245_vm5, %v63_v34  ;;  %v76_v34 = vld [vmem:[%s3395_s6 + $0x18] sm:$0xff] }
 0x3d8   :  { %572 = vmatpush.msra.mxu0 %v2708_v43  ;;  %v2837_v43 = vadd.f32 %v2381_v17, %v216_v12  ;;  %v69_v12 = vld [vmem:[%s3392_s3 + $0x18] sm:$0xff]  ;;  %s2526_s3 = smov 56  }
 0x3d9   :  { %v59_v17 = vld [vmem:[%s3390_s1 + $0x18] sm:$0xff] }
 0x3da   :  { %v528_v40 = vpop.f32.mrf.mxu2  ;;  %v2840_v19 = vmul.f32 0.35355338, %v2837_v43 }
 0x3db   :  { %v239_v38 = vpop.f32.mrf.mxu1 }
 0x3dc   :  { %v2821_v39 = vadd.f32 %v2386_v37, %v239_v38 }
 0x3df   :  { %2271 = vmatmul.msk.f32.vlgmr.msra.gmra.mxu0 %vm133_vm0, %v528_v40 }
 0x3e3   :  { %v242_v41 = vpop.f32.mrf.mxu1 }
 0x3e4   :  { %v2846_v20 = vadd.f32 %v2386_v37, %v242_v41  ;;  %v631_v37 = vadd.f32 %v69_v12, %v68_v13  ;;  %v652_v41 = vadd.f32 %v76_v34, %v75_v14 }
 0x3eb   :  { %v611_v15 = vpop.f32.mrf.mxu1 }
 0x3ec   :  { %v614_v16 = vmul.f32 %v2731_v53, %v611_v15 }
 0x3ee   :  { %v615_v42 = vsel %vm385_vm6, %v614_v16, 0.0  ;;  %v640_v16 = vsub.f32 1.0, %v631_v37 }
 0x3ef   :  { %616 = vadd.xlane.f32.xlu0 %v615_v42 }
 0x403   :  { %886 = vrot.lane.b32.xlu0 %v2829_v18, %s2515_s28 }
 0x40b   :  { %858 = vrot.lane.b32.xlu0 %v2829_v18, %s2516_s29 }
 0x413   :  { %829 = vrot.lane.b32.xlu0 %v2829_v18, %s2514_s11 }
 0x41b   :  { %940 = vrot.lane.b32.xlu0 %v2840_v19, %s2512_s30 }
 0x423   :  { %1023 = vrot.lane.b32.xlu0 %v2840_v19, %s2517_s8 }
 0x42b   :  { %1080 = vrot.lane.b32.xlu0 %v2846_v20, %s2518_s0 }
 0x433   :  { %1136 = vrot.lane.b32.xlu0 %v2846_v20, %s2519_s17 }
 0x44a   :  { %v455_v21 = vpop.f32.mrf.mxu3 }
 0x44b   :  { %v482_v22 = vmul.f32 0.8, %v455_v21 }
 0x44c   :  { %v478_v24 = vpop.f32.mrf.mxu0 }
 0x44d   :  { %v483_v26 = vadd.f32 %v482_v22, %v481_v23  ;;  %v61_v22 = vld [vmem:[%s3390_s1 + $0x28] sm:$0xff] }
 0x44f   :  { %v2852_v27 = vadd.f32 %v483_v26, %v478_v24  ;;  %v641_v26 = vmul.f32 %v640_v16, %v59_v17 }
 0x454   :  { %v505_v29 = vpop.f32.mrf.mxu0 }
 0x455   :  { %2270 = vmatmul.msk.f32.vlgmr.msrb.gmra.mxu3 %vm133_vm0, %v505_v29 }
 0x45c   :  { %v574_v30 = vpop.f32.mrf.mxu0 }
 0x45d   :  { %v575_v32 = vadd.f32 %v2720_v47, %v574_v30 }
 0x45f   :  { %578 = vrot.lane.b32.xlu2 %v575_v32, %s2512_s30 }
 0x462   :  { %v617_v47 = vpop.xlane.xlu0 %616 }
 0x463   :  { %v618_v33 = vadd.f32 %v2731_v53, %v617_v47  ;;  %v2878_v53 = vmul.f32 0.35355338, %v2829_v18 }
 0x465   :  { %v620_v51 = vmul.f32 0.02, %v618_v33  ;;  %vm619_vm14 = vcmp.ge.f32.partialorder %v618_v33, 0.0 }
 0x467   :  { %v621_v52 = vsel %vm619_vm14, %v618_v33, %v620_v51 }
 0x475   :  { %v2906_v60 = vpop.permute.xlu0 %886 }
 0x47d   :  { %v859_v1 = vpop.permute.xlu0 %858 }
 0x485   :  { %v830_v5 = vpop.permute.xlu0 %829 }
 0x48d   :  { %v941_v9 = vpop.permute.xlu0 %940 }
 0x495   :  { %v1024_v38 = vpop.permute.xlu0 %1023 }
 0x4b9   :  { %v579_v36 = vpop.permute.xlu2 %578 }
 0x4d8   :  { %v551_v35 = vpop.f32.mrf.mxu3 }
 0x4d9   :  { %v552_v44 = vadd.f32 %v2738_v57, %v551_v35 }
 0x4db   :  { %v581_v45 = vsel %vm133_vm0, %v552_v44, %v579_v36 }
 0x4dc   :  { %2400 = vtanh.f32 %v581_v45 }
 0x4e2   :  { %v2401_v46 = vpop.eup %2400 }
 0x4e3   :  { %v583_v25 = vmul.f32 %v2401_v46, %v2745_v61  ;;  %v1081_v46 = vpop.permute.xlu0 %1080 }
 0x4e5   :  { %v584_v28 = vsel %vm350_vm7, %v583_v25, 0.0 }
 0x4e6   :  { %585 = vadd.xlane.f32.xlu1 %v584_v28 }
 0x4eb   :  { %v1137_v47 = vpop.permute.xlu0 %1136 }
 0x559   :  { %v586_v31 = vpop.xlane.xlu1 %585 }
 0x55a   :  { %v587_v48 = vadd.f32 %v2745_v61, %v586_v31  ;;  %v653_v61 = vrot.slane %v621_v52, 1 }
 0x55c   :  { %v589_v49 = vmul.f32 0.02, %v587_v48  ;;  %vm588_vm13 = vcmp.ge.f32.partialorder %v587_v48, 0.0 }
 0x55e   :  { %v590_v50 = vsel %vm588_vm13, %v587_v48, %v589_v49 }
 0x55f   :  { %624 = vrot.lane.b32.xlu2 %v590_v50, %s2513_s10  ;;  %v632_v57 = vrot.slane %v590_v50, 1  ;;  %v56_v50 = vld [vmem:[%s3390_s1] sm:$0xff] }
 0x561   :  { %633 = vrot.lane.b32.xlu1 %v632_v57, %s2513_s10 }
 0x567   :  { %645 = vrot.lane.b32.xlu2 %v621_v52, %s2514_s11 }
 0x569   :  { %801 = vrot.lane.b32.xlu1 %v2837_v43, %s2520_s18 }
 0x56f   :  { %654 = vrot.lane.b32.xlu2 %v653_v61, %s2514_s11  ;;  %v57_v61 = vld [vmem:[%s3390_s1 + $0x8] sm:$0xff]  ;;  %s2524_s1 = smov 40  }
 0x571   :  { %799 = vrot.lane.b32.xlu1 %v2840_v19, %s2519_s17 }
 0x577   :  { %773 = vrot.lane.b32.xlu2 %v2837_v43, %s2515_s28 }
 0x579   :  { %745 = vrot.lane.b32.xlu1 %v2837_v43, %s2516_s29 }
 0x57f   :  { %771 = vrot.lane.b32.xlu2 %v2840_v19, %s2521_s19 }
 0x581   :  { %912 = vrot.lane.b32.xlu1 %v2878_v53, %s2519_s17 }
 0x587   :  { %914 = vrot.lane.b32.xlu2 %v2829_v18, %s2520_s18 }
 0x589   :  { %856 = vrot.lane.b32.xlu1 %v2878_v53, %s2518_s0 }
 0x58f   :  { %884 = vrot.lane.b32.xlu2 %v2878_v53, %s2521_s19 }
 0x591   :  { %997 = vrot.lane.b32.xlu1 %v2821_v39, %s2521_s19 }
 0x597   :  { %743 = vrot.lane.b32.xlu2 %v2840_v19, %s2518_s0 }
 0x599   :  { %967 = vrot.lane.b32.xlu1 %v2840_v19, %s2522_s20 }
 0x59f   :  { %716 = vrot.lane.b32.xlu2 %v2837_v43, %s2514_s11 }
 0x5a1   :  { %1134 = vrot.lane.b32.xlu1 %v2878_v53, %s2517_s8 }
 0x5a7   :  { %995 = vrot.lane.b32.xlu2 %v2840_v19, %s2523_s21 }
 0x5af   :  { %969 = vrot.lane.b32.xlu2 %v2821_v39, %s2518_s0 }
 0x5b7   :  { %1025 = vrot.lane.b32.xlu2 %v2821_v39, %s2519_s17 }
 0x5b9   :  { %v625_v54 = vpop.permute.xlu2 %624 }
 0x5ba   :  { %2345 = vpush %v625_v54 }
 0x5c1   :  { %v646_v55 = vpop.permute.xlu2 %645 }
 0x5c9   :  { %v655_v56 = vpop.permute.xlu2 %654 }
 0x5d1   :  { %v2904_v58 = vpop.permute.xlu2 %773 }
 0x5d3   :  { %v634_v59 = vpop.permute.xlu1 %633 }
 0x5d4   :  { %2347 = vpush %v634_v59 }
 0x5d5   :  { %2349 = vpush %v646_v55 }
 0x5d6   :  { %2351 = vpush %v655_v56 }
 0x5d9   :  { %v2908_v62 = vpop.permute.xlu2 %771 }
 0x5db   :  { %v2910_v63 = vpop.permute.xlu1 %801 }
 0x5e1   :  { %v2912_v0 = vpop.permute.xlu2 %914 }
 0x5e3   :  { %v2914_v2 = vpop.permute.xlu1 %799 }
 0x5e9   :  { %v2916_v3 = vpop.permute.xlu2 %884 }
 0x5eb   :  { %v746_v4 = vpop.permute.xlu1 %745  ;;  %s2346_s17 = spop %2345 }
 0x5ec   :  { %2277 = vmatpush.xpose.msk.msrb.mxu1 %vm245_vm5, %v746_v4  ;;  %v627_v42 = vstv %s2346_s17 }
 0x5ed   :  { %v629_v23 = vmul.f32 %v627_v42, %v68_v13 }
 0x5f0   :  { %2285 = vmatpush.xpose.msk.msra.mxu1 %vm245_vm5, %v859_v1 }
 0x5f1   :  { %v744_v6 = vpop.permute.xlu2 %743 }
 0x5f2   :  { %2278 = vmatmul.msk.f32.vlgmr.msrb.gmra.mxu1 %vm245_vm5, %v744_v6 }
 0x5f3   :  { %v2921_v7 = vpop.permute.xlu1 %912 }
 0x5f9   :  { %v717_v10 = vpop.permute.xlu2 %716 }
 0x5fa   :  { %2275 = vmatpush.xpose.msk.msrb.mxu0 %vm245_vm5, %v717_v10 }
 0x5fb   :  { %v857_v11 = vpop.permute.xlu1 %856 }
 0x5fc   :  { %2286 = vmatmul.msk.f32.vlgmr.msra.gmra.mxu1 %vm245_vm5, %v857_v11 }
 0x5fd   :  { %2276 = vmatmul.msk.f32.vlgmr.msrb.gmra.mxu0 %vm245_vm5, %v2840_v19  ;;  %v661_v19 = vsub.f32 1.0, %v652_v41 }
 0x5fe   :  { %2283 = vmatpush.xpose.msk.msra.mxu0 %vm245_vm5, %v830_v5 }
 0x5ff   :  { %v662_v44 = vmul.f32 %v661_v19, %v61_v22 }
 0x601   :  { %v996_v40 = vpop.permute.xlu2 %995 }
 0x602   :  { %2291 = vmatpush.xpose.msk.msrb.mxu0 %vm245_vm5, %v2821_v39 }
 0x603   :  { %v998_v15 = vpop.permute.xlu1 %997 }
 0x605   :  { %s2348_s22 = spop %2347  ;;  %2284 = vmatmul.msk.f32.vlgmr.msra.gmra.mxu0 %vm245_vm5, %v2878_v53 }
 0x606   :  { %v636_v21 = vstv %s2348_s22  ;;  %s2350_s24 = spop %2349  ;;  %2299 = vmatpush.xpose.msk.msra.mxu0 %vm245_vm5, %v2846_v20 }
 0x607   :  { %v638_v24 = vmul.f32 %v636_v21, %v69_v12  ;;  %v648_v29 = vstv %s2350_s24  ;;  %s2352_s5 = spop %2351 }
 0x608   :  { %v650_v30 = vmul.f32 %v648_v29, %v75_v14  ;;  %v657_v32 = vstv %s2352_s5  ;;  %s2529_s5 = smov [#allocation2]  }
 0x609   :  { %v639_v35 = vadd.f32 %v638_v24, %v629_v23  ;;  %v659_v36 = vmul.f32 %v657_v32, %v76_v34  ;;  %v970_v45 = vpop.permute.xlu2 %969  ;;  %s2243_s26 = sshll.u32 %s2529_s5, 4  ;;  %s2244_s26 = int_to_ptr.vmem [resolvable:$true] %s2243_s26 }
 0x60a   :  { %2293 = vmatpush.xpose.msk.msrb.mxu1 %vm245_vm5, %v970_v45  ;;  %v2373_v45 = vpack.i.bf16 %v2829_v18, %v2837_v43 }
 0x60b   :  { %v642_v25 = vadd.f32 %v641_v26, %v639_v35  ;;  %v660_v28 = vadd.f32 %v659_v36, %v650_v30  ;;  %v968_v31 = vpop.permute.xlu1 %967 }
 0x60d   :  { %v663_v48 = vadd.f32 %v662_v44, %v660_v28  ;;  %682 = vmatpush.msra.mxu2 %v642_v25  ;;  %2292 = vmatmul.msk.f32.vlgmr.msrb.gmra.mxu0 %vm245_vm5, %v941_v9 }
 0x60e   :  { %2301 = vmatpush.xpose.msk.msra.mxu1 %vm245_vm5, %v1081_v46  ;;  %2273 = vmatmul.msk.f32.vlgmr.msra.gmra.mxu2 %vm245_vm5, %v642_v25 }
 0x60f   :  { %2294 = vmatmul.msk.f32.vlgmr.msrb.gmra.mxu1 %vm245_vm5, %v968_v31  ;;  %705 = vmatpush.msra.mxu3 %v663_v48 }
 0x610   :  { %2279 = vmatpush.xpose.msk.msrb.mxu2 %vm245_vm5, %v2904_v58  ;;  %2274 = vmatmul.msk.f32.vlgmr.msra.gmra.mxu3 %vm245_vm5, %v663_v48 }
 0x611   :  { %2281 = vmatpush.xpose.msk.msrb.mxu3 %vm245_vm5, %v2910_v63  ;;  %v1026_v49 = vpop.permute.xlu2 %1025 }
 0x613   :  { %v1135_v33 = vpop.permute.xlu1 %1134 }
 0x614   :  { %2287 = vmatpush.xpose.msk.msra.mxu2 %vm245_vm5, %v2906_v60 }
 0x615   :  { %2289 = vmatpush.xpose.msk.msra.mxu3 %vm245_vm5, %v2912_v0 }
 0x616   :  { %2280 = vmatmul.msk.f32.vlgmr.msrb.gmra.mxu2 %vm245_vm5, %v2908_v62 }
 0x618   :  { %2295 = vmatpush.xpose.msk.msrb.mxu2 %vm245_vm5, %v998_v15  ;;  %2282 = vmatmul.msk.f32.vlgmr.msrb.gmra.mxu3 %vm245_vm5, %v2914_v2  ;;  %v710_v2 = vmul.f32 0.2, %v642_v25 }
 0x619   :  { %2297 = vmatpush.xpose.msk.msrb.mxu3 %vm245_vm5, %v1026_v49 }
 0x61e   :  { %2288 = vmatmul.msk.f32.vlgmr.msra.gmra.mxu2 %vm245_vm5, %v2916_v3 }
 0x620   :  { %2290 = vmatmul.msk.f32.vlgmr.msra.gmra.mxu3 %vm245_vm5, %v2921_v7 }
 0x621   :  { %2305 = vmatpush.xpose.msk.msra.mxu3 %vm245_vm5, %v1137_v47 }
 0x626   :  { %2296 = vmatmul.msk.f32.vlgmr.msrb.gmra.mxu2 %vm245_vm5, %v996_v40 }
 0x628   :  { %2298 = vmatmul.msk.f32.vlgmr.msrb.gmra.mxu3 %vm245_vm5, %v1024_v38 }
 0x630   :  { %2306 = vmatmul.msk.f32.vlgmr.msra.gmra.mxu3 %vm245_vm5, %v1135_v33 }
 0x66f   :  { %v768_v57 = vpop.f32.mrf.mxu1 }
 0x670   :  { %v769_v51 = vadd.f32 %v768_v57, %v56_v50 }
 0x672   :  { %v1165_v52 = vsel %vm245_vm5, %v769_v51, -inf }
 0x673   :  { %1166 = vmax.xlane.f32.xlu2 %v1165_v52 }
 0x679   :  { %v881_v54 = vpop.f32.mrf.mxu1 }
 0x67a   :  { %v882_v55 = vadd.f32 %v881_v54, %v57_v61  ;;  %v740_v56 = vpop.f32.mrf.mxu0 }
 0x67b   :  { %v2987_v58 = vadd.f32 %v740_v56, %v56_v50 }
 0x67c   :  { %v1177_v59 = vsel %vm245_vm5, %v882_v55, -inf }
 0x67d   :  { %1178 = vmax.xlane.f32.xlu0 %v1177_v59  ;;  %v1162_v37 = vsel %vm245_vm5, %v2987_v58, -inf }
 0x682   :  { %v853_v60 = vpop.f32.mrf.mxu0 }
 0x683   :  { %v2990_v62 = vadd.f32 %v853_v60, %v57_v61 }
 0x685   :  { %v1174_v63 = vsel %vm245_vm5, %v2990_v62, -inf }
 0x686   :  { %1175 = vmax.xlane.f32.xlu0 %v1174_v63 }
 0x68a   :  { %v964_v57 = vpop.f32.mrf.mxu0 }
 0x68b   :  { %1108 = vrot.lane.b32.xlu2 %v2846_v20, %s2521_s19  ;;  %s2525_s19 = smov 48  }
 0x68c   :  { %v992_v63 = vpop.f32.mrf.mxu1 }
 0x691   :  { %v684_v0 = vpop.f32.mrf.mxu2 }
 0x692   :  { %v711_v1 = vmul.f32 0.8, %v684_v0  ;;  %v3059_v0 = vadd.f32 %v992_v63, %v2852_v27 }
 0x693   :  { %v707_v3 = vpop.f32.mrf.mxu3  ;;  %1078 = vrot.lane.b32.xlu2 %v2878_v53, %s2522_s20 }
 0x694   :  { %v712_v4 = vadd.f32 %v711_v1, %v710_v2  ;;  %v1189_v1 = vsel %vm245_vm5, %v3059_v0, -inf }
 0x696   :  { %v2998_v5 = vadd.f32 %v712_v4, %v707_v3 }
 0x699   :  { %v796_v6 = vpop.f32.mrf.mxu2 }
 0x69a   :  { %v797_v7 = vadd.f32 %v796_v6, %v56_v50 }
 0x69b   :  { %v824_v9 = vpop.f32.mrf.mxu3  ;;  %1106 = vrot.lane.b32.xlu2 %v2878_v53, %s2523_s21 }
 0x69c   :  { %v825_v10 = vadd.f32 %v824_v9, %v56_v50  ;;  %v1168_v11 = vsel %vm245_vm5, %v797_v7, -inf }
 0x69d   :  { %1169 = vmax.xlane.f32.xlu0 %v1168_v11 }
 0x69e   :  { %v1171_v12 = vsel %vm245_vm5, %v825_v10, -inf }
 0x69f   :  { %1172 = vmax.xlane.f32.xlu1 %v1171_v12 }
 0x6a1   :  { %v909_v24 = vpop.f32.mrf.mxu2 }
 0x6a2   :  { %v910_v29 = vadd.f32 %v909_v24, %v57_v61 }
 0x6a3   :  { %v937_v13 = vpop.f32.mrf.mxu3 }
 0x6a4   :  { %v3004_v14 = vadd.f32 %v937_v13, %v57_v61  ;;  %v1180_v30 = vsel %vm245_vm5, %v910_v29, -inf }
 0x6a6   :  { %v1183_v34 = vsel %vm245_vm5, %v3004_v14, -inf }
 0x6a7   :  { %1184 = vmax.xlane.f32.xlu1 %v1183_v34 }
 0x6a9   :  { %v1020_v9 = vpop.f32.mrf.mxu2 }
 0x6ab   :  { %v1048_v2 = vpop.f32.mrf.mxu3 }
 0x6ac   :  { %v3064_v3 = vadd.f32 %v1048_v2, %v2852_v27 }
 0x6b1   :  { %1051 = vrot.lane.b32.xlu0 %v2878_v53, %s2512_s30 }
 0x6c0   :  { %1416 = vrot.lane.b32.xlu1 %v2837_v43, %s2524_s1 }
 0x6c4   :  { %1163 = vmax.xlane.f32.xlu2 %v1162_v37 }
 0x6dc   :  { %1390 = vrot.lane.b32.xlu2 %v2837_v43, %s2525_s19 }
 0x6e6   :  { %v1167_v38 = vpop.xlane.xlu2 %1166 }
 0x6e7   :  { %v1211_v40 = vsub.f32 %v769_v51, %v1167_v38  ;;  %v3045_v51 = vadd.f32 %v964_v57, %v2852_v27 }
 0x6e9   :  { %v1228_v41 = vmul.f32 1.442695, %v1211_v40  ;;  %v1186_v61 = vsel %vm245_vm5, %v3045_v51, -inf }
 0x6eb   :  { %2402 = vpow2.f32 %v1228_v41 }
 0x6ee   :  { %v1109_v15 = vpop.permute.xlu2 %1108 }
 0x6ef   :  { %2303 = vmatpush.xpose.msk.msra.mxu2 %vm245_vm5, %v1109_v15 }
 0x6f0   :  { %v1179_v53 = vpop.xlane.xlu0 %1178 }
 0x6f1   :  { %v3017_v16 = vpop.eup %2402  ;;  %v1215_v42 = vsub.f32 %v882_v55, %v1179_v53 }
 0x6f2   :  { %v1261_v17 = vsel %vm245_vm5, %v3017_v16, 0.0 }
 0x6f3   :  { %v1236_v19 = vmul.f32 1.442695, %v1215_v42  ;;  %1262 = vadd.xlane.f32.xlu0 %v1261_v17 }
 0x6f5   :  { %2404 = vpow2.f32 %v1236_v19 }
 0x6f6   :  { %v1079_v21 = vpop.permute.xlu2 %1078 }
 0x6f7   :  { %2302 = vmatmul.msk.f32.vlgmr.msra.gmra.mxu1 %vm245_vm5, %v1079_v21 }
 0x6f9   :  { %v3028_v32 = vpop.xlane.xlu0 %1175 }
 0x6fb   :  { %v3022_v22 = vpop.eup %2404 }
 0x6fc   :  { %v1273_v23 = vsel %vm245_vm5, %v3022_v22, 0.0 }
 0x6fd   :  { %1274 = vadd.xlane.f32.xlu0 %v1273_v23 }
 0x6fe   :  { %v1107_v26 = vpop.permute.xlu2 %1106 }
 0x6ff   :  { %2304 = vmatmul.msk.f32.vlgmr.msra.gmra.mxu2 %vm245_vm5, %v1107_v26 }
 0x705   :  { %1181 = vmax.xlane.f32.xlu2 %v1180_v30 }
 0x710   :  { %v1170_v35 = vpop.xlane.xlu0 %1169 }
 0x711   :  { %v1212_v36 = vsub.f32 %v797_v7, %v1170_v35  ;;  %1537 = vrot.lane.b32.xlu0 %v2829_v18, %s2524_s1 }
 0x712   :  { %v1173_v28 = vpop.xlane.xlu1 %1172 }
 0x713   :  { %v1230_v44 = vmul.f32 1.442695, %v1212_v36  ;;  %v1213_v47 = vsub.f32 %v825_v10, %v1173_v28 }
 0x715   :  { %2406 = vpow2.f32 %v1230_v44  ;;  %v1232_v50 = vmul.f32 1.442695, %v1213_v47 }
 0x717   :  { %2408 = vpow2.f32 %v1232_v50 }
 0x719   :  { %2374 = vrot.lane.b32.xlu0 %v2373_v45, %s2513_s10 }
 0x71a   :  { %v1185_v48 = vpop.xlane.xlu1 %1184 }
 0x71b   :  { %v3035_v46 = vpop.eup %2406  ;;  %v1217_v10 = vsub.f32 %v3004_v14, %v1185_v48 }
 0x71c   :  { %v1264_v25 = vsel %vm245_vm5, %v3035_v46, 0.0 }
 0x71d   :  { %1265 = vadd.xlane.f32.xlu1 %v1264_v25  ;;  %1364 = vrot.lane.b32.xlu2 %v2837_v43, %s2526_s3  ;;  %v3047_v43 = vpop.eup %2408  ;;  %v1240_v34 = vmul.f32 1.442695, %v1217_v10 }
 0x71e   :  { %v1267_v54 = vsel %vm245_vm5, %v3047_v43, 0.0 }
 0x723   :  { %v1052_v31 = vpop.permute.xlu0 %1051 }
 0x724   :  { %2300 = vmatmul.msk.f32.vlgmr.msra.gmra.mxu0 %vm245_vm5, %v1052_v31  ;;  %v1214_v31 = vsub.f32 %v2990_v62, %v3028_v32 }
 0x732   :  { %v1417_v49 = vpop.permute.xlu1 %1416 }
 0x733   :  { %1437 = vmatpush.msrb.mxu3 %v1417_v49  ;;  %v1234_v49 = vmul.f32 1.442695, %v1214_v31 }
 0x736   :  { %1511 = vrot.lane.b32.xlu1 %v2829_v18, %s2525_s19 }
 0x737   :  { %v1164_v33 = vpop.xlane.xlu2 %1163 }
 0x738   :  { %v1210_v55 = vsub.f32 %v2987_v58, %v1164_v33  ;;  %v1195_v58 = vsel %vm245_vm5, %v3064_v3, -inf }
 0x73a   :  { %v1226_v56 = vmul.f32 1.442695, %v1210_v55 }
 0x73c   :  { %2410 = vpow2.f32 %v1226_v56 }
 0x73f   :  { %v1391_v52 = vpop.permute.xlu2 %1390 }
 0x740   :  { %1411 = vmatpush.msrb.mxu2 %v1391_v52 }
 0x742   :  { %v3054_v59 = vpop.eup %2410 }
 0x743   :  { %1187 = vmax.xlane.f32.xlu0 %v1186_v61  ;;  %v1258_v60 = vsel %vm245_vm5, %v3054_v59, 0.0 }
 0x746   :  { %1268 = vadd.xlane.f32.xlu2 %v1267_v54 }
 0x760   :  { %1259 = vadd.xlane.f32.xlu1 %v1258_v60  ;;  %v1159_v60 = vpop.f32.mrf.mxu3 }
 0x766   :  { %v1263_v4 = vpop.xlane.xlu0 %1262 }
 0x767   :  { %2412 = vrcp.f32 %v1263_v4 }
 0x768   :  { %1190 = vmax.xlane.f32.xlu1 %v1189_v1  ;;  %v3116_v1 = vadd.f32 %v1159_v60, %v2998_v5 }
 0x76a   :  { %v1207_v2 = vsel %vm245_vm5, %v3116_v1, -inf }
 0x76d   :  { %v2413_v13 = vpop.eup %2412 }
 0x76e   :  { %v1323_v37 = vmul.f32 %v2413_v13, %v3017_v16 }
 0x770   :  { %1196 = vmax.xlane.f32.xlu1 %v1195_v58  ;;  %v3069_v11 = vpop.xlane.xlu0 %1274 }
 0x774   :  { %v1103_v52 = vpop.f32.mrf.mxu1 }
 0x778   :  { %v1182_v6 = vpop.xlane.xlu2 %1181 }
 0x779   :  { %v1216_v7 = vsub.f32 %v910_v29, %v1182_v6 }
 0x77b   :  { %v1238_v12 = vmul.f32 1.442695, %v1216_v7 }
 0x77d   :  { %2414 = vpow2.f32 %v1238_v12 }
 0x77e   :  { %2416 = vpow2.f32 %v1240_v34 }
 0x780   :  { %v1365_v38 = vpop.permute.xlu2 %1364 }
 0x781   :  { %1385 = vmatpush.msrb.mxu1 %v1365_v38 }
 0x782   :  { %v1131_v40 = vpop.f32.mrf.mxu2  ;;  %2308 = vmatmul.msk.f32.vlgmr.msrb.gmra.mxu1 %vm245_vm5, %v1323_v37 }
 0x783   :  { %v3073_v41 = vpop.eup %2414  ;;  %v3076_v15 = vadd.f32 %v1131_v40, %v2998_v5  ;;  %v1538_v14 = vpop.permute.xlu0 %1537 }
 0x784   :  { %1558 = vmatpush.msra.mxu3 %v1538_v14  ;;  %v1276_v53 = vsel %vm245_vm5, %v3073_v41, 0.0  ;;  %v3082_v42 = vpop.eup %2416 }
 0x785   :  { %1277 = vadd.xlane.f32.xlu2 %v1276_v53  ;;  %v1204_v16 = vsel %vm245_vm5, %v3076_v15, -inf  ;;  %v1279_v23 = vsel %vm245_vm5, %v3082_v42, 0.0 }
 0x786   :  { %1205 = vmax.xlane.f32.xlu1 %v1204_v16 }
 0x78b   :  { %v2375_v17 = vpop.permute.xlu0 %2374 }
 0x78c   :  { %v2377_v19 = vunpack.i.h.bf16 %v2375_v17  ;;  %v2376_v21 = vunpack.i.l.bf16 %v2375_v17 }
 0x78d   :  { %1280 = vadd.xlane.f32.xlu2 %v1279_v23 }
 0x78e   :  { %1359 = vmatpush.msrb.mxu0 %v2376_v21 }
 0x790   :  { %1480 = vmatpush.msra.mxu0 %v2377_v19  ;;  %v1266_v24 = vpop.xlane.xlu1 %1265 }
 0x791   :  { %2418 = vrcp.f32 %v1266_v24 }
 0x797   :  { %v2419_v26 = vpop.eup %2418 }
 0x798   :  { %v1324_v29 = vmul.f32 %v2419_v26, %v3035_v46 }
 0x79a   :  { %2309 = vmatmul.msk.f32.vlgmr.msrb.gmra.mxu2 %vm245_vm5, %v1324_v29 }
 0x7a1   :  { %v1075_v30 = vpop.f32.mrf.mxu0 }
 0x7a2   :  { %v3089_v35 = vadd.f32 %v1075_v30, %v2998_v5 }
 0x7a4   :  { %v1198_v36 = vsel %vm245_vm5, %v3089_v35, -inf }
 0x7a5   :  { %1199 = vmax.xlane.f32.xlu0 %v1198_v36  ;;  %1485 = vrot.lane.b32.xlu2 %v2829_v18, %s2526_s3 }
 0x7a8   :  { %v1512_v44 = vpop.permute.xlu1 %1511 }
 0x7a9   :  { %1532 = vmatpush.msra.mxu2 %v1512_v44 }
 0x7b6   :  { %v1188_v45 = vpop.xlane.xlu0 %1187 }
 0x7b7   :  { %v1218_v25 = vsub.f32 %v3045_v51, %v1188_v45  ;;  %v3106_v51 = vadd.f32 %v1020_v9, %v2852_v27 }
 0x7b9   :  { %v1242_v28 = vmul.f32 1.442695, %v1218_v25  ;;  %v1269_v46 = vpop.xlane.xlu2 %1268  ;;  %v1192_v32 = vsel %vm245_vm5, %v3106_v51, -inf }
 0x7ba   :  { %2420 = vrcp.f32 %v1269_v46 }
 0x7bb   :  { %2422 = vpow2.f32 %v1242_v28 }
 0x7bc   :  { %2424 = vpow2.f32 %v1234_v49 }
 0x7c0   :  { %v2421_v48 = vpop.eup %2420 }
 0x7c1   :  { %v3098_v47 = vpop.eup %2422  ;;  %v1325_v33 = vmul.f32 %v2421_v48, %v3047_v43  ;;  %v1104_v43 = vadd.f32 %v1103_v52, %v2998_v5 }
 0x7c2   :  { %v1282_v18 = vsel %vm245_vm5, %v3098_v47, 0.0  ;;  %v2425_v50 = vpop.eup %2424 }
 0x7c3   :  { %1283 = vadd.xlane.f32.xlu1 %v1282_v18  ;;  %2310 = vmatmul.msk.f32.vlgmr.msrb.gmra.mxu3 %vm245_vm5, %v1325_v33  ;;  %v1270_v57 = vsel %vm245_vm5, %v2425_v50, 0.0  ;;  %v1201_v27 = vsel %vm245_vm5, %v1104_v43, -inf }
 0x7ce   :  { %1271 = vadd.xlane.f32.xlu2 %v1270_v57 }
 0x7d3   :  { %v1260_v62 = vpop.xlane.xlu1 %1259 }
 0x7d4   :  { %2426 = vrcp.f32 %v1260_v62 }
 0x7d6   :  { %1193 = vmax.xlane.f32.xlu2 %v1192_v32 }
 0x7da   :  { %v2427_v61 = vpop.eup %2426 }
 0x7db   :  { %v1322_v54 = vmul.f32 %v2427_v61, %v3054_v59  ;;  %v1191_v55 = vpop.xlane.xlu1 %1190 }
 0x7dc   :  { %v1219_v56 = vsub.f32 %v3059_v0, %v1191_v55 }
 0x7dd   :  { %2307 = vmatmul.msk.f32.vlgmr.msrb.gmra.mxu0 %vm245_vm5, %v1322_v54 }
 0x7de   :  { %1202 = vmax.xlane.f32.xlu2 %v1201_v27  ;;  %v1244_v63 = vmul.f32 1.442695, %v1219_v56 }
 0x7e0   :  { %2428 = vpow2.f32 %v1244_v63 }
 0x7e3   :  { %v1197_v34 = vpop.xlane.xlu1 %1196 }
 0x7e4   :  { %v1221_v29 = vsub.f32 %v3064_v3, %v1197_v34 }
 0x7e6   :  { %1208 = vmax.xlane.f32.xlu2 %v1207_v2  ;;  %v2429_v58 = vpop.eup %2428  ;;  %v1248_v36 = vmul.f32 1.442695, %v1221_v29 }
 0x7e7   :  { %v1285_v59 = vsel %vm245_vm5, %v2429_v58, 0.0 }
 0x7ee   :  { %1286 = vadd.xlane.f32.xlu2 %v1285_v59  ;;  %v91_v59 = vld [vmem:[%s3398_s9 + $0x18] sm:$0xff] }
 0x7ef   :  { %1597 = vmatpush.msrb.mxu0 %v91_v59 }
 0x7f8   :  { %v1278_v0 = vpop.xlane.xlu2 %1277 }
 0x7f9   :  { %2430 = vrcp.f32 %v1278_v0  ;;  %v1206_v37 = vpop.xlane.xlu1 %1205 }
 0x7fa   :  { %2432 = vrcp.f32 %v3069_v11  ;;  %v1224_v38 = vsub.f32 %v3076_v15, %v1206_v37 }
 0x7fc   :  { %v1254_v40 = vmul.f32 1.442695, %v1224_v38 }
 0x7ff   :  { %v2431_v4 = vpop.eup %2430  ;;  %v1387_v6 = vpop.f32.mrf.mxu1 }
 0x800   :  { %v1328_v7 = vmul.f32 %v2431_v4, %v3073_v41  ;;  %1443 = vrot.lane.b32.xlu1 %v1387_v6, %s2517_s8  ;;  %v1281_v5 = vpop.xlane.xlu2 %1280  ;;  %v2433_v9 = vpop.eup %2432  ;;  %v88_v6 = vld [vmem:[%s3398_s9] sm:$0xff] }
 0x801   :  { %2434 = vrcp.f32 %v1281_v5  ;;  %v1327_v12 = vmul.f32 %v2433_v9, %v3022_v22 }
 0x802   :  { %2313 = vmatmul.msk.f32.vlgmr.msra.gmra.mxu2 %vm245_vm5, %v1328_v7  ;;  %2436 = vpow2.f32 %v1254_v40 }
 0x806   :  { %1634 = vrot.lane.b32.xlu2 %v2821_v39, %s2516_s29 }
 0x807   :  { %v2435_v10 = vpop.eup %2434 }
 0x808   :  { %v1329_v13 = vmul.f32 %v2435_v10, %v3082_v42  ;;  %1608 = vrot.lane.b32.xlu1 %v2821_v39, %s2514_s11  ;;  %v1486_v11 = vpop.permute.xlu2 %1485  ;;  %v3136_v22 = vpop.eup %2436 }
 0x809   :  { %1506 = vmatpush.msra.mxu1 %v1486_v11  ;;  %v1300_v41 = vsel %vm245_vm5, %v3136_v22, 0.0 }
 0x80a   :  { %2312 = vmatmul.msk.f32.vlgmr.msra.gmra.mxu1 %vm245_vm5, %v1327_v12  ;;  %2314 = vmatmul.msk.f32.vlgmr.msra.gmra.mxu3 %vm245_vm5, %v1329_v13 }
 0x810   :  { %1660 = vrot.lane.b32.xlu1 %v2821_v39, %s2515_s28 }
 0x818   :  { %v1200_v56 = vpop.xlane.xlu0 %1199 }
 0x819   :  { %v1222_v27 = vsub.f32 %v3089_v35, %v1200_v56  ;;  %v90_v35 = vld [vmem:[%s3398_s9 + $0x10] sm:$0xff] }
 0x81a   :  { %1598 = vmatpush.msrb.mxu0 %v90_v35 }
 0x81b   :  { %v1250_v60 = vmul.f32 1.442695, %v1222_v27 }
 0x81d   :  { %v1413_v32 = vpop.f32.mrf.mxu2 }
 0x836   :  { %v1284_v49 = vpop.xlane.xlu1 %1283 }
 0x83a   :  { %1301 = vadd.xlane.f32.xlu1 %v1300_v41 }
 0x841   :  { %v1272_v14 = vpop.xlane.xlu2 %1271 }
 0x842   :  { %2438 = vrcp.f32 %v1272_v14 }
 0x846   :  { %v1439_v52 = vpop.f32.mrf.mxu3 }
 0x848   :  { %v2439_v53 = vpop.eup %2438 }
 0x849   :  { %v1326_v16 = vmul.f32 %v2439_v53, %v2425_v50  ;;  %v1194_v42 = vpop.xlane.xlu2 %1193 }
 0x84a   :  { %v1220_v15 = vsub.f32 %v3106_v51, %v1194_v42 }
 0x84b   :  { %2311 = vmatmul.msk.f32.vlgmr.msra.gmra.mxu0 %vm245_vm5, %v1326_v16 }
 0x84c   :  { %v1246_v23 = vmul.f32 1.442695, %v1220_v15 }
 0x851   :  { %v1203_v17 = vpop.xlane.xlu2 %1202 }
 0x852   :  { %v1223_v19 = vsub.f32 %v1104_v43, %v1203_v17 }
 0x853   :  { %1805 = vrot.lane.b32.xlu1 %v2846_v20, %s2520_s18 }
 0x854   :  { %v1252_v21 = vmul.f32 1.442695, %v1223_v19 }
 0x856   :  { %2440 = vpow2.f32 %v1252_v21 }
 0x857   :  { %2442 = vpow2.f32 %v1246_v23 }
 0x859   :  { %v1209_v24 = vpop.xlane.xlu2 %1208 }
 0x85a   :  { %v1361_v14 = vpop.f32.mrf.mxu0 }
 0x85c   :  { %v3144_v26 = vpop.eup %2440 }
 0x85d   :  { %v1297_v30 = vsel %vm245_vm5, %v3144_v26, 0.0  ;;  %v2443_v45 = vpop.eup %2442 }
 0x85e   :  { %1298 = vadd.xlane.f32.xlu0 %v1297_v30  ;;  %v1288_v25 = vsel %vm245_vm5, %v2443_v45, 0.0 }
 0x861   :  { %v1287_v44 = vpop.xlane.xlu2 %1286 }
 0x862   :  { %2444 = vrcp.f32 %v1287_v44 }
 0x863   :  { %2446 = vpow2.f32 %v1248_v36 }
 0x864   :  { %2448 = vrcp.f32 %v1284_v49 }
 0x866   :  { %1289 = vadd.xlane.f32.xlu0 %v1288_v25 }
 0x868   :  { %v2445_v28 = vpop.eup %2444 }
 0x869   :  { %v1331_v46 = vmul.f32 %v2445_v28, %v2429_v58  ;;  %v1635_v31 = vpop.permute.xlu2 %1634  ;;  %v3150_v48 = vpop.eup %2446 }
 0x86a   :  { %1655 = vmatpush.msrb.mxu2 %v1635_v31  ;;  %v1291_v3 = vsel %vm245_vm5, %v3150_v48, 0.0  ;;  %v2449_v18 = vpop.eup %2448 }
 0x86b   :  { %2318 = vmatmul.msk.f32.vlgmr.msrb.gmra.mxu2 %vm245_vm5, %v1331_v46  ;;  %v1330_v50 = vmul.f32 %v2449_v18, %v3098_v47 }
 0x86e   :  { %1292 = vadd.xlane.f32.xlu0 %v1291_v3 }
 0x872   :  { %v3155_v33 = vpop.permute.xlu1 %1443 }
 0x873   :  { %v1454_v53 = vsel %vm245_vm5, %v1361_v14, %v3155_v33  ;;  %v112_v14 = vld [vmem:[%s3402_s13 + $0x10] sm:$0xff] }
 0x87a   :  { %v1609_v57 = vpop.permute.xlu1 %1608 }
 0x87b   :  { %1629 = vmatpush.msrb.mxu1 %v1609_v57 }
 0x87c   :  { %2317 = vmatmul.msk.f32.vlgmr.msrb.gmra.mxu1 %vm245_vm5, %v1330_v50  ;;  %v3223_v50 = vld [vmem:[%s3398_s9 + $0x20] ss:$0 sm:$0xff] }
 0x882   :  { %v1661_v51 = vpop.permute.xlu1 %1660  ;;  %1686 = vrot.lane.b32.xlu0 %v2821_v39, %s2520_s18  ;;  %v1225_v39 = vsub.f32 %v3116_v1, %v1209_v24 }
 0x883   :  { %1681 = vmatpush.msrb.mxu3 %v1661_v51 }
 0x884   :  { %v1256_v61 = vmul.f32 1.442695, %v1225_v39  ;;  %v93_v39 = vld [vmem:[%s3398_s9 + $0x28] sm:$0xff] }
 0x885   :  { %v1534_v47 = vpop.f32.mrf.mxu2 }
 0x886   :  { %2450 = vpow2.f32 %v1256_v61 }
 0x887   :  { %v1508_v62 = vpop.f32.mrf.mxu1  ;;  %2452 = vpow2.f32 %v1250_v60 }
 0x888   :  { %1564 = vrot.lane.b32.xlu2 %v1508_v62, %s2517_s8 }
 0x88a   :  { %1753 = vrot.lane.b32.xlu0 %v2846_v20, %s2516_s29 }
 0x88c   :  { %v3171_v54 = vpop.eup %2450 }
 0x88d   :  { %v1560_v43 = vpop.f32.mrf.mxu3  ;;  %v1303_v55 = vsel %vm245_vm5, %v3171_v54, 0.0  ;;  %v3176_v63 = vpop.eup %2452 }
 0x88e   :  { %v1294_v1 = vsel %vm245_vm5, %v3176_v63, 0.0 }
 0x890   :  { %1447 = vrot.lane.b32.xlu2 %v1413_v32, %s2523_s21 }
 0x892   :  { %1451 = vrot.lane.b32.xlu0 %v1439_v52, %s2522_s20  ;;  %v96_v52 = vld [vmem:[%s3398_s9 + $0x40] sm:$0xff] }
 0x89a   :  { %1568 = vrot.lane.b32.xlu0 %v1534_v47, %s2523_s21  ;;  %v95_v47 = vld [vmem:[%s3398_s9 + $0x38] sm:$0xff] }
 0x8a2   :  { %1572 = vrot.lane.b32.xlu0 %v1560_v43, %s2522_s20  ;;  %v94_v43 = vld [vmem:[%s3398_s9 + $0x30] sm:$0xff] }
 0x8aa   :  { %1779 = vrot.lane.b32.xlu0 %v2846_v20, %s2515_s28 }
 0x8ad   :  { %v1302_v5 = vpop.xlane.xlu1 %1301 }
 0x8b9   :  { %1304 = vadd.xlane.f32.xlu2 %v1303_v55 }
 0x8c5   :  { %v1806_v11 = vpop.permute.xlu1 %1805 }
 0x8c8   :  { %v1482_v15 = vpop.f32.mrf.mxu0 }
 0x8d1   :  { %v1299_v2 = vpop.xlane.xlu0 %1298  ;;  %1727 = vrot.lane.b32.xlu2 %v2846_v20, %s2514_s11  ;;  %v89_v20 = vld [vmem:[%s3398_s9 + $0x8] sm:$0xff] }
 0x8d2   :  { %1599 = vmatpush.msrb.mxu0 %v89_v20  ;;  %v2388_v20 = vld [vmem:[%s3398_s9 + $0x48] ss:$0 sm:$0xff] }
 0x8d4   :  { %1295 = vadd.xlane.f32.xlu0 %v1294_v1  ;;  %1600 = vmatpush.msrb.mxu0 %v88_v6 }
 0x8d9   :  { %v1290_v58 = vpop.xlane.xlu0 %1289 }
 0x8da   :  { %2454 = vrcp.f32 %v1290_v58 }
 0x8e0   :  { %v2455_v0 = vpop.eup %2454 }
 0x8e1   :  { %v1332_v4 = vmul.f32 %v2455_v0, %v2443_v45  ;;  %v1293_v7 = vpop.xlane.xlu0 %1292 }
 0x8e2   :  { %2456 = vrcp.f32 %v1293_v7  ;;  %v1565_v34 = vpop.permute.xlu2 %1564  ;;  %v2478_v7 = vld [vmem:[%s3391_s2 + $0x4] sm:$0x3] }
 0x8e3   :  { %2319 = vmatmul.msk.f32.vlgmr.msrb.gmra.mxu3 %vm245_vm5, %v1332_v4  ;;  %2458 = vrcp.f32 %v1299_v2  ;;  %v1575_v21 = vsel %vm245_vm5, %v1482_v15, %v1565_v34  ;;  %v117_v34 = vld [vmem:[%s3402_s13 + $0x38] sm:$0xff] }
 0x8e4   :  { %2460 = vrcp.f32 %v1302_v5  ;;  %v2479_v5 = vld [vmem:[%s3391_s2] sm:$0x3] }
 0x8e8   :  { %v2457_v10 = vpop.eup %2456 }
 0x8e9   :  { %v1333_v12 = vmul.f32 %v2457_v10, %v3150_v48  ;;  %v2459_v37 = vpop.eup %2458 }
 0x8ea   :  { %v1335_v38 = vmul.f32 %v2459_v37, %v3144_v26  ;;  %v1448_v41 = vpop.permute.xlu2 %1447  ;;  %v2461_v29 = vpop.eup %2460  ;;  %v116_v37 = vld [vmem:[%s3402_s13 + $0x30] sm:$0xff] }
 0x8eb   :  { %v1456_v16 = vsel %vm1455_vm15, %v1454_v53, %v1448_v41  ;;  %v1336_v30 = vmul.f32 %v2461_v29, %v3136_v22  ;;  %v113_v41 = vld [vmem:[%s3402_s13 + $0x18] sm:$0xff]  ;;  %v111_v53 = vld [vmem:[%s3402_s13 + $0x8] sm:$0xff] }
 0x8ee   :  { %v1657_v9 = vpop.f32.mrf.mxu2 }
 0x8ef   :  { %1713 = vrot.lane.b32.xlu1 %v1657_v9, %s2517_s8 }
 0x8f4   :  { %v1687_v13 = vpop.permute.xlu0 %1686 }
 0x8f5   :  { %1707 = vmatpush.msra.mxu1 %v1687_v13  ;;  %v2481_v13 = vld [vmem:[%s3391_s2 + $0x2] sm:$0x3] }
 0x8f6   :  { %2320 = vmatmul.msk.f32.vlgmr.msra.gmra.mxu1 %vm245_vm5, %v1333_v12  ;;  %v2480_v12 = vld [vmem:[%s3391_s2 + $0x6] sm:$0x3] }
 0x8f7   :  { %1826 = vmatpush.msrb.mxu1 %v1806_v11 }
 0x8f9   :  { %v1631_v49 = vpop.f32.mrf.mxu1  ;;  %1934 = vmatpush.msra.mxu1 %v117_v34 }
 0x8fb   :  { %1935 = vmatpush.msra.mxu1 %v116_v37 }
 0x8fc   :  { %v1754_v40 = vpop.permute.xlu0 %1753 }
 0x8fd   :  { %1774 = vmatpush.msra.mxu3 %v1754_v40  ;;  %v114_v40 = vld [vmem:[%s3402_s13 + $0x20] sm:$0xff] }
 0x8fe   :  { %2322 = vmatmul.msk.f32.vlgmr.msra.gmra.mxu3 %vm245_vm5, %v1335_v38  ;;  %v115_v38 = vld [vmem:[%s3402_s13 + $0x28] sm:$0xff] }
 0x8ff   :  { %1936 = vmatpush.msra.mxu1 %v115_v38 }
 0x901   :  { %1937 = vmatpush.msra.mxu1 %v114_v40 }
 0x903   :  { %1938 = vmatpush.msra.mxu1 %v113_v41 }
 0x904   :  { %v1452_v42 = vpop.permute.xlu0 %1451 }
 0x905   :  { %v1458_v17 = vsel %vm1457_vm1, %v1456_v16, %v1452_v42  ;;  %1939 = vmatpush.msra.mxu1 %v112_v14  ;;  %v110_v16 = vld [vmem:[%s3402_s13] sm:$0xff] }
 0x906   :  { %2315 = vmatmul.msk.f32.vlgmr.msrb.gmra.mxu0 %vm133_vm0, %v1458_v17  ;;  %v70_v42 = vld [vmem:[%s3393_s4] sm:$0x3]  ;;  %v2527_v17 = vmov 0  }
 0x907   :  { %1940 = vmatpush.msra.mxu1 %v111_v53  ;;  %2378 = vset.pattern.permute.xlu2 %v2527_v17 }
 0x909   :  { %1941 = vmatpush.msra.mxu1 %v110_v16 }
 0x90c   :  { %v1569_v19 = vpop.permute.xlu0 %1568 }
 0x90d   :  { %v1576_v23 = vsel %vm1455_vm15, %v1575_v21, %v1569_v19 }
 0x914   :  { %v1573_v24 = vpop.permute.xlu0 %1572 }
 0x915   :  { %v1577_v26 = vsel %vm1457_vm1, %v1576_v23, %v1573_v24  ;;  %v2528_v24 = vmov 1  }
 0x916   :  { %2316 = vmatmul.msk.f32.gmra.mxu0 %vm133_vm0, %v1577_v26  ;;  %2379 = vset.pattern.permute.xlu1 %v2528_v24 }
 0x917   :  { %2380 = vset.pattern.permute.xlu0 %v2528_v24 }
 0x91c   :  { %v1780_v36 = vpop.permute.xlu0 %1779 }
 0x91d   :  { %1800 = vmatpush.msra.mxu0 %v1780_v36  ;;  %v2389_v36 = vld [vmem:[%s3402_s13 + $0x40] ss:$0 sm:$0xff] }
 0x91e   :  { %2323 = vmatmul.msk.f32.vlgmr.msra.gmra.mxu0 %vm245_vm5, %v1336_v30 }
 0x92c   :  { %v1305_v44 = vpop.xlane.xlu2 %1304 }
 0x92d   :  { %2462 = vrcp.f32 %v1305_v44 }
 0x933   :  { %v2463_v45 = vpop.eup %2462 }
 0x934   :  { %v1337_v25 = vmul.f32 %v2463_v45, %v3171_v54  ;;  %v1728_v28 = vpop.permute.xlu2 %1727 }
 0x935   :  { %1748 = vmatpush.msra.mxu2 %v1728_v28 }
 0x936   :  { %2324 = vmatmul.msk.f32.vlgmr.msrb.gmra.mxu1 %vm245_vm5, %v1337_v25 }
 0x937   :  { %1865 = vmatpush.msrb.mxu2 %v96_v52  ;;  %v2482_v52 = vld [vmem:[%s3408_s23] sm:$0xff] }
 0x939   :  { %1866 = vmatpush.msrb.mxu2 %v95_v47 }
 0x93b   :  { %1867 = vmatpush.msrb.mxu2 %v94_v43 }
 0x93d   :  { %1868 = vmatpush.msrb.mxu2 %v93_v39 }
 0x947   :  { %v1296_v46 = vpop.xlane.xlu0 %1295 }
 0x948   :  { %2464 = vrcp.f32 %v1296_v46 }
 0x94e   :  { %v2465_v31 = vpop.eup %2464 }
 0x94f   :  { %v1334_v48 = vmul.f32 %v2465_v31, %v3176_v63 }
 0x951   :  { %2321 = vmatmul.msk.f32.vlgmr.msra.gmra.mxu2 %vm245_vm5, %v1334_v48 }
 0x952   :  { %2015 = vmatpush.msra.mxu2 %v117_v34  ;;  %v121_v34 = vld [vmem:[%s3403_s14 + $0x10] sm:$0xff] }
 0x954   :  { %2016 = vmatpush.msra.mxu2 %v116_v37  ;;  %v120_v37 = vld [vmem:[%s3403_s14 + $0x8] sm:$0xff] }
 0x956   :  { %2017 = vmatpush.msra.mxu2 %v115_v38  ;;  %v119_v38 = vld [vmem:[%s3403_s14] sm:$0xff] }
 0x958   :  { %2018 = vmatpush.msra.mxu2 %v114_v40 }
 0x95a   :  { %2019 = vmatpush.msra.mxu2 %v113_v41 }
 0x95c   :  { %2020 = vmatpush.msra.mxu2 %v112_v14 }
 0x95e   :  { %2021 = vmatpush.msra.mxu2 %v111_v53 }
 0x960   :  { %2022 = vmatpush.msra.mxu2 %v110_v16 }
 0x961   :  { %v1714_v61 = vpop.permute.xlu1 %1713 }
 0x962   :  { %v1724_v55 = vsel %vm245_vm5, %v1631_v49, %v1714_v61 }
 0x966   :  { %v1683_v22 = vpop.f32.mrf.mxu3 }
 0x967   :  { %1717 = vrot.lane.b32.xlu2 %v1683_v22, %s2523_s21 }
 0x973   :  { %v1709_v3 = vpop.f32.mrf.mxu1 }
 0x974   :  { %1721 = vrot.lane.b32.xlu1 %v1709_v3, %s2522_s20 }
 0x981   :  { %v1776_v33 = vpop.f32.mrf.mxu3 }
 0x982   :  { %1832 = vrot.lane.b32.xlu2 %v1776_v33, %s2517_s8 }
 0x983   :  { %v3218_v18 = vpop.f32.mrf.mxu0 }
 0x984   :  { %v1603_v33 = vadd.f32 %v3223_v50, %v3218_v18 }
 0x993   :  { %v1605_v57 = vpop.f32.mrf.mxu0 }
 0x994   :  { %v3226_v51 = vadd.f32 %v3223_v50, %v1605_v57 }
 0x99b   :  { %v1802_v62 = vpop.f32.mrf.mxu0 }
 0x99c   :  { %1836 = vrot.lane.b32.xlu1 %v1802_v62, %s2523_s21 }
 0x9b3   :  { %v1828_v32 = vpop.f32.mrf.mxu1 }
 0x9b4   :  { %1840 = vrot.lane.b32.xlu0 %v1828_v32, %s2522_s20 }
 0x9c1   :  { %v1718_v54 = vpop.permute.xlu2 %1717 }
 0x9c2   :  { %v1725_v56 = vsel %vm1455_vm15, %v1724_v55, %v1718_v54 }
 0x9d4   :  { %v1750_v1 = vpop.f32.mrf.mxu2 }
 0x9dc   :  { %v1833_v63 = vpop.permute.xlu2 %1832 }
 0x9dd   :  { %v1843_v58 = vsel %vm245_vm5, %v1750_v1, %v1833_v63 }
 0x9e6   :  { %v1722_v27 = vpop.permute.xlu1 %1721 }
 0x9e7   :  { %v1726_v60 = vsel %vm1457_vm1, %v1725_v56, %v1722_v27 }
 0x9e8   :  { %2325 = vmatmul.msk.f32.vlgmr.msrb.gmra.mxu2 %vm133_vm0, %v1726_v60 }
 0xa0e   :  { %v1837_v2 = vpop.permute.xlu1 %1836 }
 0xa0f   :  { %v1844_v59 = vsel %vm1455_vm15, %v1843_v58, %v1837_v2 }
 0xa26   :  { %v1841_v35 = vpop.permute.xlu0 %1840 }
 0xa27   :  { %v1845_v0 = vsel %vm1457_vm1, %v1844_v59, %v1841_v35  ;;  %v2483_v59 = vld [vmem:[%s3408_s23 + $0x8] sm:$0xff] }
 0xa28   :  { %2326 = vmatmul.msk.f32.gmra.mxu2 %vm133_vm0, %v1845_v0 }
 0xa6b   :  { %v1870_v4 = vpop.f32.mrf.mxu2 }
 0xa6c   :  { %v1871_v6 = vadd.f32 %v2388_v20, %v1870_v4 }
 0xa6e   :  { %1891 = vmatpush.msrb.mxu3 %v1871_v6  ;;  %1911 = vmatpush.msrb.mxu0 %v1871_v6 }
 0xa6f   :  { %2328 = vmatmul.msk.f32.vlgmr.msrb.gmra.mxu0 %vm245_vm5, %v2478_v7  ;;  %2327 = vmatmul.msk.f32.vlgmr.msrb.gmra.mxu3 %vm245_vm5, %v2479_v5 }
 0xaab   :  { %v1873_v9 = vpop.f32.mrf.mxu2 }
 0xaac   :  { %v1874_v10 = vadd.f32 %v2388_v20, %v1873_v9 }
 0xaae   :  { %1974 = vmatpush.msra.mxu3 %v1874_v10  ;;  %1994 = vmatpush.msra.mxu0 %v1874_v10 }
 0xaaf   :  { %2331 = vmatmul.msk.f32.vlgmr.msra.gmra.mxu0 %vm245_vm5, %v2480_v12  ;;  %2330 = vmatmul.msk.f32.vlgmr.msra.gmra.mxu3 %vm245_vm5, %v2481_v13 }
 0xaec   :  { %v1913_v11 = vpop.f32.mrf.mxu0 }
 0xaed   :  { %1917 = vrot.lane.b32.xlu2 %v1913_v11, %s2512_s30  ;;  %v122_v11 = vld [vmem:[%s3403_s14 + $0x18] sm:$0xff] }
 0xaee   :  { %2114 = vmatpush.msrb.mxu3 %v122_v11 }
 0xaf0   :  { %2115 = vmatpush.msrb.mxu3 %v121_v34 }
 0xaf2   :  { %v1893_v15 = vpop.f32.mrf.mxu3  ;;  %2116 = vmatpush.msrb.mxu3 %v120_v37 }
 0xaf4   :  { %2117 = vmatpush.msrb.mxu3 %v119_v38 }
 0xaf5   :  { %1948 = vperm.xlu2 %2378, %v70_v42  }
 0xb2c   :  { %v1996_v19 = vpop.f32.mrf.mxu0 }
 0xb2d   :  { %2000 = vrot.lane.b32.xlu1 %v1996_v19, %s2512_s30 }
 0xb32   :  { %v1976_v26 = vpop.f32.mrf.mxu3 }
 0xb35   :  { %2028 = vperm.xlu1 %2379, %v70_v42  }
 0xb47   :  { %v1918_v21 = vpop.permute.xlu2 %1917 }
 0xb48   :  { %v1920_v23 = vsel %vm133_vm0, %v1893_v15, %v1918_v21  ;;  %v2484_v21 = vld [vmem:[%s3396_s7] sm:$0xf] }
 0xb49   :  { %2329 = vmatmul.msk.f32.vlgmr.msra.gmra.mxu1 %vm1922_vm2, %v1920_v23  ;;  %v2089_v23 = vperm.slane %v2484_v21, 2 }
 0xb4f   :  { %v1949_v45 = vpop.permute.xlu2 %1948 }
 0xb9f   :  { %v2001_v29 = vpop.permute.xlu1 %2000 }
 0xba0   :  { %v2003_v30 = vsel %vm133_vm0, %v1976_v26, %v2001_v29  ;;  %v2092_v29 = vperm.slane %v2484_v21, 3 }
 0xba1   :  { %2332 = vmatmul.msk.f32.vlgmr.msra.gmra.mxu2 %vm1922_vm2, %v2003_v30 }
 0xba7   :  { %v2029_v61 = vpop.permute.xlu1 %2028 }
 0xbc6   :  { %v1943_v44 = vpop.f32.mrf.mxu1 }
 0xbc7   :  { %v1944_v25 = vadd.f32 %v2389_v36, %v1943_v44 }
 0xbc9   :  { %v1951_v28 = vmul.f32 %v1949_v45, %v1944_v25 }
 0xbcb   :  { %v1952_v46 = vsel %vm385_vm6, %v1951_v28, 0.0 }
 0xbcc   :  { %v1953_v31 = vrot.slane %v1952_v46, 4 }
 0xbce   :  { %v1954_v48 = vadd.f32 %v1953_v31, %v1952_v46 }
 0xbd0   :  { %v1955_v22 = vrot.slane %v1954_v48, 2 }
 0xbd2   :  { %v1956_v49 = vadd.f32 %v1955_v22, %v1954_v48 }
 0xbd4   :  { %v1957_v3 = vrot.slane %v1956_v49, 1 }
 0xbd6   :  { %v1958_v57 = vadd.f32 %v1957_v3, %v1956_v49 }
 0xbd8   :  { %v2039_v62 = vadd.f32 %v1958_v57, %v1603_v33 }
 0xbda   :  { %v2041_v32 = vmul.f32 0.5, %v2039_v62 }
 0xbdc   :  { %v3311_v47 = vadd.f32 %v2482_v52, %v2041_v32 }
 0xbde   :  { %v2045_v43 = vsel %vm133_vm0, %v3311_v47, 0.0 }
 0xbdf   :  { %2046 = vadd.xlane.f32.xlu2 %v2045_v43 }
 0xc24   :  { %v2024_v39 = vpop.f32.mrf.mxu2 }
 0xc25   :  { %v2025_v54 = vadd.f32 %v2389_v36, %v2024_v39 }
 0xc27   :  { %v2031_v55 = vmul.f32 %v2029_v61, %v2025_v54 }
 0xc29   :  { %v2032_v56 = vsel %vm385_vm6, %v2031_v55, 0.0  ;;  %v131_v55 = vld [vmem:[%s3404_s15 + $0x38] sm:$0xff] }
 0xc2a   :  { %v2033_v18 = vrot.slane %v2032_v56, 4  ;;  %2220 = vmatpush.msrb.mxu0 %v131_v55 }
 0xc2c   :  { %v2034_v50 = vadd.f32 %v2033_v18, %v2032_v56  ;;  %v130_v56 = vld [vmem:[%s3404_s15 + $0x30] sm:$0xff]  ;;  %v129_v18 = vld [vmem:[%s3404_s15 + $0x28] sm:$0xff] }
 0xc2d   :  { %2221 = vmatpush.msrb.mxu0 %v130_v56 }
 0xc2e   :  { %v2035_v27 = vrot.slane %v2034_v50, 2 }
 0xc2f   :  { %2222 = vmatpush.msrb.mxu0 %v129_v18 }
 0xc30   :  { %v2036_v60 = vadd.f32 %v2035_v27, %v2034_v50 }
 0xc32   :  { %v2037_v63 = vrot.slane %v2036_v60, 1 }
 0xc34   :  { %v2038_v2 = vadd.f32 %v2037_v63, %v2036_v60  ;;  %v128_v60 = vld [vmem:[%s3404_s15 + $0x20] sm:$0xff] }
 0xc35   :  { %2223 = vmatpush.msrb.mxu0 %v128_v60 }
 0xc36   :  { %v2040_v1 = vadd.f32 %v2038_v2, %v3226_v51  ;;  %v127_v2 = vld [vmem:[%s3404_s15 + $0x18] sm:$0xff] }
 0xc37   :  { %2224 = vmatpush.msrb.mxu0 %v127_v2 }
 0xc38   :  { %v2042_v58 = vmul.f32 0.5, %v2040_v1 }
 0xc3a   :  { %v3320_v35 = vadd.f32 %v2483_v59, %v2042_v58 }
 0xc3c   :  { %v2048_v0 = vsel %vm133_vm0, %v3320_v35, 0.0 }
 0xc3d   :  { %2049 = vadd.xlane.f32.xlu0 %v2048_v0  ;;  %v126_v0 = vld [vmem:[%s3404_s15 + $0x10] sm:$0xff] }
 0xc3e   :  { %2225 = vmatpush.msrb.mxu0 %v126_v0 }
 0xc52   :  { %v2047_v20 = vpop.xlane.xlu2 %2046 }
 0xc53   :  { %v2051_v4 = vmul.f32 %v2047_v20, %v2620_v8  ;;  %v125_v20 = vld [vmem:[%s3404_s15 + $0x8] sm:$0xff] }
 0xc54   :  { %2226 = vmatpush.msrb.mxu0 %v125_v20  ;;  %v2391_v20 = vld [vmem:[%s3404_s15 + $0x40] ss:$0 sm:$0xff] }
 0xc55   :  { %v2053_v6 = vsub.f32 %v3311_v47, %v2051_v4 }
 0xc57   :  { %v2055_v7 = vmul.f32 %v2053_v6, %v2053_v6 }
 0xc59   :  { %v2057_v5 = vsel %vm133_vm0, %v2055_v7, 0.0 }
 0xc5a   :  { %2058 = vadd.xlane.f32.xlu1 %v2057_v5 }
 0xcb0   :  { %v2050_v51 = vpop.xlane.xlu0 %2049 }
 0xcb1   :  { %v2052_v9 = vmul.f32 %v2050_v51, %v2620_v8 }
 0xcb3   :  { %v2054_v10 = vsub.f32 %v3320_v35, %v2052_v9 }
 0xcb5   :  { %v2056_v12 = vmul.f32 %v2054_v10, %v2054_v10 }
 0xcb7   :  { %v2060_v13 = vsel %vm133_vm0, %v2056_v12, 0.0 }
 0xcb8   :  { %2061 = vadd.xlane.f32.xlu2 %v2060_v13 }
 0xccd   :  { %v2059_v40 = vpop.xlane.xlu1 %2058 }
 0xcce   :  { %v2063_v41 = vmul.f32 %v2059_v40, %v2620_v8 }
 0xcd0   :  { %v2065_v14 = vadd.f32 1e-05, %v2063_v41 }
 0xcd2   :  { %2466 = vrsqrt.f32 %v2065_v14  ;;  %vm2073_vm4 = vweird.f32 %v2065_v14 }
 0xcd8   :  { %v2467_v53 = vpop.eup %2466 }
 0xcd9   :  { %v2068_v16 = vmul.f32 %v2467_v53, %v2065_v14  ;;  %vm2074_vm3 = vweird.f32 %v2467_v53 }
 0xcda   :  { %vm2075_vm5 = vmor %vm2073_vm4, %vm2074_vm3 }
 0xcdb   :  { %v2069_v42 = vmul.f32 %v2467_v53, %v2068_v16 }
 0xcdd   :  { %v2070_v17 = vmul.f32 0.5, %v2069_v42 }
 0xcdf   :  { %v2071_v19 = vsub.f32 1.5, %v2070_v17 }
 0xce1   :  { %v2072_v15 = vmul.f32 %v2467_v53, %v2071_v19 }
 0xce3   :  { %v2076_v24 = vsel %vm2075_vm5, %v2467_v53, %v2072_v15 }
 0xce4   :  { %v2087_v26 = vmul.f32 %v2076_v24, %v2053_v6  ;;  %v124_v6 = vld [vmem:[%s3404_s15] sm:$0xff]  ;;  %s2530_s15 = smov 128  }
 0xce5   :  { %2227 = vmatpush.msrb.mxu0 %v124_v6 }
 0xce6   :  { %v2090_v30 = vmul.f32 %v2089_v23, %v2087_v26 }
 0xce8   :  { %v2093_v36 = vadd.f32 %v2092_v29, %v2090_v30 }
 0xcea   :  { %2333 = vmatmul.msk.f32.vlgmr.msrb.gmra.mxu3 %vm133_vm0, %v2093_v36 }
 0xd2b   :  { %v2062_v44 = vpop.xlane.xlu2 %2061 }
 0xd2c   :  { %v2064_v45 = vmul.f32 %v2062_v44, %v2620_v8  ;;  %v2390_v8 = vld [vmem:[%s3403_s14 + $0x20] ss:$0 sm:$0xff] }
 0xd2e   :  { %v2066_v25 = vadd.f32 1e-05, %v2064_v45 }
 0xd30   :  { %2468 = vrsqrt.f32 %v2066_v25  ;;  %vm2083_vm7 = vweird.f32 %v2066_v25 }
 0xd36   :  { %v2469_v28 = vpop.eup %2468 }
 0xd37   :  { %v2078_v46 = vmul.f32 %v2469_v28, %v2066_v25  ;;  %vm2084_vm6 = vweird.f32 %v2469_v28 }
 0xd38   :  { %vm2085_vm8 = vmor %vm2083_vm7, %vm2084_vm6 }
 0xd39   :  { %v2079_v31 = vmul.f32 %v2469_v28, %v2078_v46 }
 0xd3b   :  { %v2080_v48 = vmul.f32 0.5, %v2079_v31 }
 0xd3d   :  { %v2081_v22 = vsub.f32 1.5, %v2080_v48 }
 0xd3f   :  { %v2082_v49 = vmul.f32 %v2469_v28, %v2081_v22 }
 0xd41   :  { %v2086_v3 = vsel %vm2085_vm8, %v2469_v28, %v2082_v49 }
 0xd42   :  { %v2088_v33 = vmul.f32 %v2086_v3, %v2054_v10 }
 0xd44   :  { %v2091_v57 = vmul.f32 %v2089_v23, %v2088_v33 }
 0xd46   :  { %v2094_v62 = vadd.f32 %v2092_v29, %v2091_v57 }
 0xd48   :  { %2334 = vmatmul.msk.f32.gmra.mxu3 %vm133_vm0, %v2094_v62 }
 0xd6d   :  { %v2119_v32 = vpop.f32.mrf.mxu3 }
 0xd6e   :  { %v2120_v52 = vadd.f32 %v2390_v8, %v2119_v32 }
 0xd70   :  { %v2127_v43 = vmul.f32 0.70710677, %v2120_v52  ;;  %v2125_v21 = vmul.f32 0.5, %v2120_v52 }
 0xd72   :  { %v2129_v39 = vand.u32 2147483647, %v2127_v43  ;;  %vm2195_vm13 = vcmp.ge.f32.partialorder %v2127_v43, 0.0 }
 0xd74   :  { %v2131_v61 = vmul.f32 0.3275911, %v2129_v39  ;;  %v2183_v9 = vsub.f32 0.0, %v2129_v39 }
 0xd76   :  { %v2133_v54 = vadd.f32 1.0, %v2131_v61  ;;  %v2185_v13 = vmul.f32 %v2183_v9, %v2129_v39 }
 0xd78   :  { %2470 = vrcp.f32 %v2133_v54  ;;  %v2146_v1 = vand.u32 2147483648, %v2133_v54  ;;  %v2144_v59 = vand.u32 2147483647, %v2133_v54  ;;  %vm2140_vm10 = vweird.f32 %v2133_v54 }
 0xd79   :  { %v2187_v37 = vmul.f32 1.442695, %v2185_v13 }
 0xd7a   :  { %v2147_v7 = vor.u32 1.1754944e-38, %v2146_v1  ;;  %vm2145_vm12 = vcmp.eq.f32.partialorder %v2144_v59, 8.507059e+37 }
 0xd7b   :  { %2472 = vpow2.f32 %v2187_v37 }
 0xd7e   :  { %v2471_v50 = vpop.eup %2470 }
 0xd7f   :  { %v2136_v27 = vmul.f32 %v2471_v50, %v2133_v54  ;;  %vm2141_vm9 = vweird.f32 %v2471_v50 }
 0xd80   :  { %vm2142_vm11 = vmor %vm2140_vm10, %vm2141_vm9 }
 0xd81   :  { %v2137_v63 = vsub.f32 1.0, %v2136_v27  ;;  %v2473_v16 = vpop.eup %2472 }
 0xd83   :  { %v2138_v58 = vmul.f32 %v2471_v50, %v2137_v63 }
 0xd85   :  { %v2139_v4 = vadd.f32 %v2471_v50, %v2138_v58 }
 0xd87   :  { %v2143_v5 = vsel %vm2142_vm11, %v2471_v50, %v2139_v4 }
 0xd88   :  { %v2148_v51 = vsel %vm2145_vm12, %v2147_v7, %v2143_v5 }
 0xd89   :  { %v2165_v10 = vmul.f32 1.0614054, %v2148_v51 }
 0xd8b   :  { %v2167_v12 = vadd.f32 -1.4531521, %v2165_v10 }
 0xd8d   :  { %v2169_v11 = vmul.f32 %v2167_v12, %v2148_v51 }
 0xd8f   :  { %v2171_v34 = vadd.f32 1.4214138, %v2169_v11 }
 0xd91   :  { %v2173_v38 = vmul.f32 %v2171_v34, %v2148_v51 }
 0xd93   :  { %v2175_v40 = vadd.f32 -0.28449672, %v2173_v38 }
 0xd95   :  { %v2177_v41 = vmul.f32 %v2175_v40, %v2148_v51 }
 0xd97   :  { %v2179_v14 = vadd.f32 0.2548296, %v2177_v41 }
 0xd99   :  { %v2181_v53 = vmul.f32 %v2179_v14, %v2148_v51 }
 0xd9b   :  { %v2191_v42 = vmul.f32 %v2473_v16, %v2181_v53 }
 0xd9d   :  { %v2193_v17 = vsub.f32 1.0, %v2191_v42 }
 0xd9f   :  { %v2197_v19 = vsub.f32 0.0, %v2193_v17 }
 0xda1   :  { %v2199_v15 = vsel %vm2195_vm13, %v2193_v17, %v2197_v19 }
 0xda2   :  { %v2201_v23 = vadd.f32 1.0, %v2199_v15 }
 0xda4   :  { %v2203_v24 = vmul.f32 %v2201_v23, %v2125_v21 }
 0xda6   :  { %2335 = vmatmul.msk.f32.vlgmr.msrb.gmra.mxu0 %vm1922_vm2, %v2203_v24 }
 0xdcb   :  { %v2122_v26 = vpop.f32.mrf.mxu3 }
 0xdcc   :  { %v2123_v29 = vadd.f32 %v2390_v8, %v2122_v26 }
 0xdce   :  { %v2128_v30 = vmul.f32 0.70710677, %v2123_v29  ;;  %v2126_v58 = vmul.f32 0.5, %v2123_v29 }
 0xdd0   :  { %v2130_v36 = vand.u32 2147483647, %v2128_v30  ;;  %vm2196_vm4 = vcmp.ge.f32.partialorder %v2128_v30, 0.0 }
 0xdd2   :  { %v2132_v44 = vmul.f32 0.3275911, %v2130_v36  ;;  %v2184_v57 = vsub.f32 0.0, %v2130_v36 }
 0xdd4   :  { %v2134_v45 = vadd.f32 1.0, %v2132_v44  ;;  %v2186_v52 = vmul.f32 %v2184_v57, %v2130_v36 }
 0xdd6   :  { %2474 = vrcp.f32 %v2134_v45  ;;  %v2161_v31 = vand.u32 2147483648, %v2134_v45  ;;  %v2159_v22 = vand.u32 2147483647, %v2134_v45  ;;  %vm2155_vm15 = vweird.f32 %v2134_v45 }
 0xdd7   :  { %v2189_v61 = vmul.f32 1.442695, %v2186_v52 }
 0xdd8   :  { %v2162_v3 = vor.u32 1.1754944e-38, %v2161_v31  ;;  %vm2160_vm3 = vcmp.eq.f32.partialorder %v2159_v22, 8.507059e+37 }
 0xdd9   :  { %2476 = vpow2.f32 %v2189_v61 }
 0xddc   :  { %v2475_v25 = vpop.eup %2474 }
 0xddd   :  { %v2151_v28 = vmul.f32 %v2475_v25, %v2134_v45  ;;  %vm2156_vm14 = vweird.f32 %v2475_v25 }
 0xdde   :  { %vm2157_vm1 = vmor %vm2155_vm15, %vm2156_vm14 }
 0xddf   :  { %v2152_v46 = vsub.f32 1.0, %v2151_v28  ;;  %v2477_v27 = vpop.eup %2476 }
 0xde1   :  { %v2153_v48 = vmul.f32 %v2475_v25, %v2152_v46 }
 0xde3   :  { %v2154_v49 = vadd.f32 %v2475_v25, %v2153_v48 }
 0xde5   :  { %v2158_v33 = vsel %vm2157_vm1, %v2475_v25, %v2154_v49 }
 0xde6   :  { %v2163_v62 = vsel %vm2160_vm3, %v2162_v3, %v2158_v33 }
 0xde7   :  { %v2166_v8 = vmul.f32 1.0614054, %v2163_v62 }
 0xde9   :  { %v2168_v32 = vadd.f32 -1.4531521, %v2166_v8 }
 0xdeb   :  { %v2170_v43 = vmul.f32 %v2168_v32, %v2163_v62 }
 0xded   :  { %v2172_v39 = vadd.f32 1.4214138, %v2170_v43 }
 0xdef   :  { %v2174_v54 = vmul.f32 %v2172_v39, %v2163_v62 }
 0xdf1   :  { %v2176_v55 = vadd.f32 -0.28449672, %v2174_v54 }
 0xdf3   :  { %v2178_v56 = vmul.f32 %v2176_v55, %v2163_v62 }
 0xdf5   :  { %v2180_v18 = vadd.f32 0.2548296, %v2178_v56 }
 0xdf7   :  { %v2182_v50 = vmul.f32 %v2180_v18, %v2163_v62 }
 0xdf9   :  { %v2192_v60 = vmul.f32 %v2477_v27, %v2182_v50 }
 0xdfb   :  { %v2194_v63 = vsub.f32 1.0, %v2192_v60 }
 0xdfd   :  { %v2198_v2 = vsub.f32 0.0, %v2194_v63 }
 0xdff   :  { %v2200_v1 = vsel %vm2196_vm4, %v2194_v63, %v2198_v2 }
 0xe00   :  { %v2202_v59 = vadd.f32 1.0, %v2200_v1 }
 0xe02   :  { %v2204_v0 = vmul.f32 %v2202_v59, %v2126_v58 }
 0xe04   :  { %2336 = vmatmul.msk.f32.gmra.mxu0 %vm1922_vm2, %v2204_v0 }
 0xe23   :  { %v2229_v4 = vpop.f32.mrf.mxu0 }
 0xe24   :  { %v2230_v6 = vadd.f32 %v2391_v20, %v2229_v4 }
 0xe26   :  { %v2235_v7 = vadd.f32 %v2230_v6, %v3311_v47 }
 0xe28   :  { %2237 = vst.msk [vmem:[#allocation2] sm:$0xff] %vm133_vm0, %v2235_v7 }
 0xe81   :  { %v2232_v5 = vpop.f32.mrf.mxu0 }
 0xe82   :  { %v2233_v51 = vadd.f32 %v2391_v20, %v2232_v5 }
 0xe84   :  { %v2236_v9 = vadd.f32 %v2233_v51, %v3320_v35 }
 0xe86   :  { %2238 = vst.msk [vmem:[#allocation2 + $0x8] sm:$0xff] %vm133_vm0, %v2236_v9 }
 0xe87   :  { %2251 = dma.vmem_to_hbm [thread:$0]  %s2244_s26, 256, %s2246_s25, [#allocation3], %s2530_s15, %s2530_s15, %s2517_s8  }
 0xe88   :  { %2509 = dma.done.wait [#allocation3], 256  }
 0xe89   :  { %2510 = vsyncadd [#allocation3], 4294967040 }
 0xe8a   :  { %2256 = vsyncpa [#allocation3], 1 }

</bundles_post_ra>
